<compile_context>
chip_gen: v7x
topology: tpu7x:2x2x1
jax: 0.10.0
libtpu: 0.0.40
codegen_flags: <defaults>
</compile_context>

<pallas_src>
import jax
import jax.numpy as jnp
import numpy as np
from jax.experimental import pallas as pl
from jax.experimental.pallas import tpu as pltpu

# ---- model sizes (small, consistent with the module's constructor) ----
ATTENTION_DIM = 32
EMBED_DIM = 16
DECODER_DIM = 32
VOCAB_SIZE = 64
ENCODER_DIM = 32       # encoder_dim (2048 in the original; shrunk for a synthetic kernel)
B = 2                  # batch
ENC_IMG = 4            # enc_image_size  -> num_pixels = 16
NUM_PIXELS = ENC_IMG * ENC_IMG
MAX_CAP_LEN = 8
LANE = 128


# ---------------------------------------------------------------------------
# Pallas kernel: whole decode (all timesteps) in one invocation.
# ---------------------------------------------------------------------------
def decoder_kernel(
    len_ref,               # (B, 1) int32   decode_lengths (sorted descending)
    enc_ref,               # (B, P, E)      encoder_out (sorted)
    emb_ref,               # (T, B, EM)     time-major embeddings
    w_ea_ref, b_ea_ref,    # encoder_attention  (A, E), (1, A)
    w_fa_ref, b_fa_ref,    # full_attention     (1, A), (1, 1)
    w_init_ref, b_init_ref,  # fused [init_h; init_c]            (2D, E), (1, 2D)
    w_h_ref, b_h_ref,        # fused [lstm W_hh; dec_att; f_beta] (4D+A+E, D), (1, 4D+A+E)
    w_lxe_ref,             # LSTM weight_ih, embedding columns   (4D, EM)
    w_lxa_ref,             # LSTM weight_ih, awe columns         (4D, E)
    b_lx_ref,              # LSTM bias_ih                        (1, 4D)
    w_fc_ref, b_fc_ref,    # fc, vocab zero-padded to lane width (Vp, D), (1, Vp)
    pred_ref,              # out (T, B, Vp)
    alpha_ref,             # out (T, B, P)
    h_scr, c_scr,          # scratch (B, D)
):
    enc = enc_ref[...]                                   # (B, P, E)
    Bq, Pq, Eq = enc.shape
    T = pred_ref.shape[0]
    A = w_ea_ref.shape[0]
    D = h_scr.shape[1]

    # ---------- t-invariant work (hoisted out of the decode loop) ----------
    enc_flat = enc.reshape(Bq * Pq, Eq)                  # (B*P, E)
    att1 = (jnp.dot(enc_flat, w_ea_ref[...].T,
                    preferred_element_type=jnp.float32) + b_ea_ref[...]
            ).reshape(Bq, Pq, A)                         # (B, P, A)

    mean_enc = jnp.mean(enc, axis=1)                     # (B, E)
    hc0 = (jnp.dot(mean_enc, w_init_ref[...].T,
                   preferred_element_type=jnp.float32) + b_init_ref[...])   # (B, 2D)
    h_scr[...] = hc0[:, :D]
    c_scr[...] = hc0[:, D:]

    lengths = len_ref[...]                               # (B, 1) int32
    w_fa_b = jnp.broadcast_to(w_fa_ref[...][None, :, :], (Bq, Pq, A))  # hoisted broadcast
    b_fa = b_fa_ref[...]                                 # (1, 1)
    w_h = w_h_ref[...]
    b_h = b_h_ref[...]
    w_lxe = w_lxe_ref[...]
    w_lxa = w_lxa_ref[...]
    b_lx = b_lx_ref[...]
    w_fc = w_fc_ref[...]
    b_fc = b_fc_ref[...]

    # ---------- decode loop (recurrent over t, h/c carried in VMEM scratch) ----------
    @pl.loop(0, T, unroll=True)
    def _(t):
        h = h_scr[...]                                   # (B, D)
        c = c_scr[...]
        active = lengths > t                             # (B, 1) == "row < batch_size_t"

        # Every h-dependent linear in ONE matmul: [lstm_hh | decoder_attention | f_beta].
        hproj = jnp.dot(h, w_h.T, preferred_element_type=jnp.float32) + b_h   # (B, 4D+A+E)
        gates_h = hproj[:, :4 * D]                       # aligned 128-lane chunk first
        att2 = hproj[:, 4 * D:4 * D + A]
        gate = jax.nn.sigmoid(hproj[:, 4 * D + A:])      # sigmoid(f_beta(h)), (B, E)

        # ---- Attention (att1 hoisted) ----
        att = jnp.maximum(att1 + att2[:, None, :], 0.0)                 # relu, (B, P, A)
        scores = jnp.sum(att * w_fa_b, axis=2) + b_fa                   # (B, P)
        scores = scores - jnp.max(scores, axis=1, keepdims=True)
        ex = jnp.exp(scores)
        # exact reciprocal (approx=True would move it to the EUP but loosen accuracy)
        alpha = ex * pl.reciprocal(jnp.sum(ex, axis=1, keepdims=True), approx=False)

        awe = gate * jnp.sum(enc * alpha[:, :, None], axis=1)           # gated awe, (B, E)

        # ---- LSTMCell: concat([emb, awe]) avoided via column-split weight_ih ----
        emb_t = emb_ref[t]                               # (B, EM)
        gates = (jnp.dot(emb_t, w_lxe.T, preferred_element_type=jnp.float32)
                 + jnp.dot(awe, w_lxa.T, preferred_element_type=jnp.float32)
                 + b_lx + gates_h)                       # (B, 4D)
        i_g = jax.nn.sigmoid(gates[:, 0:D])
        f_g = jax.nn.sigmoid(gates[:, D:2 * D])
        g_g = jnp.tanh(gates[:, 2 * D:3 * D])
        o_g = jax.nn.sigmoid(gates[:, 3 * D:4 * D])
        c_new = f_g * c + i_g * g_g
        h_new = o_g * jnp.tanh(c_new)

        # ---- fc(dropout(h)) ----
        # TODO(synk): nn.Dropout treated as identity (eval-mode); train-mode RNG dropout not replicated.
        preds = jnp.dot(h_new, w_fc.T, preferred_element_type=jnp.float32) + b_fc   # (B, Vp)

        # Rows past their decode length keep old h/c and write zeros (lengths sorted descending,
        # so inactive rows never reactivate — matches the PyTorch batch_size_t slicing).
        h_scr[...] = jnp.where(active, h_new, h)
        c_scr[...] = jnp.where(active, c_new, c)
        pred_ref[t] = jnp.where(active, preds, 0.0)
        alpha_ref[t] = jnp.where(active, alpha, 0.0)


# ---------------------------------------------------------------------------
# Wrapper: sort by caption length, embedding gather, weight packing, layout.
# Fully jittable (no data-dependent shapes / host syncs).
# ---------------------------------------------------------------------------
def decoder_forward(params, encoder_out, encoded_captions, caption_lengths):
    B_ = encoder_out.shape[0]
    E = encoder_out.shape[-1]
    enc = encoder_out.reshape(B_, -1, E)                          # (B, P, E)
    P_ = enc.shape[1]
    V = params['w_fc'].shape[0]
    D = params['w_lhh'].shape[1]
    EM = params['embedding'].shape[1]
    L = encoded_captions.shape[1]
    T = L - 1                          # static decode-step bound; masking covers shorter captions
    Vp = ((V + LANE - 1) // LANE) * LANE

    cap_len = caption_lengths[:, 0]
    sort_ind = jnp.argsort(-cap_len)                              # descending sort
    cap_len_sorted = cap_len[sort_ind]
    enc = enc[sort_ind]
    encoded_captions = encoded_captions[sort_ind]
    decode_lengths = (cap_len_sorted - 1).astype(jnp.int32)

    embeddings = params['embedding'][encoded_captions]            # (B, L, EM)
    emb_tm = jnp.transpose(embeddings[:, :T, :], (1, 0, 2))       # (T, B, EM) time-major
    lengths2d = decode_lengths[:, None]                           # (B, 1)

    # ---- wrapper-side weight packing (fusion / concat elimination / lane padding) ----
    w_init = jnp.concatenate([params['w_inith'], params['w_initc']], axis=0)        # (2D, E)
    b_init = jnp.concatenate([params['b_inith'], params['b_initc']], axis=1)        # (1, 2D)
    w_h = jnp.concatenate([params['w_lhh'], params['w_da'], params['w_fb']], axis=0)  # (4D+A+E, D)
    b_h = jnp.concatenate([params['b_lhh'], params['b_da'], params['b_fb']], axis=1)  # (1, 4D+A+E)
    w_lxe = params['w_lih'][:, :EM]                               # (4D, EM)
    w_lxa = params['w_lih'][:, EM:]                               # (4D, E)
    w_fc_p = jnp.zeros((Vp, D), jnp.float32).at[:V].set(params['w_fc'])
    b_fc_p = jnp.zeros((1, Vp), jnp.float32).at[:, :V].set(params['b_fc'])

    preds_tm, alphas_tm = pl.pallas_call(
        decoder_kernel,
        out_shape=[
            jax.ShapeDtypeStruct((T, B_, Vp), jnp.float32),
            jax.ShapeDtypeStruct((T, B_, P_), jnp.float32),
        ],
        scratch_shapes=[pltpu.VMEM((B_, D), jnp.float32),
                        pltpu.VMEM((B_, D), jnp.float32)],
    )(lengths2d, enc, emb_tm,
      params['w_ea'], params['b_ea'],
      params['w_fa'], params['b_fa'],
      w_init, b_init, w_h, b_h,
      w_lxe, w_lxa, params['b_lih'],
      w_fc_p, b_fc_p)

    # Outputs are padded along time to T = L-1 (steps past every caption's decode length are zero)
    # and along vocab to Vp; slice vocab back, keep (B, T, ...) like the PyTorch module.
    predictions = jnp.transpose(preds_tm, (1, 0, 2))[:, :, :V]    # (B, T, V)
    alphas = jnp.transpose(alphas_tm, (1, 0, 2))                  # (B, T, P)
    return predictions, encoded_captions, decode_lengths, alphas, sort_ind


# ---------------------------------------------------------------------------
# Deterministic parameter init (synthetic; shapes follow the module __init__)
# ---------------------------------------------------------------------------
def init_params(key):
    A, E, D, V, EM = ATTENTION_DIM, ENCODER_DIM, DECODER_DIM, VOCAB_SIZE, EMBED_DIM
    ks = jax.random.split(key, 20)

    def u(k, shape, scale=0.1):
        return jax.random.uniform(k, shape, jnp.float32, -scale, scale)

    p = {}
    p['embedding'] = u(ks[0], (V, EM))                 # uniform(-0.1, 0.1) per init_weights
    p['w_ea'] = u(ks[1], (A, E));  p['b_ea'] = u(ks[2], (1, A))
    p['w_da'] = u(ks[3], (A, D));  p['b_da'] = u(ks[4], (1, A))
    p['w_fa'] = u(ks[5], (1, A));  p['b_fa'] = u(ks[6], (1, 1))
    p['w_inith'] = u(ks[7], (D, E));  p['b_inith'] = u(ks[8], (1, D))
    p['w_initc'] = u(ks[9], (D, E));  p['b_initc'] = u(ks[10], (1, D))
    p['w_fb'] = u(ks[11], (E, D));    p['b_fb'] = u(ks[12], (1, E))
    p['w_lih'] = u(ks[13], (4 * D, EM + E)); p['b_lih'] = u(ks[14], (1, 4 * D))
    p['w_lhh'] = u(ks[15], (4 * D, D));      p['b_lhh'] = u(ks[16], (1, 4 * D))
    p['w_fc'] = u(ks[17], (V, D))                      # uniform(-0.1, 0.1)
    p['b_fc'] = jnp.zeros((1, V), jnp.float32)         # fc bias filled with 0
    return p


# ---------------------------------------------------------------------------
# Pure numpy reference mirroring the PyTorch forward (for verification)
# ---------------------------------------------------------------------------
def reference_forward(params, encoder_out, encoded_captions, caption_lengths):
    p = {k: np.asarray(v) for k, v in params.items()}
    enc = np.asarray(encoder_out, np.float32)
    B_ = enc.shape[0]
    E = enc.shape[-1]
    enc = enc.reshape(B_, -1, E)
    P_ = enc.shape[1]
    cap_len = np.asarray(caption_lengths)[:, 0]
    sort_ind = np.argsort(-cap_len)
    cap_len = cap_len[sort_ind]
    enc = enc[sort_ind]
    caps = np.asarray(encoded_captions)[sort_ind]
    embeddings = p['embedding'][caps]
    decode_lengths = (cap_len - 1).tolist()
    T = max(decode_lengths)
    D = p['w_lhh'].shape[1]
    V = p['w_fc'].shape[0]

    def sig(x): return 1.0 / (1.0 + np.exp(-x))

    mean_enc = enc.mean(axis=1)
    h = mean_enc @ p['w_inith'].T + p['b_inith']
    c = mean_enc @ p['w_initc'].T + p['b_initc']
    preds_out = np.zeros((B_, T, V), np.float32)
    alphas_out = np.zeros((B_, T, P_), np.float32)
    for t in range(T):
        bt = sum(l > t for l in decode_lengths)
        e_bt, h_bt, c_bt = enc[:bt], h[:bt], c[:bt]
        att1 = e_bt @ p['w_ea'].T + p['b_ea']
        att2 = h_bt @ p['w_da'].T + p['b_da']
        att = np.maximum(att1 + att2[:, None, :], 0.0)
        scores = np.sum(att * p['w_fa'][None, :, :], axis=2) + p['b_fa']
        scores = scores - scores.max(axis=1, keepdims=True)
        ex = np.exp(scores)
        alpha = ex / ex.sum(axis=1, keepdims=True)
        awe = (e_bt * alpha[:, :, None]).sum(axis=1)
        gate = sig(h_bt @ p['w_fb'].T + p['b_fb'])
        awe = gate * awe
        x = np.concatenate([embeddings[:bt, t, :], awe], axis=1)
        gates = x @ p['w_lih'].T + p['b_lih'] + h_bt @ p['w_lhh'].T + p['b_lhh']
        i_g, f_g = sig(gates[:, :D]), sig(gates[:, D:2 * D])
        g_g, o_g = np.tanh(gates[:, 2 * D:3 * D]), sig(gates[:, 3 * D:4 * D])
        c_new = f_g * c_bt + i_g * g_g
        h_new = o_g * np.tanh(c_new)
        preds = h_new @ p['w_fc'].T + p['b_fc']
        preds_out[:bt, t, :] = preds
        alphas_out[:bt, t, :] = alpha
        h, c = h_new, c_new
    return preds_out, alphas_out


if __name__ == "__main__":
    key = jax.random.PRNGKey(0)
    pkey, dkey = jax.random.split(key)
    params = init_params(pkey)

    enc_key, cap_key = jax.random.split(dkey)
    encoder_out = jax.random.normal(enc_key, (B, ENC_IMG, ENC_IMG, ENCODER_DIM), jnp.float32)
    encoded_captions = jax.random.randint(cap_key, (B, MAX_CAP_LEN), 0, VOCAB_SIZE, jnp.int32)
    caption_lengths = jnp.array([[5], [7]], dtype=jnp.int32)   # unequal lengths -> exercises masking

    fwd = jax.jit(decoder_forward)   # no host sync / data-dependent shapes -> end-to-end jittable
    predictions, sorted_caps, decode_lengths, alphas, sort_ind = fwd(
        params, encoder_out, encoded_captions, caption_lengths)
    jax.block_until_ready((predictions, alphas, sorted_caps, decode_lengths, sort_ind))

    ref_preds, ref_alphas = reference_forward(params, encoder_out, encoded_captions, caption_lengths)
    T_act = ref_preds.shape[1]       # actual max(decode_lengths); kernel output is padded to L-1
    np.testing.assert_allclose(np.asarray(predictions)[:, :T_act], ref_preds, rtol=2e-4, atol=2e-4)
    np.testing.assert_allclose(np.asarray(alphas)[:, :T_act], ref_alphas, rtol=2e-4, atol=2e-4)
    # steps beyond every caption's decode length are fully masked to zero
    assert not np.any(np.asarray(predictions)[:, T_act:])
    assert not np.any(np.asarray(alphas)[:, T_act:])

    print("KERNEL_OK")
</pallas_src>

<mosaic_0001>
module attributes {stable_mosaic.version = 11 : i64} {
  func.func @decoder_kernel(%arg0: memref<2x1xi32, #tpu.memory_space<vmem>>, %arg1: memref<2x16x32xf32, #tpu.memory_space<vmem>>, %arg2: memref<7x2x16xf32, #tpu.memory_space<vmem>>, %arg3: memref<32x32xf32, #tpu.memory_space<vmem>>, %arg4: memref<1x32xf32, #tpu.memory_space<vmem>>, %arg5: memref<1x32xf32, #tpu.memory_space<vmem>>, %arg6: memref<1x1xf32, #tpu.memory_space<vmem>>, %arg7: memref<64x32xf32, #tpu.memory_space<vmem>>, %arg8: memref<1x64xf32, #tpu.memory_space<vmem>>, %arg9: memref<192x32xf32, #tpu.memory_space<vmem>>, %arg10: memref<1x192xf32, #tpu.memory_space<vmem>>, %arg11: memref<128x16xf32, #tpu.memory_space<vmem>>, %arg12: memref<128x32xf32, #tpu.memory_space<vmem>>, %arg13: memref<1x128xf32, #tpu.memory_space<vmem>>, %arg14: memref<128x32xf32, #tpu.memory_space<vmem>>, %arg15: memref<1x128xf32, #tpu.memory_space<vmem>>, %arg16: memref<7x2x128xf32, #tpu.memory_space<vmem>>, %arg17: memref<7x2x16xf32, #tpu.memory_space<vmem>>, %arg18: memref<2x32xf32, #tpu.memory_space<vmem>>, %arg19: memref<2x32xf32, #tpu.memory_space<vmem>>) attributes {dimension_semantics = [], scalar_prefetch = 0 : i64, scratch_operands = 2 : i64, tpu.core_type = #tpu.core_type<tc>} {
    %c0 = arith.constant 0 : index
    %c0_0 = arith.constant 0 : index
    %c0_1 = arith.constant 0 : index
    %0 = vector.load %arg1[%c0, %c0_0, %c0_1] : memref<2x16x32xf32, #tpu.memory_space<vmem>>, vector<2x16x32xf32>
    %1 = vector.shape_cast %0 : vector<2x16x32xf32> to vector<32x32xf32>
    %c0_2 = arith.constant 0 : index
    %c0_3 = arith.constant 0 : index
    %2 = vector.load %arg3[%c0_2, %c0_3] : memref<32x32xf32, #tpu.memory_space<vmem>>, vector<32x32xf32>
    %3 = tpu.transpose %2, [1, 0] : vector<32x32xf32> -> vector<32x32xf32>
    %cst = arith.constant dense<0.000000e+00> : vector<32x32xf32>
    %4 = tpu.matmul %1, %3, %cst {dimension_numbers = #tpu.dot_dimension_numbers<[1], [0], [0], [1], [0, 0, 1, 1], [], []>} : vector<32x32xf32>, vector<32x32xf32>, vector<32x32xf32> -> vector<32x32xf32>
    %c0_4 = arith.constant 0 : index
    %c0_5 = arith.constant 0 : index
    %5 = vector.load %arg4[%c0_4, %c0_5] : memref<1x32xf32, #tpu.memory_space<vmem>>, vector<1x32xf32>
    %6 = vector.broadcast %5 : vector<1x32xf32> to vector<32x32xf32>
    %7 = arith.addf %4, %6 : vector<32x32xf32>
    %8 = vector.shape_cast %7 : vector<32x32xf32> to vector<2x16x32xf32>
    %cst_6 = arith.constant dense<0.000000e+00> : vector<2x32xf32>
    %9 = vector.multi_reduction <add>, %0, %cst_6 [1] : vector<2x16x32xf32> to vector<2x32xf32>
    %cst_7 = arith.constant 1.600000e+01 : f32
    %10 = vector.broadcast %cst_7 : f32 to vector<2x32xf32>
    %11 = arith.divf %9, %10 : vector<2x32xf32>
    %c0_8 = arith.constant 0 : index
    %c0_9 = arith.constant 0 : index
    %12 = vector.load %arg7[%c0_8, %c0_9] : memref<64x32xf32, #tpu.memory_space<vmem>>, vector<64x32xf32>
    %13 = tpu.transpose %12, [1, 0] : vector<64x32xf32> -> vector<32x64xf32>
    %cst_10 = arith.constant dense<0.000000e+00> : vector<2x64xf32>
    %14 = tpu.matmul %11, %13, %cst_10 {dimension_numbers = #tpu.dot_dimension_numbers<[1], [0], [0], [1], [0, 0, 1, 1], [], []>} : vector<2x32xf32>, vector<32x64xf32>, vector<2x64xf32> -> vector<2x64xf32>
    %c0_11 = arith.constant 0 : index
    %c0_12 = arith.constant 0 : index
    %15 = vector.load %arg8[%c0_11, %c0_12] : memref<1x64xf32, #tpu.memory_space<vmem>>, vector<1x64xf32>
    %16 = vector.broadcast %15 : vector<1x64xf32> to vector<2x64xf32>
    %17 = arith.addf %14, %16 : vector<2x64xf32>
    %18 = vector.extract_strided_slice %17 {offsets = [0, 0], sizes = [2, 32], strides = [1, 1]} : vector<2x64xf32> to vector<2x32xf32>
    %c0_13 = arith.constant 0 : index
    %c0_14 = arith.constant 0 : index
    %19 = vector.load %arg18[%c0_13, %c0_14] : memref<2x32xf32, #tpu.memory_space<vmem>>, vector<2x32xf32>
    tpu.vector_store %arg18[%c0_13, %c0_14], %18 {strides = array<i32>} : memref<2x32xf32, #tpu.memory_space<vmem>>, vector<2x32xf32>,
    %20 = vector.extract_strided_slice %17 {offsets = [0, 32], sizes = [2, 32], strides = [1, 1]} : vector<2x64xf32> to vector<2x32xf32>
    %c0_15 = arith.constant 0 : index
    %c0_16 = arith.constant 0 : index
    %21 = vector.load %arg19[%c0_15, %c0_16] : memref<2x32xf32, #tpu.memory_space<vmem>>, vector<2x32xf32>
    tpu.vector_store %arg19[%c0_15, %c0_16], %20 {strides = array<i32>} : memref<2x32xf32, #tpu.memory_space<vmem>>, vector<2x32xf32>,
    %c0_17 = arith.constant 0 : index
    %c0_18 = arith.constant 0 : index
    %22 = vector.load %arg0[%c0_17, %c0_18] : memref<2x1xi32, #tpu.memory_space<vmem>>, vector<2x1xi32>
    %c0_19 = arith.constant 0 : index
    %c0_20 = arith.constant 0 : index
    %23 = vector.load %arg5[%c0_19, %c0_20] : memref<1x32xf32, #tpu.memory_space<vmem>>, vector<1x32xf32>
    %24 = vector.shape_cast %23 : vector<1x32xf32> to vector<1x1x32xf32>
    %25 = vector.shape_cast %24 : vector<1x1x32xf32> to vector<1x1x32xf32>
    %26 = vector.broadcast %25 : vector<1x1x32xf32> to vector<2x16x32xf32>
    %c0_21 = arith.constant 0 : index
    %c0_22 = arith.constant 0 : index
    %27 = vector.load %arg6[%c0_21, %c0_22] : memref<1x1xf32, #tpu.memory_space<vmem>>, vector<1x1xf32>
    %c0_23 = arith.constant 0 : index
    %c0_24 = arith.constant 0 : index
    %28 = vector.load %arg9[%c0_23, %c0_24] : memref<192x32xf32, #tpu.memory_space<vmem>>, vector<192x32xf32>
    %c0_25 = arith.constant 0 : index
    %c0_26 = arith.constant 0 : index
    %29 = vector.load %arg10[%c0_25, %c0_26] : memref<1x192xf32, #tpu.memory_space<vmem>>, vector<1x192xf32>
    %c0_27 = arith.constant 0 : index
    %c0_28 = arith.constant 0 : index
    %30 = vector.load %arg11[%c0_27, %c0_28] : memref<128x16xf32, #tpu.memory_space<vmem>>, vector<128x16xf32>
    %c0_29 = arith.constant 0 : index
    %c0_30 = arith.constant 0 : index
    %31 = vector.load %arg12[%c0_29, %c0_30] : memref<128x32xf32, #tpu.memory_space<vmem>>, vector<128x32xf32>
    %c0_31 = arith.constant 0 : index
    %c0_32 = arith.constant 0 : index
    %32 = vector.load %arg13[%c0_31, %c0_32] : memref<1x128xf32, #tpu.memory_space<vmem>>, vector<1x128xf32>
    %c0_33 = arith.constant 0 : index
    %c0_34 = arith.constant 0 : index
    %33 = vector.load %arg14[%c0_33, %c0_34] : memref<128x32xf32, #tpu.memory_space<vmem>>, vector<128x32xf32>
    %c0_35 = arith.constant 0 : index
    %c0_36 = arith.constant 0 : index
    %34 = vector.load %arg15[%c0_35, %c0_36] : memref<1x128xf32, #tpu.memory_space<vmem>>, vector<1x128xf32>
    %c0_i32 = arith.constant 0 : i32
    %c1_i32 = arith.constant 1 : i32
    %35 = arith.muli %c0_i32, %c1_i32 : i32
    %c0_i32_37 = arith.constant 0 : i32
    %36 = arith.addi %c0_i32_37, %35 : i32
    %c0_38 = arith.constant 0 : index
    %c0_39 = arith.constant 0 : index
    %37 = vector.load %arg18[%c0_38, %c0_39] : memref<2x32xf32, #tpu.memory_space<vmem>>, vector<2x32xf32>
    %c0_40 = arith.constant 0 : index
    %c0_41 = arith.constant 0 : index
    %38 = vector.load %arg19[%c0_40, %c0_41] : memref<2x32xf32, #tpu.memory_space<vmem>>, vector<2x32xf32>
    %39 = vector.broadcast %36 : i32 to vector<2x1xi32>
    %40 = arith.cmpi sgt, %22, %39 : vector<2x1xi32>
    %41 = tpu.transpose %28, [1, 0] : vector<192x32xf32> -> vector<32x192xf32>
    %cst_42 = arith.constant dense<0.000000e+00> : vector<2x192xf32>
    %42 = tpu.matmul %37, %41, %cst_42 {dimension_numbers = #tpu.dot_dimension_numbers<[1], [0], [0], [1], [0, 0, 1, 1], [], []>} : vector<2x32xf32>, vector<32x192xf32>, vector<2x192xf32> -> vector<2x192xf32>
    %43 = vector.broadcast %29 : vector<1x192xf32> to vector<2x192xf32>
    %44 = arith.addf %42, %43 : vector<2x192xf32>
    %45 = vector.extract_strided_slice %44 {offsets = [0, 0], sizes = [2, 128], strides = [1, 1]} : vector<2x192xf32> to vector<2x128xf32>
    %46 = vector.extract_strided_slice %44 {offsets = [0, 128], sizes = [2, 32], strides = [1, 1]} : vector<2x192xf32> to vector<2x32xf32>
    %47 = vector.extract_strided_slice %44 {offsets = [0, 160], sizes = [2, 32], strides = [1, 1]} : vector<2x192xf32> to vector<2x32xf32>
    %48 = arith.negf %47 : vector<2x32xf32>
    %49 = math.exp %48 : vector<2x32xf32>
    %cst_43 = arith.constant 1.000000e+00 : f32
    %50 = vector.broadcast %cst_43 : f32 to vector<2x32xf32>
    %51 = arith.addf %50, %49 : vector<2x32xf32>
    %52 = arith.divf %50, %51 : vector<2x32xf32>
    %53 = vector.shape_cast %46 : vector<2x32xf32> to vector<2x1x32xf32>
    %54 = vector.broadcast %53 : vector<2x1x32xf32> to vector<2x16x32xf32>
    %55 = arith.addf %8, %54 : vector<2x16x32xf32>
    %cst_44 = arith.constant 0.000000e+00 : f32
    %56 = vector.broadcast %cst_44 : f32 to vector<2x16x32xf32>
    %57 = arith.maximumf %55, %56 : vector<2x16x32xf32>
    %58 = arith.mulf %57, %26 : vector<2x16x32xf32>
    %cst_45 = arith.constant dense<0.000000e+00> : vector<2x16xf32>
    %59 = vector.multi_reduction <add>, %58, %cst_45 [2] : vector<2x16x32xf32> to vector<2x16xf32>
    %60 = vector.broadcast %27 : vector<1x1xf32> to vector<2x16xf32>
    %61 = arith.addf %59, %60 : vector<2x16xf32>
    %cst_46 = arith.constant dense<0xFF800000> : vector<2xf32>
    %62 = vector.multi_reduction <maximumf>, %61, %cst_46 [1] : vector<2x16xf32> to vector<2xf32>
    %63 = vector.shape_cast %62 : vector<2xf32> to vector<2x1xf32>
    %64 = vector.broadcast %63 : vector<2x1xf32> to vector<2x16xf32>
    %65 = arith.subf %61, %64 : vector<2x16xf32>
    %66 = math.exp %65 : vector<2x16xf32>
    %cst_47 = arith.constant dense<0.000000e+00> : vector<2xf32>
    %67 = vector.multi_reduction <add>, %66, %cst_47 [1] : vector<2x16xf32> to vector<2xf32>
    %68 = vector.shape_cast %67 : vector<2xf32> to vector<2x1xf32>
    %69 = tpu.reciprocal %68 : vector<2x1xf32> -> vector<2x1xf32>
    %70 = vector.broadcast %69 : vector<2x1xf32> to vector<2x16xf32>
    %71 = arith.mulf %66, %70 : vector<2x16xf32>
    %72 = vector.shape_cast %71 : vector<2x16xf32> to vector<2x16x1xf32>
    %73 = vector.broadcast %72 : vector<2x16x1xf32> to vector<2x16x32xf32>
    %74 = arith.mulf %0, %73 : vector<2x16x32xf32>
    %cst_48 = arith.constant dense<0.000000e+00> : vector<2x32xf32>
    %75 = vector.multi_reduction <add>, %74, %cst_48 [1] : vector<2x16x32xf32> to vector<2x32xf32>
    %76 = arith.mulf %52, %75 : vector<2x32xf32>
    %77 = arith.index_cast %36 : i32 to index
    %c0_49 = arith.constant 0 : index
    %c0_50 = arith.constant 0 : index
    %78 = vector.load %arg2[%77, %c0_49, %c0_50] : memref<7x2x16xf32, #tpu.memory_space<vmem>>, vector<1x2x16xf32>
    %79 = vector.shape_cast %78 : vector<1x2x16xf32> to vector<2x16xf32>
    %80 = tpu.transpose %30, [1, 0] : vector<128x16xf32> -> vector<16x128xf32>
    %cst_51 = arith.constant dense<0.000000e+00> : vector<2x128xf32>
    %81 = tpu.matmul %79, %80, %cst_51 {dimension_numbers = #tpu.dot_dimension_numbers<[1], [0], [0], [1], [0, 0, 1, 1], [], []>} : vector<2x16xf32>, vector<16x128xf32>, vector<2x128xf32> -> vector<2x128xf32>
    %82 = tpu.transpose %31, [1, 0] : vector<128x32xf32> -> vector<32x128xf32>
    %cst_52 = arith.constant dense<0.000000e+00> : vector<2x128xf32>
    %83 = tpu.matmul %76, %82, %cst_52 {dimension_numbers = #tpu.dot_dimension_numbers<[1], [0], [0], [1], [0, 0, 1, 1], [], []>} : vector<2x32xf32>, vector<32x128xf32>, vector<2x128xf32> -> vector<2x128xf32>
    %84 = arith.addf %81, %83 : vector<2x128xf32>
    %85 = vector.broadcast %32 : vector<1x128xf32> to vector<2x128xf32>
    %86 = arith.addf %84, %85 : vector<2x128xf32>
    %87 = arith.addf %86, %45 : vector<2x128xf32>
    %88 = vector.extract_strided_slice %87 {offsets = [0, 0], sizes = [2, 32], strides = [1, 1]} : vector<2x128xf32> to vector<2x32xf32>
    %89 = arith.negf %88 : vector<2x32xf32>
    %90 = math.exp %89 : vector<2x32xf32>
    %cst_53 = arith.constant 1.000000e+00 : f32
    %91 = vector.broadcast %cst_53 : f32 to vector<2x32xf32>
    %92 = arith.addf %91, %90 : vector<2x32xf32>
    %93 = arith.divf %91, %92 : vector<2x32xf32>
    %94 = vector.extract_strided_slice %87 {offsets = [0, 32], sizes = [2, 32], strides = [1, 1]} : vector<2x128xf32> to vector<2x32xf32>
    %95 = arith.negf %94 : vector<2x32xf32>
    %96 = math.exp %95 : vector<2x32xf32>
    %cst_54 = arith.constant 1.000000e+00 : f32
    %97 = vector.broadcast %cst_54 : f32 to vector<2x32xf32>
    %98 = arith.addf %97, %96 : vector<2x32xf32>
    %99 = arith.divf %97, %98 : vector<2x32xf32>
    %100 = vector.extract_strided_slice %87 {offsets = [0, 64], sizes = [2, 32], strides = [1, 1]} : vector<2x128xf32> to vector<2x32xf32>
    %101 = math.tanh %100 : vector<2x32xf32>
    %102 = vector.extract_strided_slice %87 {offsets = [0, 96], sizes = [2, 32], strides = [1, 1]} : vector<2x128xf32> to vector<2x32xf32>
    %103 = arith.negf %102 : vector<2x32xf32>
    %104 = math.exp %103 : vector<2x32xf32>
    %cst_55 = arith.constant 1.000000e+00 : f32
    %105 = vector.broadcast %cst_55 : f32 to vector<2x32xf32>
    %106 = arith.addf %105, %104 : vector<2x32xf32>
    %107 = arith.divf %105, %106 : vector<2x32xf32>
    %108 = arith.mulf %99, %38 : vector<2x32xf32>
    %109 = arith.mulf %93, %101 : vector<2x32xf32>
    %110 = arith.addf %108, %109 : vector<2x32xf32>
    %111 = math.tanh %110 : vector<2x32xf32>
    %112 = arith.mulf %107, %111 : vector<2x32xf32>
    %113 = tpu.transpose %33, [1, 0] : vector<128x32xf32> -> vector<32x128xf32>
    %cst_56 = arith.constant dense<0.000000e+00> : vector<2x128xf32>
    %114 = tpu.matmul %112, %113, %cst_56 {dimension_numbers = #tpu.dot_dimension_numbers<[1], [0], [0], [1], [0, 0, 1, 1], [], []>} : vector<2x32xf32>, vector<32x128xf32>, vector<2x128xf32> -> vector<2x128xf32>
    %115 = vector.broadcast %34 : vector<1x128xf32> to vector<2x128xf32>
    %116 = arith.addf %114, %115 : vector<2x128xf32>
    %117 = vector.shape_cast %40 : vector<2x1xi1> to vector<2x1xi1>
    %118 = vector.broadcast %117 : vector<2x1xi1> to vector<2x32xi1>
    %119 = arith.select %118, %112, %37 : vector<2x32xi1>, vector<2x32xf32>
    %c0_57 = arith.constant 0 : index
    %c0_58 = arith.constant 0 : index
    %120 = vector.load %arg18[%c0_57, %c0_58] : memref<2x32xf32, #tpu.memory_space<vmem>>, vector<2x32xf32>
    tpu.vector_store %arg18[%c0_57, %c0_58], %119 {strides = array<i32>} : memref<2x32xf32, #tpu.memory_space<vmem>>, vector<2x32xf32>,
    %121 = vector.shape_cast %40 : vector<2x1xi1> to vector<2x1xi1>
    %122 = vector.broadcast %121 : vector<2x1xi1> to vector<2x32xi1>
    %123 = arith.select %122, %110, %38 : vector<2x32xi1>, vector<2x32xf32>
    %c0_59 = arith.constant 0 : index
    %c0_60 = arith.constant 0 : index
    %124 = vector.load %arg19[%c0_59, %c0_60] : memref<2x32xf32, #tpu.memory_space<vmem>>, vector<2x32xf32>
    tpu.vector_store %arg19[%c0_59, %c0_60], %123 {strides = array<i32>} : memref<2x32xf32, #tpu.memory_space<vmem>>, vector<2x32xf32>,
    %cst_61 = arith.constant 0.000000e+00 : f32
    %125 = vector.shape_cast %40 : vector<2x1xi1> to vector<2x1xi1>
    %126 = vector.broadcast %125 : vector<2x1xi1> to vector<2x128xi1>
    %127 = vector.broadcast %cst_61 : f32 to vector<2x128xf32>
    %128 = arith.select %126, %116, %127 : vector<2x128xi1>, vector<2x128xf32>
    %129 = arith.index_cast %36 : i32 to index
    %c0_62 = arith.constant 0 : index
    %c0_63 = arith.constant 0 : index
    %130 = vector.load %arg16[%129, %c0_62, %c0_63] : memref<7x2x128xf32, #tpu.memory_space<vmem>>, vector<1x2x128xf32>
    %131 = vector.shape_cast %130 : vector<1x2x128xf32> to vector<2x128xf32>
    %132 = vector.shape_cast %128 : vector<2x128xf32> to vector<1x2x128xf32>
    tpu.vector_store %arg16[%129, %c0_62, %c0_63], %132 {strides = array<i32>} : memref<7x2x128xf32, #tpu.memory_space<vmem>>, vector<1x2x128xf32>,
    %cst_64 = arith.constant 0.000000e+00 : f32
    %133 = vector.shape_cast %40 : vector<2x1xi1> to vector<2x1xi1>
    %134 = vector.broadcast %133 : vector<2x1xi1> to vector<2x16xi1>
    %135 = vector.broadcast %cst_64 : f32 to vector<2x16xf32>
    %136 = arith.select %134, %71, %135 : vector<2x16xi1>, vector<2x16xf32>
    %137 = arith.index_cast %36 : i32 to index
    %c0_65 = arith.constant 0 : index
    %c0_66 = arith.constant 0 : index
    %138 = vector.load %arg17[%137, %c0_65, %c0_66] : memref<7x2x16xf32, #tpu.memory_space<vmem>>, vector<1x2x16xf32>
    %139 = vector.shape_cast %138 : vector<1x2x16xf32> to vector<2x16xf32>
    %140 = vector.shape_cast %136 : vector<2x16xf32> to vector<1x2x16xf32>
    tpu.vector_store %arg17[%137, %c0_65, %c0_66], %140 {strides = array<i32>} : memref<7x2x16xf32, #tpu.memory_space<vmem>>, vector<1x2x16xf32>,
    %c1_i32_67 = arith.constant 1 : i32
    %c1_i32_68 = arith.constant 1 : i32
    %141 = arith.muli %c1_i32_67, %c1_i32_68 : i32
    %c0_i32_69 = arith.constant 0 : i32
    %142 = arith.addi %c0_i32_69, %141 : i32
    %c0_70 = arith.constant 0 : index
    %c0_71 = arith.constant 0 : index
    %143 = vector.load %arg18[%c0_70, %c0_71] : memref<2x32xf32, #tpu.memory_space<vmem>>, vector<2x32xf32>
    %c0_72 = arith.constant 0 : index
    %c0_73 = arith.constant 0 : index
    %144 = vector.load %arg19[%c0_72, %c0_73] : memref<2x32xf32, #tpu.memory_space<vmem>>, vector<2x32xf32>
    %145 = vector.broadcast %142 : i32 to vector<2x1xi32>
    %146 = arith.cmpi sgt, %22, %145 : vector<2x1xi32>
    %147 = tpu.transpose %28, [1, 0] : vector<192x32xf32> -> vector<32x192xf32>
    %cst_74 = arith.constant dense<0.000000e+00> : vector<2x192xf32>
    %148 = tpu.matmul %143, %147, %cst_74 {dimension_numbers = #tpu.dot_dimension_numbers<[1], [0], [0], [1], [0, 0, 1, 1], [], []>} : vector<2x32xf32>, vector<32x192xf32>, vector<2x192xf32> -> vector<2x192xf32>
    %149 = vector.broadcast %29 : vector<1x192xf32> to vector<2x192xf32>
    %150 = arith.addf %148, %149 : vector<2x192xf32>
    %151 = vector.extract_strided_slice %150 {offsets = [0, 0], sizes = [2, 128], strides = [1, 1]} : vector<2x192xf32> to vector<2x128xf32>
    %152 = vector.extract_strided_slice %150 {offsets = [0, 128], sizes = [2, 32], strides = [1, 1]} : vector<2x192xf32> to vector<2x32xf32>
    %153 = vector.extract_strided_slice %150 {offsets = [0, 160], sizes = [2, 32], strides = [1, 1]} : vector<2x192xf32> to vector<2x32xf32>
    %154 = arith.negf %153 : vector<2x32xf32>
    %155 = math.exp %154 : vector<2x32xf32>
    %cst_75 = arith.constant 1.000000e+00 : f32
    %156 = vector.broadcast %cst_75 : f32 to vector<2x32xf32>
    %157 = arith.addf %156, %155 : vector<2x32xf32>
    %158 = arith.divf %156, %157 : vector<2x32xf32>
    %159 = vector.shape_cast %152 : vector<2x32xf32> to vector<2x1x32xf32>
    %160 = vector.broadcast %159 : vector<2x1x32xf32> to vector<2x16x32xf32>
    %161 = arith.addf %8, %160 : vector<2x16x32xf32>
    %cst_76 = arith.constant 0.000000e+00 : f32
    %162 = vector.broadcast %cst_76 : f32 to vector<2x16x32xf32>
    %163 = arith.maximumf %161, %162 : vector<2x16x32xf32>
    %164 = arith.mulf %163, %26 : vector<2x16x32xf32>
    %cst_77 = arith.constant dense<0.000000e+00> : vector<2x16xf32>
    %165 = vector.multi_reduction <add>, %164, %cst_77 [2] : vector<2x16x32xf32> to vector<2x16xf32>
    %166 = vector.broadcast %27 : vector<1x1xf32> to vector<2x16xf32>
    %167 = arith.addf %165, %166 : vector<2x16xf32>
    %cst_78 = arith.constant dense<0xFF800000> : vector<2xf32>
    %168 = vector.multi_reduction <maximumf>, %167, %cst_78 [1] : vector<2x16xf32> to vector<2xf32>
    %169 = vector.shape_cast %168 : vector<2xf32> to vector<2x1xf32>
    %170 = vector.broadcast %169 : vector<2x1xf32> to vector<2x16xf32>
    %171 = arith.subf %167, %170 : vector<2x16xf32>
    %172 = math.exp %171 : vector<2x16xf32>
    %cst_79 = arith.constant dense<0.000000e+00> : vector<2xf32>
    %173 = vector.multi_reduction <add>, %172, %cst_79 [1] : vector<2x16xf32> to vector<2xf32>
    %174 = vector.shape_cast %173 : vector<2xf32> to vector<2x1xf32>
    %175 = tpu.reciprocal %174 : vector<2x1xf32> -> vector<2x1xf32>
    %176 = vector.broadcast %175 : vector<2x1xf32> to vector<2x16xf32>
    %177 = arith.mulf %172, %176 : vector<2x16xf32>
    %178 = vector.shape_cast %177 : vector<2x16xf32> to vector<2x16x1xf32>
    %179 = vector.broadcast %178 : vector<2x16x1xf32> to vector<2x16x32xf32>
    %180 = arith.mulf %0, %179 : vector<2x16x32xf32>
    %cst_80 = arith.constant dense<0.000000e+00> : vector<2x32xf32>
    %181 = vector.multi_reduction <add>, %180, %cst_80 [1] : vector<2x16x32xf32> to vector<2x32xf32>
    %182 = arith.mulf %158, %181 : vector<2x32xf32>
    %183 = arith.index_cast %142 : i32 to index
    %c0_81 = arith.constant 0 : index
    %c0_82 = arith.constant 0 : index
    %184 = vector.load %arg2[%183, %c0_81, %c0_82] : memref<7x2x16xf32, #tpu.memory_space<vmem>>, vector<1x2x16xf32>
    %185 = vector.shape_cast %184 : vector<1x2x16xf32> to vector<2x16xf32>
    %186 = tpu.transpose %30, [1, 0] : vector<128x16xf32> -> vector<16x128xf32>
    %cst_83 = arith.constant dense<0.000000e+00> : vector<2x128xf32>
    %187 = tpu.matmul %185, %186, %cst_83 {dimension_numbers = #tpu.dot_dimension_numbers<[1], [0], [0], [1], [0, 0, 1, 1], [], []>} : vector<2x16xf32>, vector<16x128xf32>, vector<2x128xf32> -> vector<2x128xf32>
    %188 = tpu.transpose %31, [1, 0] : vector<128x32xf32> -> vector<32x128xf32>
    %cst_84 = arith.constant dense<0.000000e+00> : vector<2x128xf32>
    %189 = tpu.matmul %182, %188, %cst_84 {dimension_numbers = #tpu.dot_dimension_numbers<[1], [0], [0], [1], [0, 0, 1, 1], [], []>} : vector<2x32xf32>, vector<32x128xf32>, vector<2x128xf32> -> vector<2x128xf32>
    %190 = arith.addf %187, %189 : vector<2x128xf32>
    %191 = vector.broadcast %32 : vector<1x128xf32> to vector<2x128xf32>
    %192 = arith.addf %190, %191 : vector<2x128xf32>
    %193 = arith.addf %192, %151 : vector<2x128xf32>
    %194 = vector.extract_strided_slice %193 {offsets = [0, 0], sizes = [2, 32], strides = [1, 1]} : vector<2x128xf32> to vector<2x32xf32>
    %195 = arith.negf %194 : vector<2x32xf32>
    %196 = math.exp %195 : vector<2x32xf32>
    %cst_85 = arith.constant 1.000000e+00 : f32
    %197 = vector.broadcast %cst_85 : f32 to vector<2x32xf32>
    %198 = arith.addf %197, %196 : vector<2x32xf32>
    %199 = arith.divf %197, %198 : vector<2x32xf32>
    %200 = vector.extract_strided_slice %193 {offsets = [0, 32], sizes = [2, 32], strides = [1, 1]} : vector<2x128xf32> to vector<2x32xf32>
    %201 = arith.negf %200 : vector<2x32xf32>
    %202 = math.exp %201 : vector<2x32xf32>
    %cst_86 = arith.constant 1.000000e+00 : f32
    %203 = vector.broadcast %cst_86 : f32 to vector<2x32xf32>
    %204 = arith.addf %203, %202 : vector<2x32xf32>
    %205 = arith.divf %203, %204 : vector<2x32xf32>
    %206 = vector.extract_strided_slice %193 {offsets = [0, 64], sizes = [2, 32], strides = [1, 1]} : vector<2x128xf32> to vector<2x32xf32>
    %207 = math.tanh %206 : vector<2x32xf32>
    %208 = vector.extract_strided_slice %193 {offsets = [0, 96], sizes = [2, 32], strides = [1, 1]} : vector<2x128xf32> to vector<2x32xf32>
    %209 = arith.negf %208 : vector<2x32xf32>
    %210 = math.exp %209 : vector<2x32xf32>
    %cst_87 = arith.constant 1.000000e+00 : f32
    %211 = vector.broadcast %cst_87 : f32 to vector<2x32xf32>
    %212 = arith.addf %211, %210 : vector<2x32xf32>
    %213 = arith.divf %211, %212 : vector<2x32xf32>
    %214 = arith.mulf %205, %144 : vector<2x32xf32>
    %215 = arith.mulf %199, %207 : vector<2x32xf32>
    %216 = arith.addf %214, %215 : vector<2x32xf32>
    %217 = math.tanh %216 : vector<2x32xf32>
    %218 = arith.mulf %213, %217 : vector<2x32xf32>
    %219 = tpu.transpose %33, [1, 0] : vector<128x32xf32> -> vector<32x128xf32>
    %cst_88 = arith.constant dense<0.000000e+00> : vector<2x128xf32>
    %220 = tpu.matmul %218, %219, %cst_88 {dimension_numbers = #tpu.dot_dimension_numbers<[1], [0], [0], [1], [0, 0, 1, 1], [], []>} : vector<2x32xf32>, vector<32x128xf32>, vector<2x128xf32> -> vector<2x128xf32>
    %221 = vector.broadcast %34 : vector<1x128xf32> to vector<2x128xf32>
    %222 = arith.addf %220, %221 : vector<2x128xf32>
    %223 = vector.shape_cast %146 : vector<2x1xi1> to vector<2x1xi1>
    %224 = vector.broadcast %223 : vector<2x1xi1> to vector<2x32xi1>
    %225 = arith.select %224, %218, %143 : vector<2x32xi1>, vector<2x32xf32>
    %c0_89 = arith.constant 0 : index
    %c0_90 = arith.constant 0 : index
    %226 = vector.load %arg18[%c0_89, %c0_90] : memref<2x32xf32, #tpu.memory_space<vmem>>, vector<2x32xf32>
    tpu.vector_store %arg18[%c0_89, %c0_90], %225 {strides = array<i32>} : memref<2x32xf32, #tpu.memory_space<vmem>>, vector<2x32xf32>,
    %227 = vector.shape_cast %146 : vector<2x1xi1> to vector<2x1xi1>
    %228 = vector.broadcast %227 : vector<2x1xi1> to vector<2x32xi1>
    %229 = arith.select %228, %216, %144 : vector<2x32xi1>, vector<2x32xf32>
    %c0_91 = arith.constant 0 : index
    %c0_92 = arith.constant 0 : index
    %230 = vector.load %arg19[%c0_91, %c0_92] : memref<2x32xf32, #tpu.memory_space<vmem>>, vector<2x32xf32>
    tpu.vector_store %arg19[%c0_91, %c0_92], %229 {strides = array<i32>} : memref<2x32xf32, #tpu.memory_space<vmem>>, vector<2x32xf32>,
    %cst_93 = arith.constant 0.000000e+00 : f32
    %231 = vector.shape_cast %146 : vector<2x1xi1> to vector<2x1xi1>
    %232 = vector.broadcast %231 : vector<2x1xi1> to vector<2x128xi1>
    %233 = vector.broadcast %cst_93 : f32 to vector<2x128xf32>
    %234 = arith.select %232, %222, %233 : vector<2x128xi1>, vector<2x128xf32>
    %235 = arith.index_cast %142 : i32 to index
    %c0_94 = arith.constant 0 : index
    %c0_95 = arith.constant 0 : index
    %236 = vector.load %arg16[%235, %c0_94, %c0_95] : memref<7x2x128xf32, #tpu.memory_space<vmem>>, vector<1x2x128xf32>
    %237 = vector.shape_cast %236 : vector<1x2x128xf32> to vector<2x128xf32>
    %238 = vector.shape_cast %234 : vector<2x128xf32> to vector<1x2x128xf32>
    tpu.vector_store %arg16[%235, %c0_94, %c0_95], %238 {strides = array<i32>} : memref<7x2x128xf32, #tpu.memory_space<vmem>>, vector<1x2x128xf32>,
    %cst_96 = arith.constant 0.000000e+00 : f32
    %239 = vector.shape_cast %146 : vector<2x1xi1> to vector<2x1xi1>
    %240 = vector.broadcast %239 : vector<2x1xi1> to vector<2x16xi1>
    %241 = vector.broadcast %cst_96 : f32 to vector<2x16xf32>
    %242 = arith.select %240, %177, %241 : vector<2x16xi1>, vector<2x16xf32>
    %243 = arith.index_cast %142 : i32 to index
    %c0_97 = arith.constant 0 : index
    %c0_98 = arith.constant 0 : index
    %244 = vector.load %arg17[%243, %c0_97, %c0_98] : memref<7x2x16xf32, #tpu.memory_space<vmem>>, vector<1x2x16xf32>
    %245 = vector.shape_cast %244 : vector<1x2x16xf32> to vector<2x16xf32>
    %246 = vector.shape_cast %242 : vector<2x16xf32> to vector<1x2x16xf32>
    tpu.vector_store %arg17[%243, %c0_97, %c0_98], %246 {strides = array<i32>} : memref<7x2x16xf32, #tpu.memory_space<vmem>>, vector<1x2x16xf32>,
    %c2_i32 = arith.constant 2 : i32
    %c1_i32_99 = arith.constant 1 : i32
    %247 = arith.muli %c2_i32, %c1_i32_99 : i32
    %c0_i32_100 = arith.constant 0 : i32
    %248 = arith.addi %c0_i32_100, %247 : i32
    %c0_101 = arith.constant 0 : index
    %c0_102 = arith.constant 0 : index
    %249 = vector.load %arg18[%c0_101, %c0_102] : memref<2x32xf32, #tpu.memory_space<vmem>>, vector<2x32xf32>
    %c0_103 = arith.constant 0 : index
    %c0_104 = arith.constant 0 : index
    %250 = vector.load %arg19[%c0_103, %c0_104] : memref<2x32xf32, #tpu.memory_space<vmem>>, vector<2x32xf32>
    %251 = vector.broadcast %248 : i32 to vector<2x1xi32>
    %252 = arith.cmpi sgt, %22, %251 : vector<2x1xi32>
    %253 = tpu.transpose %28, [1, 0] : vector<192x32xf32> -> vector<32x192xf32>
    %cst_105 = arith.constant dense<0.000000e+00> : vector<2x192xf32>
    %254 = tpu.matmul %249, %253, %cst_105 {dimension_numbers = #tpu.dot_dimension_numbers<[1], [0], [0], [1], [0, 0, 1, 1], [], []>} : vector<2x32xf32>, vector<32x192xf32>, vector<2x192xf32> -> vector<2x192xf32>
    %255 = vector.broadcast %29 : vector<1x192xf32> to vector<2x192xf32>
    %256 = arith.addf %254, %255 : vector<2x192xf32>
    %257 = vector.extract_strided_slice %256 {offsets = [0, 0], sizes = [2, 128], strides = [1, 1]} : vector<2x192xf32> to vector<2x128xf32>
    %258 = vector.extract_strided_slice %256 {offsets = [0, 128], sizes = [2, 32], strides = [1, 1]} : vector<2x192xf32> to vector<2x32xf32>
    %259 = vector.extract_strided_slice %256 {offsets = [0, 160], sizes = [2, 32], strides = [1, 1]} : vector<2x192xf32> to vector<2x32xf32>
    %260 = arith.negf %259 : vector<2x32xf32>
    %261 = math.exp %260 : vector<2x32xf32>
    %cst_106 = arith.constant 1.000000e+00 : f32
    %262 = vector.broadcast %cst_106 : f32 to vector<2x32xf32>
    %263 = arith.addf %262, %261 : vector<2x32xf32>
    %264 = arith.divf %262, %263 : vector<2x32xf32>
    %265 = vector.shape_cast %258 : vector<2x32xf32> to vector<2x1x32xf32>
    %266 = vector.broadcast %265 : vector<2x1x32xf32> to vector<2x16x32xf32>
    %267 = arith.addf %8, %266 : vector<2x16x32xf32>
    %cst_107 = arith.constant 0.000000e+00 : f32
    %268 = vector.broadcast %cst_107 : f32 to vector<2x16x32xf32>
    %269 = arith.maximumf %267, %268 : vector<2x16x32xf32>
    %270 = arith.mulf %269, %26 : vector<2x16x32xf32>
    %cst_108 = arith.constant dense<0.000000e+00> : vector<2x16xf32>
    %271 = vector.multi_reduction <add>, %270, %cst_108 [2] : vector<2x16x32xf32> to vector<2x16xf32>
    %272 = vector.broadcast %27 : vector<1x1xf32> to vector<2x16xf32>
    %273 = arith.addf %271, %272 : vector<2x16xf32>
    %cst_109 = arith.constant dense<0xFF800000> : vector<2xf32>
    %274 = vector.multi_reduction <maximumf>, %273, %cst_109 [1] : vector<2x16xf32> to vector<2xf32>
    %275 = vector.shape_cast %274 : vector<2xf32> to vector<2x1xf32>
    %276 = vector.broadcast %275 : vector<2x1xf32> to vector<2x16xf32>
    %277 = arith.subf %273, %276 : vector<2x16xf32>
    %278 = math.exp %277 : vector<2x16xf32>
    %cst_110 = arith.constant dense<0.000000e+00> : vector<2xf32>
    %279 = vector.multi_reduction <add>, %278, %cst_110 [1] : vector<2x16xf32> to vector<2xf32>
    %280 = vector.shape_cast %279 : vector<2xf32> to vector<2x1xf32>
    %281 = tpu.reciprocal %280 : vector<2x1xf32> -> vector<2x1xf32>
    %282 = vector.broadcast %281 : vector<2x1xf32> to vector<2x16xf32>
    %283 = arith.mulf %278, %282 : vector<2x16xf32>
    %284 = vector.shape_cast %283 : vector<2x16xf32> to vector<2x16x1xf32>
    %285 = vector.broadcast %284 : vector<2x16x1xf32> to vector<2x16x32xf32>
    %286 = arith.mulf %0, %285 : vector<2x16x32xf32>
    %cst_111 = arith.constant dense<0.000000e+00> : vector<2x32xf32>
    %287 = vector.multi_reduction <add>, %286, %cst_111 [1] : vector<2x16x32xf32> to vector<2x32xf32>
    %288 = arith.mulf %264, %287 : vector<2x32xf32>
    %289 = arith.index_cast %248 : i32 to index
    %c0_112 = arith.constant 0 : index
    %c0_113 = arith.constant 0 : index
    %290 = vector.load %arg2[%289, %c0_112, %c0_113] : memref<7x2x16xf32, #tpu.memory_space<vmem>>, vector<1x2x16xf32>
    %291 = vector.shape_cast %290 : vector<1x2x16xf32> to vector<2x16xf32>
    %292 = tpu.transpose %30, [1, 0] : vector<128x16xf32> -> vector<16x128xf32>
    %cst_114 = arith.constant dense<0.000000e+00> : vector<2x128xf32>
    %293 = tpu.matmul %291, %292, %cst_114 {dimension_numbers = #tpu.dot_dimension_numbers<[1], [0], [0], [1], [0, 0, 1, 1], [], []>} : vector<2x16xf32>, vector<16x128xf32>, vector<2x128xf32> -> vector<2x128xf32>
    %294 = tpu.transpose %31, [1, 0] : vector<128x32xf32> -> vector<32x128xf32>
    %cst_115 = arith.constant dense<0.000000e+00> : vector<2x128xf32>
    %295 = tpu.matmul %288, %294, %cst_115 {dimension_numbers = #tpu.dot_dimension_numbers<[1], [0], [0], [1], [0, 0, 1, 1], [], []>} : vector<2x32xf32>, vector<32x128xf32>, vector<2x128xf32> -> vector<2x128xf32>
    %296 = arith.addf %293, %295 : vector<2x128xf32>
    %297 = vector.broadcast %32 : vector<1x128xf32> to vector<2x128xf32>
    %298 = arith.addf %296, %297 : vector<2x128xf32>
    %299 = arith.addf %298, %257 : vector<2x128xf32>
    %300 = vector.extract_strided_slice %299 {offsets = [0, 0], sizes = [2, 32], strides = [1, 1]} : vector<2x128xf32> to vector<2x32xf32>
    %301 = arith.negf %300 : vector<2x32xf32>
    %302 = math.exp %301 : vector<2x32xf32>
    %cst_116 = arith.constant 1.000000e+00 : f32
    %303 = vector.broadcast %cst_116 : f32 to vector<2x32xf32>
    %304 = arith.addf %303, %302 : vector<2x32xf32>
    %305 = arith.divf %303, %304 : vector<2x32xf32>
    %306 = vector.extract_strided_slice %299 {offsets = [0, 32], sizes = [2, 32], strides = [1, 1]} : vector<2x128xf32> to vector<2x32xf32>
    %307 = arith.negf %306 : vector<2x32xf32>
    %308 = math.exp %307 : vector<2x32xf32>
    %cst_117 = arith.constant 1.000000e+00 : f32
    %309 = vector.broadcast %cst_117 : f32 to vector<2x32xf32>
    %310 = arith.addf %309, %308 : vector<2x32xf32>
    %311 = arith.divf %309, %310 : vector<2x32xf32>
    %312 = vector.extract_strided_slice %299 {offsets = [0, 64], sizes = [2, 32], strides = [1, 1]} : vector<2x128xf32> to vector<2x32xf32>
    %313 = math.tanh %312 : vector<2x32xf32>
    %314 = vector.extract_strided_slice %299 {offsets = [0, 96], sizes = [2, 32], strides = [1, 1]} : vector<2x128xf32> to vector<2x32xf32>
    %315 = arith.negf %314 : vector<2x32xf32>
    %316 = math.exp %315 : vector<2x32xf32>
    %cst_118 = arith.constant 1.000000e+00 : f32
    %317 = vector.broadcast %cst_118 : f32 to vector<2x32xf32>
    %318 = arith.addf %317, %316 : vector<2x32xf32>
    %319 = arith.divf %317, %318 : vector<2x32xf32>
    %320 = arith.mulf %311, %250 : vector<2x32xf32>
    %321 = arith.mulf %305, %313 : vector<2x32xf32>
    %322 = arith.addf %320, %321 : vector<2x32xf32>
    %323 = math.tanh %322 : vector<2x32xf32>
    %324 = arith.mulf %319, %323 : vector<2x32xf32>
    %325 = tpu.transpose %33, [1, 0] : vector<128x32xf32> -> vector<32x128xf32>
    %cst_119 = arith.constant dense<0.000000e+00> : vector<2x128xf32>
    %326 = tpu.matmul %324, %325, %cst_119 {dimension_numbers = #tpu.dot_dimension_numbers<[1], [0], [0], [1], [0, 0, 1, 1], [], []>} : vector<2x32xf32>, vector<32x128xf32>, vector<2x128xf32> -> vector<2x128xf32>
    %327 = vector.broadcast %34 : vector<1x128xf32> to vector<2x128xf32>
    %328 = arith.addf %326, %327 : vector<2x128xf32>
    %329 = vector.shape_cast %252 : vector<2x1xi1> to vector<2x1xi1>
    %330 = vector.broadcast %329 : vector<2x1xi1> to vector<2x32xi1>
    %331 = arith.select %330, %324, %249 : vector<2x32xi1>, vector<2x32xf32>
    %c0_120 = arith.constant 0 : index
    %c0_121 = arith.constant 0 : index
    %332 = vector.load %arg18[%c0_120, %c0_121] : memref<2x32xf32, #tpu.memory_space<vmem>>, vector<2x32xf32>
    tpu.vector_store %arg18[%c0_120, %c0_121], %331 {strides = array<i32>} : memref<2x32xf32, #tpu.memory_space<vmem>>, vector<2x32xf32>,
    %333 = vector.shape_cast %252 : vector<2x1xi1> to vector<2x1xi1>
    %334 = vector.broadcast %333 : vector<2x1xi1> to vector<2x32xi1>
    %335 = arith.select %334, %322, %250 : vector<2x32xi1>, vector<2x32xf32>
    %c0_122 = arith.constant 0 : index
    %c0_123 = arith.constant 0 : index
    %336 = vector.load %arg19[%c0_122, %c0_123] : memref<2x32xf32, #tpu.memory_space<vmem>>, vector<2x32xf32>
    tpu.vector_store %arg19[%c0_122, %c0_123], %335 {strides = array<i32>} : memref<2x32xf32, #tpu.memory_space<vmem>>, vector<2x32xf32>,
    %cst_124 = arith.constant 0.000000e+00 : f32
    %337 = vector.shape_cast %252 : vector<2x1xi1> to vector<2x1xi1>
    %338 = vector.broadcast %337 : vector<2x1xi1> to vector<2x128xi1>
    %339 = vector.broadcast %cst_124 : f32 to vector<2x128xf32>
    %340 = arith.select %338, %328, %339 : vector<2x128xi1>, vector<2x128xf32>
    %341 = arith.index_cast %248 : i32 to index
    %c0_125 = arith.constant 0 : index
    %c0_126 = arith.constant 0 : index
    %342 = vector.load %arg16[%341, %c0_125, %c0_126] : memref<7x2x128xf32, #tpu.memory_space<vmem>>, vector<1x2x128xf32>
    %343 = vector.shape_cast %342 : vector<1x2x128xf32> to vector<2x128xf32>
    %344 = vector.shape_cast %340 : vector<2x128xf32> to vector<1x2x128xf32>
    tpu.vector_store %arg16[%341, %c0_125, %c0_126], %344 {strides = array<i32>} : memref<7x2x128xf32, #tpu.memory_space<vmem>>, vector<1x2x128xf32>,
    %cst_127 = arith.constant 0.000000e+00 : f32
    %345 = vector.shape_cast %252 : vector<2x1xi1> to vector<2x1xi1>
    %346 = vector.broadcast %345 : vector<2x1xi1> to vector<2x16xi1>
    %347 = vector.broadcast %cst_127 : f32 to vector<2x16xf32>
    %348 = arith.select %346, %283, %347 : vector<2x16xi1>, vector<2x16xf32>
    %349 = arith.index_cast %248 : i32 to index
    %c0_128 = arith.constant 0 : index
    %c0_129 = arith.constant 0 : index
    %350 = vector.load %arg17[%349, %c0_128, %c0_129] : memref<7x2x16xf32, #tpu.memory_space<vmem>>, vector<1x2x16xf32>
    %351 = vector.shape_cast %350 : vector<1x2x16xf32> to vector<2x16xf32>
    %352 = vector.shape_cast %348 : vector<2x16xf32> to vector<1x2x16xf32>
    tpu.vector_store %arg17[%349, %c0_128, %c0_129], %352 {strides = array<i32>} : memref<7x2x16xf32, #tpu.memory_space<vmem>>, vector<1x2x16xf32>,
    %c3_i32 = arith.constant 3 : i32
    %c1_i32_130 = arith.constant 1 : i32
    %353 = arith.muli %c3_i32, %c1_i32_130 : i32
    %c0_i32_131 = arith.constant 0 : i32
    %354 = arith.addi %c0_i32_131, %353 : i32
    %c0_132 = arith.constant 0 : index
    %c0_133 = arith.constant 0 : index
    %355 = vector.load %arg18[%c0_132, %c0_133] : memref<2x32xf32, #tpu.memory_space<vmem>>, vector<2x32xf32>
    %c0_134 = arith.constant 0 : index
    %c0_135 = arith.constant 0 : index
    %356 = vector.load %arg19[%c0_134, %c0_135] : memref<2x32xf32, #tpu.memory_space<vmem>>, vector<2x32xf32>
    %357 = vector.broadcast %354 : i32 to vector<2x1xi32>
    %358 = arith.cmpi sgt, %22, %357 : vector<2x1xi32>
    %359 = tpu.transpose %28, [1, 0] : vector<192x32xf32> -> vector<32x192xf32>
    %cst_136 = arith.constant dense<0.000000e+00> : vector<2x192xf32>
    %360 = tpu.matmul %355, %359, %cst_136 {dimension_numbers = #tpu.dot_dimension_numbers<[1], [0], [0], [1], [0, 0, 1, 1], [], []>} : vector<2x32xf32>, vector<32x192xf32>, vector<2x192xf32> -> vector<2x192xf32>
    %361 = vector.broadcast %29 : vector<1x192xf32> to vector<2x192xf32>
    %362 = arith.addf %360, %361 : vector<2x192xf32>
    %363 = vector.extract_strided_slice %362 {offsets = [0, 0], sizes = [2, 128], strides = [1, 1]} : vector<2x192xf32> to vector<2x128xf32>
    %364 = vector.extract_strided_slice %362 {offsets = [0, 128], sizes = [2, 32], strides = [1, 1]} : vector<2x192xf32> to vector<2x32xf32>
    %365 = vector.extract_strided_slice %362 {offsets = [0, 160], sizes = [2, 32], strides = [1, 1]} : vector<2x192xf32> to vector<2x32xf32>
    %366 = arith.negf %365 : vector<2x32xf32>
    %367 = math.exp %366 : vector<2x32xf32>
    %cst_137 = arith.constant 1.000000e+00 : f32
    %368 = vector.broadcast %cst_137 : f32 to vector<2x32xf32>
    %369 = arith.addf %368, %367 : vector<2x32xf32>
    %370 = arith.divf %368, %369 : vector<2x32xf32>
    %371 = vector.shape_cast %364 : vector<2x32xf32> to vector<2x1x32xf32>
    %372 = vector.broadcast %371 : vector<2x1x32xf32> to vector<2x16x32xf32>
    %373 = arith.addf %8, %372 : vector<2x16x32xf32>
    %cst_138 = arith.constant 0.000000e+00 : f32
    %374 = vector.broadcast %cst_138 : f32 to vector<2x16x32xf32>
    %375 = arith.maximumf %373, %374 : vector<2x16x32xf32>
    %376 = arith.mulf %375, %26 : vector<2x16x32xf32>
    %cst_139 = arith.constant dense<0.000000e+00> : vector<2x16xf32>
    %377 = vector.multi_reduction <add>, %376, %cst_139 [2] : vector<2x16x32xf32> to vector<2x16xf32>
    %378 = vector.broadcast %27 : vector<1x1xf32> to vector<2x16xf32>
    %379 = arith.addf %377, %378 : vector<2x16xf32>
    %cst_140 = arith.constant dense<0xFF800000> : vector<2xf32>
    %380 = vector.multi_reduction <maximumf>, %379, %cst_140 [1] : vector<2x16xf32> to vector<2xf32>
    %381 = vector.shape_cast %380 : vector<2xf32> to vector<2x1xf32>
    %382 = vector.broadcast %381 : vector<2x1xf32> to vector<2x16xf32>
    %383 = arith.subf %379, %382 : vector<2x16xf32>
    %384 = math.exp %383 : vector<2x16xf32>
    %cst_141 = arith.constant dense<0.000000e+00> : vector<2xf32>
    %385 = vector.multi_reduction <add>, %384, %cst_141 [1] : vector<2x16xf32> to vector<2xf32>
    %386 = vector.shape_cast %385 : vector<2xf32> to vector<2x1xf32>
    %387 = tpu.reciprocal %386 : vector<2x1xf32> -> vector<2x1xf32>
    %388 = vector.broadcast %387 : vector<2x1xf32> to vector<2x16xf32>
    %389 = arith.mulf %384, %388 : vector<2x16xf32>
    %390 = vector.shape_cast %389 : vector<2x16xf32> to vector<2x16x1xf32>
    %391 = vector.broadcast %390 : vector<2x16x1xf32> to vector<2x16x32xf32>
    %392 = arith.mulf %0, %391 : vector<2x16x32xf32>
    %cst_142 = arith.constant dense<0.000000e+00> : vector<2x32xf32>
    %393 = vector.multi_reduction <add>, %392, %cst_142 [1] : vector<2x16x32xf32> to vector<2x32xf32>
    %394 = arith.mulf %370, %393 : vector<2x32xf32>
    %395 = arith.index_cast %354 : i32 to index
    %c0_143 = arith.constant 0 : index
    %c0_144 = arith.constant 0 : index
    %396 = vector.load %arg2[%395, %c0_143, %c0_144] : memref<7x2x16xf32, #tpu.memory_space<vmem>>, vector<1x2x16xf32>
    %397 = vector.shape_cast %396 : vector<1x2x16xf32> to vector<2x16xf32>
    %398 = tpu.transpose %30, [1, 0] : vector<128x16xf32> -> vector<16x128xf32>
    %cst_145 = arith.constant dense<0.000000e+00> : vector<2x128xf32>
    %399 = tpu.matmul %397, %398, %cst_145 {dimension_numbers = #tpu.dot_dimension_numbers<[1], [0], [0], [1], [0, 0, 1, 1], [], []>} : vector<2x16xf32>, vector<16x128xf32>, vector<2x128xf32> -> vector<2x128xf32>
    %400 = tpu.transpose %31, [1, 0] : vector<128x32xf32> -> vector<32x128xf32>
    %cst_146 = arith.constant dense<0.000000e+00> : vector<2x128xf32>
    %401 = tpu.matmul %394, %400, %cst_146 {dimension_numbers = #tpu.dot_dimension_numbers<[1], [0], [0], [1], [0, 0, 1, 1], [], []>} : vector<2x32xf32>, vector<32x128xf32>, vector<2x128xf32> -> vector<2x128xf32>
    %402 = arith.addf %399, %401 : vector<2x128xf32>
    %403 = vector.broadcast %32 : vector<1x128xf32> to vector<2x128xf32>
    %404 = arith.addf %402, %403 : vector<2x128xf32>
    %405 = arith.addf %404, %363 : vector<2x128xf32>
    %406 = vector.extract_strided_slice %405 {offsets = [0, 0], sizes = [2, 32], strides = [1, 1]} : vector<2x128xf32> to vector<2x32xf32>
    %407 = arith.negf %406 : vector<2x32xf32>
    %408 = math.exp %407 : vector<2x32xf32>
    %cst_147 = arith.constant 1.000000e+00 : f32
    %409 = vector.broadcast %cst_147 : f32 to vector<2x32xf32>
    %410 = arith.addf %409, %408 : vector<2x32xf32>
    %411 = arith.divf %409, %410 : vector<2x32xf32>
    %412 = vector.extract_strided_slice %405 {offsets = [0, 32], sizes = [2, 32], strides = [1, 1]} : vector<2x128xf32> to vector<2x32xf32>
    %413 = arith.negf %412 : vector<2x32xf32>
    %414 = math.exp %413 : vector<2x32xf32>
    %cst_148 = arith.constant 1.000000e+00 : f32
    %415 = vector.broadcast %cst_148 : f32 to vector<2x32xf32>
    %416 = arith.addf %415, %414 : vector<2x32xf32>
    %417 = arith.divf %415, %416 : vector<2x32xf32>
    %418 = vector.extract_strided_slice %405 {offsets = [0, 64], sizes = [2, 32], strides = [1, 1]} : vector<2x128xf32> to vector<2x32xf32>
    %419 = math.tanh %418 : vector<2x32xf32>
    %420 = vector.extract_strided_slice %405 {offsets = [0, 96], sizes = [2, 32], strides = [1, 1]} : vector<2x128xf32> to vector<2x32xf32>
    %421 = arith.negf %420 : vector<2x32xf32>
    %422 = math.exp %421 : vector<2x32xf32>
    %cst_149 = arith.constant 1.000000e+00 : f32
    %423 = vector.broadcast %cst_149 : f32 to vector<2x32xf32>
    %424 = arith.addf %423, %422 : vector<2x32xf32>
    %425 = arith.divf %423, %424 : vector<2x32xf32>
    %426 = arith.mulf %417, %356 : vector<2x32xf32>
    %427 = arith.mulf %411, %419 : vector<2x32xf32>
    %428 = arith.addf %426, %427 : vector<2x32xf32>
    %429 = math.tanh %428 : vector<2x32xf32>
    %430 = arith.mulf %425, %429 : vector<2x32xf32>
    %431 = tpu.transpose %33, [1, 0] : vector<128x32xf32> -> vector<32x128xf32>
    %cst_150 = arith.constant dense<0.000000e+00> : vector<2x128xf32>
    %432 = tpu.matmul %430, %431, %cst_150 {dimension_numbers = #tpu.dot_dimension_numbers<[1], [0], [0], [1], [0, 0, 1, 1], [], []>} : vector<2x32xf32>, vector<32x128xf32>, vector<2x128xf32> -> vector<2x128xf32>
    %433 = vector.broadcast %34 : vector<1x128xf32> to vector<2x128xf32>
    %434 = arith.addf %432, %433 : vector<2x128xf32>
    %435 = vector.shape_cast %358 : vector<2x1xi1> to vector<2x1xi1>
    %436 = vector.broadcast %435 : vector<2x1xi1> to vector<2x32xi1>
    %437 = arith.select %436, %430, %355 : vector<2x32xi1>, vector<2x32xf32>
    %c0_151 = arith.constant 0 : index
    %c0_152 = arith.constant 0 : index
    %438 = vector.load %arg18[%c0_151, %c0_152] : memref<2x32xf32, #tpu.memory_space<vmem>>, vector<2x32xf32>
    tpu.vector_store %arg18[%c0_151, %c0_152], %437 {strides = array<i32>} : memref<2x32xf32, #tpu.memory_space<vmem>>, vector<2x32xf32>,
    %439 = vector.shape_cast %358 : vector<2x1xi1> to vector<2x1xi1>
    %440 = vector.broadcast %439 : vector<2x1xi1> to vector<2x32xi1>
    %441 = arith.select %440, %428, %356 : vector<2x32xi1>, vector<2x32xf32>
    %c0_153 = arith.constant 0 : index
    %c0_154 = arith.constant 0 : index
    %442 = vector.load %arg19[%c0_153, %c0_154] : memref<2x32xf32, #tpu.memory_space<vmem>>, vector<2x32xf32>
    tpu.vector_store %arg19[%c0_153, %c0_154], %441 {strides = array<i32>} : memref<2x32xf32, #tpu.memory_space<vmem>>, vector<2x32xf32>,
    %cst_155 = arith.constant 0.000000e+00 : f32
    %443 = vector.shape_cast %358 : vector<2x1xi1> to vector<2x1xi1>
    %444 = vector.broadcast %443 : vector<2x1xi1> to vector<2x128xi1>
    %445 = vector.broadcast %cst_155 : f32 to vector<2x128xf32>
    %446 = arith.select %444, %434, %445 : vector<2x128xi1>, vector<2x128xf32>
    %447 = arith.index_cast %354 : i32 to index
    %c0_156 = arith.constant 0 : index
    %c0_157 = arith.constant 0 : index
    %448 = vector.load %arg16[%447, %c0_156, %c0_157] : memref<7x2x128xf32, #tpu.memory_space<vmem>>, vector<1x2x128xf32>
    %449 = vector.shape_cast %448 : vector<1x2x128xf32> to vector<2x128xf32>
    %450 = vector.shape_cast %446 : vector<2x128xf32> to vector<1x2x128xf32>
    tpu.vector_store %arg16[%447, %c0_156, %c0_157], %450 {strides = array<i32>} : memref<7x2x128xf32, #tpu.memory_space<vmem>>, vector<1x2x128xf32>,
    %cst_158 = arith.constant 0.000000e+00 : f32
    %451 = vector.shape_cast %358 : vector<2x1xi1> to vector<2x1xi1>
    %452 = vector.broadcast %451 : vector<2x1xi1> to vector<2x16xi1>
    %453 = vector.broadcast %cst_158 : f32 to vector<2x16xf32>
    %454 = arith.select %452, %389, %453 : vector<2x16xi1>, vector<2x16xf32>
    %455 = arith.index_cast %354 : i32 to index
    %c0_159 = arith.constant 0 : index
    %c0_160 = arith.constant 0 : index
    %456 = vector.load %arg17[%455, %c0_159, %c0_160] : memref<7x2x16xf32, #tpu.memory_space<vmem>>, vector<1x2x16xf32>
    %457 = vector.shape_cast %456 : vector<1x2x16xf32> to vector<2x16xf32>
    %458 = vector.shape_cast %454 : vector<2x16xf32> to vector<1x2x16xf32>
    tpu.vector_store %arg17[%455, %c0_159, %c0_160], %458 {strides = array<i32>} : memref<7x2x16xf32, #tpu.memory_space<vmem>>, vector<1x2x16xf32>,
    %c4_i32 = arith.constant 4 : i32
    %c1_i32_161 = arith.constant 1 : i32
    %459 = arith.muli %c4_i32, %c1_i32_161 : i32
    %c0_i32_162 = arith.constant 0 : i32
    %460 = arith.addi %c0_i32_162, %459 : i32
    %c0_163 = arith.constant 0 : index
    %c0_164 = arith.constant 0 : index
    %461 = vector.load %arg18[%c0_163, %c0_164] : memref<2x32xf32, #tpu.memory_space<vmem>>, vector<2x32xf32>
    %c0_165 = arith.constant 0 : index
    %c0_166 = arith.constant 0 : index
    %462 = vector.load %arg19[%c0_165, %c0_166] : memref<2x32xf32, #tpu.memory_space<vmem>>, vector<2x32xf32>
    %463 = vector.broadcast %460 : i32 to vector<2x1xi32>
    %464 = arith.cmpi sgt, %22, %463 : vector<2x1xi32>
    %465 = tpu.transpose %28, [1, 0] : vector<192x32xf32> -> vector<32x192xf32>
    %cst_167 = arith.constant dense<0.000000e+00> : vector<2x192xf32>
    %466 = tpu.matmul %461, %465, %cst_167 {dimension_numbers = #tpu.dot_dimension_numbers<[1], [0], [0], [1], [0, 0, 1, 1], [], []>} : vector<2x32xf32>, vector<32x192xf32>, vector<2x192xf32> -> vector<2x192xf32>
    %467 = vector.broadcast %29 : vector<1x192xf32> to vector<2x192xf32>
    %468 = arith.addf %466, %467 : vector<2x192xf32>
    %469 = vector.extract_strided_slice %468 {offsets = [0, 0], sizes = [2, 128], strides = [1, 1]} : vector<2x192xf32> to vector<2x128xf32>
    %470 = vector.extract_strided_slice %468 {offsets = [0, 128], sizes = [2, 32], strides = [1, 1]} : vector<2x192xf32> to vector<2x32xf32>
    %471 = vector.extract_strided_slice %468 {offsets = [0, 160], sizes = [2, 32], strides = [1, 1]} : vector<2x192xf32> to vector<2x32xf32>
    %472 = arith.negf %471 : vector<2x32xf32>
    %473 = math.exp %472 : vector<2x32xf32>
    %cst_168 = arith.constant 1.000000e+00 : f32
    %474 = vector.broadcast %cst_168 : f32 to vector<2x32xf32>
    %475 = arith.addf %474, %473 : vector<2x32xf32>
    %476 = arith.divf %474, %475 : vector<2x32xf32>
    %477 = vector.shape_cast %470 : vector<2x32xf32> to vector<2x1x32xf32>
    %478 = vector.broadcast %477 : vector<2x1x32xf32> to vector<2x16x32xf32>
    %479 = arith.addf %8, %478 : vector<2x16x32xf32>
    %cst_169 = arith.constant 0.000000e+00 : f32
    %480 = vector.broadcast %cst_169 : f32 to vector<2x16x32xf32>
    %481 = arith.maximumf %479, %480 : vector<2x16x32xf32>
    %482 = arith.mulf %481, %26 : vector<2x16x32xf32>
    %cst_170 = arith.constant dense<0.000000e+00> : vector<2x16xf32>
    %483 = vector.multi_reduction <add>, %482, %cst_170 [2] : vector<2x16x32xf32> to vector<2x16xf32>
    %484 = vector.broadcast %27 : vector<1x1xf32> to vector<2x16xf32>
    %485 = arith.addf %483, %484 : vector<2x16xf32>
    %cst_171 = arith.constant dense<0xFF800000> : vector<2xf32>
    %486 = vector.multi_reduction <maximumf>, %485, %cst_171 [1] : vector<2x16xf32> to vector<2xf32>
    %487 = vector.shape_cast %486 : vector<2xf32> to vector<2x1xf32>
    %488 = vector.broadcast %487 : vector<2x1xf32> to vector<2x16xf32>
    %489 = arith.subf %485, %488 : vector<2x16xf32>
    %490 = math.exp %489 : vector<2x16xf32>
    %cst_172 = arith.constant dense<0.000000e+00> : vector<2xf32>
    %491 = vector.multi_reduction <add>, %490, %cst_172 [1] : vector<2x16xf32> to vector<2xf32>
    %492 = vector.shape_cast %491 : vector<2xf32> to vector<2x1xf32>
    %493 = tpu.reciprocal %492 : vector<2x1xf32> -> vector<2x1xf32>
    %494 = vector.broadcast %493 : vector<2x1xf32> to vector<2x16xf32>
    %495 = arith.mulf %490, %494 : vector<2x16xf32>
    %496 = vector.shape_cast %495 : vector<2x16xf32> to vector<2x16x1xf32>
    %497 = vector.broadcast %496 : vector<2x16x1xf32> to vector<2x16x32xf32>
    %498 = arith.mulf %0, %497 : vector<2x16x32xf32>
    %cst_173 = arith.constant dense<0.000000e+00> : vector<2x32xf32>
    %499 = vector.multi_reduction <add>, %498, %cst_173 [1] : vector<2x16x32xf32> to vector<2x32xf32>
    %500 = arith.mulf %476, %499 : vector<2x32xf32>
    %501 = arith.index_cast %460 : i32 to index
    %c0_174 = arith.constant 0 : index
    %c0_175 = arith.constant 0 : index
    %502 = vector.load %arg2[%501, %c0_174, %c0_175] : memref<7x2x16xf32, #tpu.memory_space<vmem>>, vector<1x2x16xf32>
    %503 = vector.shape_cast %502 : vector<1x2x16xf32> to vector<2x16xf32>
    %504 = tpu.transpose %30, [1, 0] : vector<128x16xf32> -> vector<16x128xf32>
    %cst_176 = arith.constant dense<0.000000e+00> : vector<2x128xf32>
    %505 = tpu.matmul %503, %504, %cst_176 {dimension_numbers = #tpu.dot_dimension_numbers<[1], [0], [0], [1], [0, 0, 1, 1], [], []>} : vector<2x16xf32>, vector<16x128xf32>, vector<2x128xf32> -> vector<2x128xf32>
    %506 = tpu.transpose %31, [1, 0] : vector<128x32xf32> -> vector<32x128xf32>
    %cst_177 = arith.constant dense<0.000000e+00> : vector<2x128xf32>
    %507 = tpu.matmul %500, %506, %cst_177 {dimension_numbers = #tpu.dot_dimension_numbers<[1], [0], [0], [1], [0, 0, 1, 1], [], []>} : vector<2x32xf32>, vector<32x128xf32>, vector<2x128xf32> -> vector<2x128xf32>
    %508 = arith.addf %505, %507 : vector<2x128xf32>
    %509 = vector.broadcast %32 : vector<1x128xf32> to vector<2x128xf32>
    %510 = arith.addf %508, %509 : vector<2x128xf32>
    %511 = arith.addf %510, %469 : vector<2x128xf32>
    %512 = vector.extract_strided_slice %511 {offsets = [0, 0], sizes = [2, 32], strides = [1, 1]} : vector<2x128xf32> to vector<2x32xf32>
    %513 = arith.negf %512 : vector<2x32xf32>
    %514 = math.exp %513 : vector<2x32xf32>
    %cst_178 = arith.constant 1.000000e+00 : f32
    %515 = vector.broadcast %cst_178 : f32 to vector<2x32xf32>
    %516 = arith.addf %515, %514 : vector<2x32xf32>
    %517 = arith.divf %515, %516 : vector<2x32xf32>
    %518 = vector.extract_strided_slice %511 {offsets = [0, 32], sizes = [2, 32], strides = [1, 1]} : vector<2x128xf32> to vector<2x32xf32>
    %519 = arith.negf %518 : vector<2x32xf32>
    %520 = math.exp %519 : vector<2x32xf32>
    %cst_179 = arith.constant 1.000000e+00 : f32
    %521 = vector.broadcast %cst_179 : f32 to vector<2x32xf32>
    %522 = arith.addf %521, %520 : vector<2x32xf32>
    %523 = arith.divf %521, %522 : vector<2x32xf32>
    %524 = vector.extract_strided_slice %511 {offsets = [0, 64], sizes = [2, 32], strides = [1, 1]} : vector<2x128xf32> to vector<2x32xf32>
    %525 = math.tanh %524 : vector<2x32xf32>
    %526 = vector.extract_strided_slice %511 {offsets = [0, 96], sizes = [2, 32], strides = [1, 1]} : vector<2x128xf32> to vector<2x32xf32>
    %527 = arith.negf %526 : vector<2x32xf32>
    %528 = math.exp %527 : vector<2x32xf32>
    %cst_180 = arith.constant 1.000000e+00 : f32
    %529 = vector.broadcast %cst_180 : f32 to vector<2x32xf32>
    %530 = arith.addf %529, %528 : vector<2x32xf32>
    %531 = arith.divf %529, %530 : vector<2x32xf32>
    %532 = arith.mulf %523, %462 : vector<2x32xf32>
    %533 = arith.mulf %517, %525 : vector<2x32xf32>
    %534 = arith.addf %532, %533 : vector<2x32xf32>
    %535 = math.tanh %534 : vector<2x32xf32>
    %536 = arith.mulf %531, %535 : vector<2x32xf32>
    %537 = tpu.transpose %33, [1, 0] : vector<128x32xf32> -> vector<32x128xf32>
    %cst_181 = arith.constant dense<0.000000e+00> : vector<2x128xf32>
    %538 = tpu.matmul %536, %537, %cst_181 {dimension_numbers = #tpu.dot_dimension_numbers<[1], [0], [0], [1], [0, 0, 1, 1], [], []>} : vector<2x32xf32>, vector<32x128xf32>, vector<2x128xf32> -> vector<2x128xf32>
    %539 = vector.broadcast %34 : vector<1x128xf32> to vector<2x128xf32>
    %540 = arith.addf %538, %539 : vector<2x128xf32>
    %541 = vector.shape_cast %464 : vector<2x1xi1> to vector<2x1xi1>
    %542 = vector.broadcast %541 : vector<2x1xi1> to vector<2x32xi1>
    %543 = arith.select %542, %536, %461 : vector<2x32xi1>, vector<2x32xf32>
    %c0_182 = arith.constant 0 : index
    %c0_183 = arith.constant 0 : index
    %544 = vector.load %arg18[%c0_182, %c0_183] : memref<2x32xf32, #tpu.memory_space<vmem>>, vector<2x32xf32>
    tpu.vector_store %arg18[%c0_182, %c0_183], %543 {strides = array<i32>} : memref<2x32xf32, #tpu.memory_space<vmem>>, vector<2x32xf32>,
    %545 = vector.shape_cast %464 : vector<2x1xi1> to vector<2x1xi1>
    %546 = vector.broadcast %545 : vector<2x1xi1> to vector<2x32xi1>
    %547 = arith.select %546, %534, %462 : vector<2x32xi1>, vector<2x32xf32>
    %c0_184 = arith.constant 0 : index
    %c0_185 = arith.constant 0 : index
    %548 = vector.load %arg19[%c0_184, %c0_185] : memref<2x32xf32, #tpu.memory_space<vmem>>, vector<2x32xf32>
    tpu.vector_store %arg19[%c0_184, %c0_185], %547 {strides = array<i32>} : memref<2x32xf32, #tpu.memory_space<vmem>>, vector<2x32xf32>,
    %cst_186 = arith.constant 0.000000e+00 : f32
    %549 = vector.shape_cast %464 : vector<2x1xi1> to vector<2x1xi1>
    %550 = vector.broadcast %549 : vector<2x1xi1> to vector<2x128xi1>
    %551 = vector.broadcast %cst_186 : f32 to vector<2x128xf32>
    %552 = arith.select %550, %540, %551 : vector<2x128xi1>, vector<2x128xf32>
    %553 = arith.index_cast %460 : i32 to index
    %c0_187 = arith.constant 0 : index
    %c0_188 = arith.constant 0 : index
    %554 = vector.load %arg16[%553, %c0_187, %c0_188] : memref<7x2x128xf32, #tpu.memory_space<vmem>>, vector<1x2x128xf32>
    %555 = vector.shape_cast %554 : vector<1x2x128xf32> to vector<2x128xf32>
    %556 = vector.shape_cast %552 : vector<2x128xf32> to vector<1x2x128xf32>
    tpu.vector_store %arg16[%553, %c0_187, %c0_188], %556 {strides = array<i32>} : memref<7x2x128xf32, #tpu.memory_space<vmem>>, vector<1x2x128xf32>,
    %cst_189 = arith.constant 0.000000e+00 : f32
    %557 = vector.shape_cast %464 : vector<2x1xi1> to vector<2x1xi1>
    %558 = vector.broadcast %557 : vector<2x1xi1> to vector<2x16xi1>
    %559 = vector.broadcast %cst_189 : f32 to vector<2x16xf32>
    %560 = arith.select %558, %495, %559 : vector<2x16xi1>, vector<2x16xf32>
    %561 = arith.index_cast %460 : i32 to index
    %c0_190 = arith.constant 0 : index
    %c0_191 = arith.constant 0 : index
    %562 = vector.load %arg17[%561, %c0_190, %c0_191] : memref<7x2x16xf32, #tpu.memory_space<vmem>>, vector<1x2x16xf32>
    %563 = vector.shape_cast %562 : vector<1x2x16xf32> to vector<2x16xf32>
    %564 = vector.shape_cast %560 : vector<2x16xf32> to vector<1x2x16xf32>
    tpu.vector_store %arg17[%561, %c0_190, %c0_191], %564 {strides = array<i32>} : memref<7x2x16xf32, #tpu.memory_space<vmem>>, vector<1x2x16xf32>,
    %c5_i32 = arith.constant 5 : i32
    %c1_i32_192 = arith.constant 1 : i32
    %565 = arith.muli %c5_i32, %c1_i32_192 : i32
    %c0_i32_193 = arith.constant 0 : i32
    %566 = arith.addi %c0_i32_193, %565 : i32
    %c0_194 = arith.constant 0 : index
    %c0_195 = arith.constant 0 : index
    %567 = vector.load %arg18[%c0_194, %c0_195] : memref<2x32xf32, #tpu.memory_space<vmem>>, vector<2x32xf32>
    %c0_196 = arith.constant 0 : index
    %c0_197 = arith.constant 0 : index
    %568 = vector.load %arg19[%c0_196, %c0_197] : memref<2x32xf32, #tpu.memory_space<vmem>>, vector<2x32xf32>
    %569 = vector.broadcast %566 : i32 to vector<2x1xi32>
    %570 = arith.cmpi sgt, %22, %569 : vector<2x1xi32>
    %571 = tpu.transpose %28, [1, 0] : vector<192x32xf32> -> vector<32x192xf32>
    %cst_198 = arith.constant dense<0.000000e+00> : vector<2x192xf32>
    %572 = tpu.matmul %567, %571, %cst_198 {dimension_numbers = #tpu.dot_dimension_numbers<[1], [0], [0], [1], [0, 0, 1, 1], [], []>} : vector<2x32xf32>, vector<32x192xf32>, vector<2x192xf32> -> vector<2x192xf32>
    %573 = vector.broadcast %29 : vector<1x192xf32> to vector<2x192xf32>
    %574 = arith.addf %572, %573 : vector<2x192xf32>
    %575 = vector.extract_strided_slice %574 {offsets = [0, 0], sizes = [2, 128], strides = [1, 1]} : vector<2x192xf32> to vector<2x128xf32>
    %576 = vector.extract_strided_slice %574 {offsets = [0, 128], sizes = [2, 32], strides = [1, 1]} : vector<2x192xf32> to vector<2x32xf32>
    %577 = vector.extract_strided_slice %574 {offsets = [0, 160], sizes = [2, 32], strides = [1, 1]} : vector<2x192xf32> to vector<2x32xf32>
    %578 = arith.negf %577 : vector<2x32xf32>
    %579 = math.exp %578 : vector<2x32xf32>
    %cst_199 = arith.constant 1.000000e+00 : f32
    %580 = vector.broadcast %cst_199 : f32 to vector<2x32xf32>
    %581 = arith.addf %580, %579 : vector<2x32xf32>
    %582 = arith.divf %580, %581 : vector<2x32xf32>
    %583 = vector.shape_cast %576 : vector<2x32xf32> to vector<2x1x32xf32>
    %584 = vector.broadcast %583 : vector<2x1x32xf32> to vector<2x16x32xf32>
    %585 = arith.addf %8, %584 : vector<2x16x32xf32>
    %cst_200 = arith.constant 0.000000e+00 : f32
    %586 = vector.broadcast %cst_200 : f32 to vector<2x16x32xf32>
    %587 = arith.maximumf %585, %586 : vector<2x16x32xf32>
    %588 = arith.mulf %587, %26 : vector<2x16x32xf32>
    %cst_201 = arith.constant dense<0.000000e+00> : vector<2x16xf32>
    %589 = vector.multi_reduction <add>, %588, %cst_201 [2] : vector<2x16x32xf32> to vector<2x16xf32>
    %590 = vector.broadcast %27 : vector<1x1xf32> to vector<2x16xf32>
    %591 = arith.addf %589, %590 : vector<2x16xf32>
    %cst_202 = arith.constant dense<0xFF800000> : vector<2xf32>
    %592 = vector.multi_reduction <maximumf>, %591, %cst_202 [1] : vector<2x16xf32> to vector<2xf32>
    %593 = vector.shape_cast %592 : vector<2xf32> to vector<2x1xf32>
    %594 = vector.broadcast %593 : vector<2x1xf32> to vector<2x16xf32>
    %595 = arith.subf %591, %594 : vector<2x16xf32>
    %596 = math.exp %595 : vector<2x16xf32>
    %cst_203 = arith.constant dense<0.000000e+00> : vector<2xf32>
    %597 = vector.multi_reduction <add>, %596, %cst_203 [1] : vector<2x16xf32> to vector<2xf32>
    %598 = vector.shape_cast %597 : vector<2xf32> to vector<2x1xf32>
    %599 = tpu.reciprocal %598 : vector<2x1xf32> -> vector<2x1xf32>
    %600 = vector.broadcast %599 : vector<2x1xf32> to vector<2x16xf32>
    %601 = arith.mulf %596, %600 : vector<2x16xf32>
    %602 = vector.shape_cast %601 : vector<2x16xf32> to vector<2x16x1xf32>
    %603 = vector.broadcast %602 : vector<2x16x1xf32> to vector<2x16x32xf32>
    %604 = arith.mulf %0, %603 : vector<2x16x32xf32>
    %cst_204 = arith.constant dense<0.000000e+00> : vector<2x32xf32>
    %605 = vector.multi_reduction <add>, %604, %cst_204 [1] : vector<2x16x32xf32> to vector<2x32xf32>
    %606 = arith.mulf %582, %605 : vector<2x32xf32>
    %607 = arith.index_cast %566 : i32 to index
    %c0_205 = arith.constant 0 : index
    %c0_206 = arith.constant 0 : index
    %608 = vector.load %arg2[%607, %c0_205, %c0_206] : memref<7x2x16xf32, #tpu.memory_space<vmem>>, vector<1x2x16xf32>
    %609 = vector.shape_cast %608 : vector<1x2x16xf32> to vector<2x16xf32>
    %610 = tpu.transpose %30, [1, 0] : vector<128x16xf32> -> vector<16x128xf32>
    %cst_207 = arith.constant dense<0.000000e+00> : vector<2x128xf32>
    %611 = tpu.matmul %609, %610, %cst_207 {dimension_numbers = #tpu.dot_dimension_numbers<[1], [0], [0], [1], [0, 0, 1, 1], [], []>} : vector<2x16xf32>, vector<16x128xf32>, vector<2x128xf32> -> vector<2x128xf32>
    %612 = tpu.transpose %31, [1, 0] : vector<128x32xf32> -> vector<32x128xf32>
    %cst_208 = arith.constant dense<0.000000e+00> : vector<2x128xf32>
    %613 = tpu.matmul %606, %612, %cst_208 {dimension_numbers = #tpu.dot_dimension_numbers<[1], [0], [0], [1], [0, 0, 1, 1], [], []>} : vector<2x32xf32>, vector<32x128xf32>, vector<2x128xf32> -> vector<2x128xf32>
    %614 = arith.addf %611, %613 : vector<2x128xf32>
    %615 = vector.broadcast %32 : vector<1x128xf32> to vector<2x128xf32>
    %616 = arith.addf %614, %615 : vector<2x128xf32>
    %617 = arith.addf %616, %575 : vector<2x128xf32>
    %618 = vector.extract_strided_slice %617 {offsets = [0, 0], sizes = [2, 32], strides = [1, 1]} : vector<2x128xf32> to vector<2x32xf32>
    %619 = arith.negf %618 : vector<2x32xf32>
    %620 = math.exp %619 : vector<2x32xf32>
    %cst_209 = arith.constant 1.000000e+00 : f32
    %621 = vector.broadcast %cst_209 : f32 to vector<2x32xf32>
    %622 = arith.addf %621, %620 : vector<2x32xf32>
    %623 = arith.divf %621, %622 : vector<2x32xf32>
    %624 = vector.extract_strided_slice %617 {offsets = [0, 32], sizes = [2, 32], strides = [1, 1]} : vector<2x128xf32> to vector<2x32xf32>
    %625 = arith.negf %624 : vector<2x32xf32>
    %626 = math.exp %625 : vector<2x32xf32>
    %cst_210 = arith.constant 1.000000e+00 : f32
    %627 = vector.broadcast %cst_210 : f32 to vector<2x32xf32>
    %628 = arith.addf %627, %626 : vector<2x32xf32>
    %629 = arith.divf %627, %628 : vector<2x32xf32>
    %630 = vector.extract_strided_slice %617 {offsets = [0, 64], sizes = [2, 32], strides = [1, 1]} : vector<2x128xf32> to vector<2x32xf32>
    %631 = math.tanh %630 : vector<2x32xf32>
    %632 = vector.extract_strided_slice %617 {offsets = [0, 96], sizes = [2, 32], strides = [1, 1]} : vector<2x128xf32> to vector<2x32xf32>
    %633 = arith.negf %632 : vector<2x32xf32>
    %634 = math.exp %633 : vector<2x32xf32>
    %cst_211 = arith.constant 1.000000e+00 : f32
    %635 = vector.broadcast %cst_211 : f32 to vector<2x32xf32>
    %636 = arith.addf %635, %634 : vector<2x32xf32>
    %637 = arith.divf %635, %636 : vector<2x32xf32>
    %638 = arith.mulf %629, %568 : vector<2x32xf32>
    %639 = arith.mulf %623, %631 : vector<2x32xf32>
    %640 = arith.addf %638, %639 : vector<2x32xf32>
    %641 = math.tanh %640 : vector<2x32xf32>
    %642 = arith.mulf %637, %641 : vector<2x32xf32>
    %643 = tpu.transpose %33, [1, 0] : vector<128x32xf32> -> vector<32x128xf32>
    %cst_212 = arith.constant dense<0.000000e+00> : vector<2x128xf32>
    %644 = tpu.matmul %642, %643, %cst_212 {dimension_numbers = #tpu.dot_dimension_numbers<[1], [0], [0], [1], [0, 0, 1, 1], [], []>} : vector<2x32xf32>, vector<32x128xf32>, vector<2x128xf32> -> vector<2x128xf32>
    %645 = vector.broadcast %34 : vector<1x128xf32> to vector<2x128xf32>
    %646 = arith.addf %644, %645 : vector<2x128xf32>
    %647 = vector.shape_cast %570 : vector<2x1xi1> to vector<2x1xi1>
    %648 = vector.broadcast %647 : vector<2x1xi1> to vector<2x32xi1>
    %649 = arith.select %648, %642, %567 : vector<2x32xi1>, vector<2x32xf32>
    %c0_213 = arith.constant 0 : index
    %c0_214 = arith.constant 0 : index
    %650 = vector.load %arg18[%c0_213, %c0_214] : memref<2x32xf32, #tpu.memory_space<vmem>>, vector<2x32xf32>
    tpu.vector_store %arg18[%c0_213, %c0_214], %649 {strides = array<i32>} : memref<2x32xf32, #tpu.memory_space<vmem>>, vector<2x32xf32>,
    %651 = vector.shape_cast %570 : vector<2x1xi1> to vector<2x1xi1>
    %652 = vector.broadcast %651 : vector<2x1xi1> to vector<2x32xi1>
    %653 = arith.select %652, %640, %568 : vector<2x32xi1>, vector<2x32xf32>
    %c0_215 = arith.constant 0 : index
    %c0_216 = arith.constant 0 : index
    %654 = vector.load %arg19[%c0_215, %c0_216] : memref<2x32xf32, #tpu.memory_space<vmem>>, vector<2x32xf32>
    tpu.vector_store %arg19[%c0_215, %c0_216], %653 {strides = array<i32>} : memref<2x32xf32, #tpu.memory_space<vmem>>, vector<2x32xf32>,
    %cst_217 = arith.constant 0.000000e+00 : f32
    %655 = vector.shape_cast %570 : vector<2x1xi1> to vector<2x1xi1>
    %656 = vector.broadcast %655 : vector<2x1xi1> to vector<2x128xi1>
    %657 = vector.broadcast %cst_217 : f32 to vector<2x128xf32>
    %658 = arith.select %656, %646, %657 : vector<2x128xi1>, vector<2x128xf32>
    %659 = arith.index_cast %566 : i32 to index
    %c0_218 = arith.constant 0 : index
    %c0_219 = arith.constant 0 : index
    %660 = vector.load %arg16[%659, %c0_218, %c0_219] : memref<7x2x128xf32, #tpu.memory_space<vmem>>, vector<1x2x128xf32>
    %661 = vector.shape_cast %660 : vector<1x2x128xf32> to vector<2x128xf32>
    %662 = vector.shape_cast %658 : vector<2x128xf32> to vector<1x2x128xf32>
    tpu.vector_store %arg16[%659, %c0_218, %c0_219], %662 {strides = array<i32>} : memref<7x2x128xf32, #tpu.memory_space<vmem>>, vector<1x2x128xf32>,
    %cst_220 = arith.constant 0.000000e+00 : f32
    %663 = vector.shape_cast %570 : vector<2x1xi1> to vector<2x1xi1>
    %664 = vector.broadcast %663 : vector<2x1xi1> to vector<2x16xi1>
    %665 = vector.broadcast %cst_220 : f32 to vector<2x16xf32>
    %666 = arith.select %664, %601, %665 : vector<2x16xi1>, vector<2x16xf32>
    %667 = arith.index_cast %566 : i32 to index
    %c0_221 = arith.constant 0 : index
    %c0_222 = arith.constant 0 : index
    %668 = vector.load %arg17[%667, %c0_221, %c0_222] : memref<7x2x16xf32, #tpu.memory_space<vmem>>, vector<1x2x16xf32>
    %669 = vector.shape_cast %668 : vector<1x2x16xf32> to vector<2x16xf32>
    %670 = vector.shape_cast %666 : vector<2x16xf32> to vector<1x2x16xf32>
    tpu.vector_store %arg17[%667, %c0_221, %c0_222], %670 {strides = array<i32>} : memref<7x2x16xf32, #tpu.memory_space<vmem>>, vector<1x2x16xf32>,
    %c6_i32 = arith.constant 6 : i32
    %c1_i32_223 = arith.constant 1 : i32
    %671 = arith.muli %c6_i32, %c1_i32_223 : i32
    %c0_i32_224 = arith.constant 0 : i32
    %672 = arith.addi %c0_i32_224, %671 : i32
    %c0_225 = arith.constant 0 : index
    %c0_226 = arith.constant 0 : index
    %673 = vector.load %arg18[%c0_225, %c0_226] : memref<2x32xf32, #tpu.memory_space<vmem>>, vector<2x32xf32>
    %c0_227 = arith.constant 0 : index
    %c0_228 = arith.constant 0 : index
    %674 = vector.load %arg19[%c0_227, %c0_228] : memref<2x32xf32, #tpu.memory_space<vmem>>, vector<2x32xf32>
    %675 = vector.broadcast %672 : i32 to vector<2x1xi32>
    %676 = arith.cmpi sgt, %22, %675 : vector<2x1xi32>
    %677 = tpu.transpose %28, [1, 0] : vector<192x32xf32> -> vector<32x192xf32>
    %cst_229 = arith.constant dense<0.000000e+00> : vector<2x192xf32>
    %678 = tpu.matmul %673, %677, %cst_229 {dimension_numbers = #tpu.dot_dimension_numbers<[1], [0], [0], [1], [0, 0, 1, 1], [], []>} : vector<2x32xf32>, vector<32x192xf32>, vector<2x192xf32> -> vector<2x192xf32>
    %679 = vector.broadcast %29 : vector<1x192xf32> to vector<2x192xf32>
    %680 = arith.addf %678, %679 : vector<2x192xf32>
    %681 = vector.extract_strided_slice %680 {offsets = [0, 0], sizes = [2, 128], strides = [1, 1]} : vector<2x192xf32> to vector<2x128xf32>
    %682 = vector.extract_strided_slice %680 {offsets = [0, 128], sizes = [2, 32], strides = [1, 1]} : vector<2x192xf32> to vector<2x32xf32>
    %683 = vector.extract_strided_slice %680 {offsets = [0, 160], sizes = [2, 32], strides = [1, 1]} : vector<2x192xf32> to vector<2x32xf32>
    %684 = arith.negf %683 : vector<2x32xf32>
    %685 = math.exp %684 : vector<2x32xf32>
    %cst_230 = arith.constant 1.000000e+00 : f32
    %686 = vector.broadcast %cst_230 : f32 to vector<2x32xf32>
    %687 = arith.addf %686, %685 : vector<2x32xf32>
    %688 = arith.divf %686, %687 : vector<2x32xf32>
    %689 = vector.shape_cast %682 : vector<2x32xf32> to vector<2x1x32xf32>
    %690 = vector.broadcast %689 : vector<2x1x32xf32> to vector<2x16x32xf32>
    %691 = arith.addf %8, %690 : vector<2x16x32xf32>
    %cst_231 = arith.constant 0.000000e+00 : f32
    %692 = vector.broadcast %cst_231 : f32 to vector<2x16x32xf32>
    %693 = arith.maximumf %691, %692 : vector<2x16x32xf32>
    %694 = arith.mulf %693, %26 : vector<2x16x32xf32>
    %cst_232 = arith.constant dense<0.000000e+00> : vector<2x16xf32>
    %695 = vector.multi_reduction <add>, %694, %cst_232 [2] : vector<2x16x32xf32> to vector<2x16xf32>
    %696 = vector.broadcast %27 : vector<1x1xf32> to vector<2x16xf32>
    %697 = arith.addf %695, %696 : vector<2x16xf32>
    %cst_233 = arith.constant dense<0xFF800000> : vector<2xf32>
    %698 = vector.multi_reduction <maximumf>, %697, %cst_233 [1] : vector<2x16xf32> to vector<2xf32>
    %699 = vector.shape_cast %698 : vector<2xf32> to vector<2x1xf32>
    %700 = vector.broadcast %699 : vector<2x1xf32> to vector<2x16xf32>
    %701 = arith.subf %697, %700 : vector<2x16xf32>
    %702 = math.exp %701 : vector<2x16xf32>
    %cst_234 = arith.constant dense<0.000000e+00> : vector<2xf32>
    %703 = vector.multi_reduction <add>, %702, %cst_234 [1] : vector<2x16xf32> to vector<2xf32>
    %704 = vector.shape_cast %703 : vector<2xf32> to vector<2x1xf32>
    %705 = tpu.reciprocal %704 : vector<2x1xf32> -> vector<2x1xf32>
    %706 = vector.broadcast %705 : vector<2x1xf32> to vector<2x16xf32>
    %707 = arith.mulf %702, %706 : vector<2x16xf32>
    %708 = vector.shape_cast %707 : vector<2x16xf32> to vector<2x16x1xf32>
    %709 = vector.broadcast %708 : vector<2x16x1xf32> to vector<2x16x32xf32>
    %710 = arith.mulf %0, %709 : vector<2x16x32xf32>
    %cst_235 = arith.constant dense<0.000000e+00> : vector<2x32xf32>
    %711 = vector.multi_reduction <add>, %710, %cst_235 [1] : vector<2x16x32xf32> to vector<2x32xf32>
    %712 = arith.mulf %688, %711 : vector<2x32xf32>
    %713 = arith.index_cast %672 : i32 to index
    %c0_236 = arith.constant 0 : index
    %c0_237 = arith.constant 0 : index
    %714 = vector.load %arg2[%713, %c0_236, %c0_237] : memref<7x2x16xf32, #tpu.memory_space<vmem>>, vector<1x2x16xf32>
    %715 = vector.shape_cast %714 : vector<1x2x16xf32> to vector<2x16xf32>
    %716 = tpu.transpose %30, [1, 0] : vector<128x16xf32> -> vector<16x128xf32>
    %cst_238 = arith.constant dense<0.000000e+00> : vector<2x128xf32>
    %717 = tpu.matmul %715, %716, %cst_238 {dimension_numbers = #tpu.dot_dimension_numbers<[1], [0], [0], [1], [0, 0, 1, 1], [], []>} : vector<2x16xf32>, vector<16x128xf32>, vector<2x128xf32> -> vector<2x128xf32>
    %718 = tpu.transpose %31, [1, 0] : vector<128x32xf32> -> vector<32x128xf32>
    %cst_239 = arith.constant dense<0.000000e+00> : vector<2x128xf32>
    %719 = tpu.matmul %712, %718, %cst_239 {dimension_numbers = #tpu.dot_dimension_numbers<[1], [0], [0], [1], [0, 0, 1, 1], [], []>} : vector<2x32xf32>, vector<32x128xf32>, vector<2x128xf32> -> vector<2x128xf32>
    %720 = arith.addf %717, %719 : vector<2x128xf32>
    %721 = vector.broadcast %32 : vector<1x128xf32> to vector<2x128xf32>
    %722 = arith.addf %720, %721 : vector<2x128xf32>
    %723 = arith.addf %722, %681 : vector<2x128xf32>
    %724 = vector.extract_strided_slice %723 {offsets = [0, 0], sizes = [2, 32], strides = [1, 1]} : vector<2x128xf32> to vector<2x32xf32>
    %725 = arith.negf %724 : vector<2x32xf32>
    %726 = math.exp %725 : vector<2x32xf32>
    %cst_240 = arith.constant 1.000000e+00 : f32
    %727 = vector.broadcast %cst_240 : f32 to vector<2x32xf32>
    %728 = arith.addf %727, %726 : vector<2x32xf32>
    %729 = arith.divf %727, %728 : vector<2x32xf32>
    %730 = vector.extract_strided_slice %723 {offsets = [0, 32], sizes = [2, 32], strides = [1, 1]} : vector<2x128xf32> to vector<2x32xf32>
    %731 = arith.negf %730 : vector<2x32xf32>
    %732 = math.exp %731 : vector<2x32xf32>
    %cst_241 = arith.constant 1.000000e+00 : f32
    %733 = vector.broadcast %cst_241 : f32 to vector<2x32xf32>
    %734 = arith.addf %733, %732 : vector<2x32xf32>
    %735 = arith.divf %733, %734 : vector<2x32xf32>
    %736 = vector.extract_strided_slice %723 {offsets = [0, 64], sizes = [2, 32], strides = [1, 1]} : vector<2x128xf32> to vector<2x32xf32>
    %737 = math.tanh %736 : vector<2x32xf32>
    %738 = vector.extract_strided_slice %723 {offsets = [0, 96], sizes = [2, 32], strides = [1, 1]} : vector<2x128xf32> to vector<2x32xf32>
    %739 = arith.negf %738 : vector<2x32xf32>
    %740 = math.exp %739 : vector<2x32xf32>
    %cst_242 = arith.constant 1.000000e+00 : f32
    %741 = vector.broadcast %cst_242 : f32 to vector<2x32xf32>
    %742 = arith.addf %741, %740 : vector<2x32xf32>
    %743 = arith.divf %741, %742 : vector<2x32xf32>
    %744 = arith.mulf %735, %674 : vector<2x32xf32>
    %745 = arith.mulf %729, %737 : vector<2x32xf32>
    %746 = arith.addf %744, %745 : vector<2x32xf32>
    %747 = math.tanh %746 : vector<2x32xf32>
    %748 = arith.mulf %743, %747 : vector<2x32xf32>
    %749 = tpu.transpose %33, [1, 0] : vector<128x32xf32> -> vector<32x128xf32>
    %cst_243 = arith.constant dense<0.000000e+00> : vector<2x128xf32>
    %750 = tpu.matmul %748, %749, %cst_243 {dimension_numbers = #tpu.dot_dimension_numbers<[1], [0], [0], [1], [0, 0, 1, 1], [], []>} : vector<2x32xf32>, vector<32x128xf32>, vector<2x128xf32> -> vector<2x128xf32>
    %751 = vector.broadcast %34 : vector<1x128xf32> to vector<2x128xf32>
    %752 = arith.addf %750, %751 : vector<2x128xf32>
    %753 = vector.shape_cast %676 : vector<2x1xi1> to vector<2x1xi1>
    %754 = vector.broadcast %753 : vector<2x1xi1> to vector<2x32xi1>
    %755 = arith.select %754, %748, %673 : vector<2x32xi1>, vector<2x32xf32>
    %c0_244 = arith.constant 0 : index
    %c0_245 = arith.constant 0 : index
    %756 = vector.load %arg18[%c0_244, %c0_245] : memref<2x32xf32, #tpu.memory_space<vmem>>, vector<2x32xf32>
    tpu.vector_store %arg18[%c0_244, %c0_245], %755 {strides = array<i32>} : memref<2x32xf32, #tpu.memory_space<vmem>>, vector<2x32xf32>,
    %757 = vector.shape_cast %676 : vector<2x1xi1> to vector<2x1xi1>
    %758 = vector.broadcast %757 : vector<2x1xi1> to vector<2x32xi1>
    %759 = arith.select %758, %746, %674 : vector<2x32xi1>, vector<2x32xf32>
    %c0_246 = arith.constant 0 : index
    %c0_247 = arith.constant 0 : index
    %760 = vector.load %arg19[%c0_246, %c0_247] : memref<2x32xf32, #tpu.memory_space<vmem>>, vector<2x32xf32>
    tpu.vector_store %arg19[%c0_246, %c0_247], %759 {strides = array<i32>} : memref<2x32xf32, #tpu.memory_space<vmem>>, vector<2x32xf32>,
    %cst_248 = arith.constant 0.000000e+00 : f32
    %761 = vector.shape_cast %676 : vector<2x1xi1> to vector<2x1xi1>
    %762 = vector.broadcast %761 : vector<2x1xi1> to vector<2x128xi1>
    %763 = vector.broadcast %cst_248 : f32 to vector<2x128xf32>
    %764 = arith.select %762, %752, %763 : vector<2x128xi1>, vector<2x128xf32>
    %765 = arith.index_cast %672 : i32 to index
    %c0_249 = arith.constant 0 : index
    %c0_250 = arith.constant 0 : index
    %766 = vector.load %arg16[%765, %c0_249, %c0_250] : memref<7x2x128xf32, #tpu.memory_space<vmem>>, vector<1x2x128xf32>
    %767 = vector.shape_cast %766 : vector<1x2x128xf32> to vector<2x128xf32>
    %768 = vector.shape_cast %764 : vector<2x128xf32> to vector<1x2x128xf32>
    tpu.vector_store %arg16[%765, %c0_249, %c0_250], %768 {strides = array<i32>} : memref<7x2x128xf32, #tpu.memory_space<vmem>>, vector<1x2x128xf32>,
    %cst_251 = arith.constant 0.000000e+00 : f32
    %769 = vector.shape_cast %676 : vector<2x1xi1> to vector<2x1xi1>
    %770 = vector.broadcast %769 : vector<2x1xi1> to vector<2x16xi1>
    %771 = vector.broadcast %cst_251 : f32 to vector<2x16xf32>
    %772 = arith.select %770, %707, %771 : vector<2x16xi1>, vector<2x16xf32>
    %773 = arith.index_cast %672 : i32 to index
    %c0_252 = arith.constant 0 : index
    %c0_253 = arith.constant 0 : index
    %774 = vector.load %arg17[%773, %c0_252, %c0_253] : memref<7x2x16xf32, #tpu.memory_space<vmem>>, vector<1x2x16xf32>
    %775 = vector.shape_cast %774 : vector<1x2x16xf32> to vector<2x16xf32>
    %776 = vector.shape_cast %772 : vector<2x16xf32> to vector<1x2x16xf32>
    tpu.vector_store %arg17[%773, %c0_252, %c0_253], %776 {strides = array<i32>} : memref<7x2x16xf32, #tpu.memory_space<vmem>>, vector<1x2x16xf32>,
    %c7_i32 = arith.constant 7 : i32
    return
  }
}

</mosaic_0001>

<bundles_post_ra>
// kernel: decoder_forward.1
= control target key start
LH: loop header
LB: loop body
LE: loop exit
PB: predicated region body
PF: predicated region fallthrough
CT: control target
= control target key end

     0   :  { %s10512_s0 = inlined_call_operand.vmem [shape: s32[2,1], index: 0, kind: input, shape index: {}]   ;;  %s10513_s1 = inlined_call_operand.vmem [shape: f32[2,16,32], index: 1, kind: input, shape index: {}]   ;;  %s10514_s2 = inlined_call_operand.vmem [shape: f32[7,2,16], index: 2, kind: input, shape index: {}]   ;;  %s10515_s3 = inlined_call_operand.vmem [shape: f32[32,32], index: 3, kind: input, shape index: {}]   ;;  %s10516_s4 = inlined_call_operand.vmem [shape: f32[1,32], index: 4, kind: input, shape index: {}]   ;;  %s10517_s5 = inlined_call_operand.vmem [shape: f32[1,32], index: 5, kind: input, shape index: {}]   ;;  %s10518_s6 = inlined_call_operand.<no memory space> [shape: f32[1,1], index: 6, kind: input, shape index: {}]   ;;  %s10519_s7 = inlined_call_operand.vmem [shape: f32[64,32], index: 7, kind: input, shape index: {}]   ;;  %s10520_s8 = inlined_call_operand.vmem [shape: f32[1,64], index: 8, kind: input, shape index: {}]   ;;  %s10521_s9 = inlined_call_operand.vmem [shape: f32[192,32], index: 9, kind: input, shape index: {}]   ;;  %s10522_s10 = inlined_call_operand.vmem [shape: f32[1,192], index: 10, kind: input, shape index: {}]   ;;  %s10523_s11 = inlined_call_operand.vmem [shape: f32[128,16], index: 11, kind: input, shape index: {}]   ;;  %s10524_s12 = inlined_call_operand.vmem [shape: f32[128,32], index: 12, kind: input, shape index: {}]   ;;  %s10525_s13 = inlined_call_operand.vmem [shape: f32[1,128], index: 13, kind: input, shape index: {}]   ;;  %s10526_s14 = inlined_call_operand.vmem [shape: f32[128,32], index: 14, kind: input, shape index: {}]   ;;  %s10527_s15 = inlined_call_operand.vmem [shape: f32[1,128], index: 15, kind: input, shape index: {}]   ;;  %s10528_s16 = inlined_call_operand.hbm [shape: f32[7,2,128], index: 16, kind: output, shape index: {0}]   ;;  %s10529_s17 = inlined_call_operand.hbm [shape: f32[7,2,16], index: 17, kind: output, shape index: {1}]  }
   0x1   :  { %10607 = sst [smem:[#allocation38_spill]] %s10512_s0  ;;  %v23_v0 = vstv %s10518_s6 }
   0x2   :  { %10608 = sst [smem:[#allocation39_spill]] %s10513_s1  ;;  %24 = vst [vmem:[#allocation4] sm:$0x1] %v23_v0 }
   0x3   :  { %25 = vsyncpa [#allocation6], 0  ;;  %vm74_vm0 = vcmask 261120   ;;  %v205_v1 = vld [vmem:[%s10519_s7] sm:$0xff]  ;;  %v206_v2 = vld [vmem:[%s10519_s7 + $0x8] sm:$0xff]  ;;  %v10536_v3 = vmov 0.0|0.0  }
   0x4   :  { %6616 = vmatprep.subr.bf16.mxu1 %v10536_v3  ;;  %vm7991_vm1 = vmpackc.low %vm74_vm0, %vm74_vm0  ;;  %v6617_v5 = vpack.c.bf16 %v206_v2, %v205_v1  ;;  %v207_v6 = vld [vmem:[%s10519_s7 + $0x10] sm:$0xff]  ;;  %v208_v7 = vld [vmem:[%s10519_s7 + $0x18] sm:$0xff]  ;;  %vm7879_vm2 = vmmov 0   ;;  %v10534_v8 = vmov 0.0   ;;  %s10611_s20 = sld [smem:[#allocation39_spill]] }
   0x5   :  { %5866 = vmatprep.mubr.msk.f32.mxu1 %vm7879_vm2, %v10534_v8  ;;  %v63_v16 = vld [vmem:[%s10515_s3] sm:$0xff]  ;;  %v64_v17 = vld [vmem:[%s10515_s3 + $0x8] sm:$0xff]  ;;  %v65_v21 = vld [vmem:[%s10515_s3 + $0x10] sm:$0xff]  ;;  %v6621_v25 = vpack.c.bf16 %v208_v7, %v207_v6 }
   0x6   :  { %6619 = vmatpush3.bf16.xpose.msk.msra.mxu1 %vm7991_vm1, %v6617_v5  ;;  %v6604_v20 = vpack.c.bf16 %v64_v17, %v63_v16  ;;  %v66_v22 = vld [vmem:[%s10515_s3 + $0x18] sm:$0xff]  ;;  %v209_v31 = vld [vmem:[%s10519_s7 + $0x20] sm:$0xff]  ;;  %v210_v32 = vld [vmem:[%s10519_s7 + $0x28] sm:$0xff] }
   0x7   :  { %6620 = vmatprep.subr.bf16.mxu1 %v10536_v3  ;;  %v6610_v24 = vpack.c.bf16 %v66_v22, %v65_v21 }
   0x8   :  { %6606 = vmatprep.subr.msk.bf16.mxu0 %vm7991_vm1, %v6604_v20 }
   0x9   :  { %6609 = vmatpush3.bf16.xpose.msk.msra.mxu0 %vm7991_vm1, %v6604_v20 }
   0xa   :  { %v8008_v9 = vld [vmem:[%s10611_s20] sm:$0xff]  ;;  %v8013_v10 = vld [vmem:[%s10611_s20 + $0x8] sm:$0xff]  ;;  %v8018_v11 = vld [vmem:[%s10611_s20 + $0x10] sm:$0xff]  ;;  %6612 = vmatprep.subr.msk.bf16.mxu0 %vm7991_vm1, %v6610_v24 }
   0xb   :  { %v8024_v12 = vld [vmem:[%s10611_s20 + $0x18] sm:$0xff]  ;;  %v184_v13 = vsel %vm74_vm0, %v8008_v9, 0.0  ;;  %v185_v14 = vsel %vm74_vm0, %v8013_v10, 0.0  ;;  %v193_v15 = vsel %vm74_vm0, %v8018_v11, 0.0  ;;  %5844 = vmatprep.mubr.msk.f32.mxu0 %vm74_vm0, %v8008_v9 }
   0xc   :  { %v186_v18 = vadd.f32 %v185_v14, %v184_v13  ;;  %v194_v19 = vsel %vm74_vm0, %v8024_v12, 0.0 }
   0xd   :  { %v195_v23 = vadd.f32 %v194_v19, %v193_v15 }
   0xe   :  { %v187_v26 = vrot.slane %v186_v18, 4  ;;  %6623 = vmatpush3.bf16.xpose.msk.msra.mxu1 %vm7991_vm1, %v6621_v25 }
   0xf   :  { %v196_v27 = vrot.slane %v195_v23, 4  ;;  %6624 = vmatprep.subr.bf16.mxu1 %v10536_v3 }
  0x10   :  { %v188_v28 = vadd.f32 %v187_v26, %v186_v18 }
  0x11   :  { %v197_v29 = vadd.f32 %v196_v27, %v195_v23 }
  0x12   :  { %v189_v30 = vrot.slane %v188_v28, 2 }
  0x13   :  { %v198_v33 = vrot.slane %v197_v29, 2 }
  0x14   :  { %26 = vsyncpa [#allocation8], 0  ;;  %v6625_v34 = vpack.c.bf16 %v210_v32, %v209_v31  ;;  %v190_v35 = vadd.f32 %v189_v30, %v188_v28  ;;  %6615 = vmatpush3.bf16.xpose.msk.msra.mxu0 %vm7991_vm1, %v6610_v24  ;;  %v336_v37 = vld [vmem:[%s10521_s9] sm:$0xff]  ;;  %v337_v38 = vld [vmem:[%s10521_s9 + $0x8] sm:$0xff]  ;;  %vm222_vm3 = vcmask 1041409   ;;  %vm320_vm4 = vcmask 254976  }
  0x15   :  { %v199_v36 = vadd.f32 %v198_v33, %v197_v29  ;;  %6632 = vmatprep.subr.bf16.mxu0 %v10536_v3  ;;  %v211_v41 = vld [vmem:[%s10519_s7 + $0x30] sm:$0xff]  ;;  %v212_v42 = vld [vmem:[%s10519_s7 + $0x38] sm:$0xff]  ;;  %v8081_v43 = vpack.c.bf16 %v337_v38, %v336_v37  ;;  %v340_v53 = vld [vmem:[%s10521_s9 + $0x20] sm:$0xff]  ;;  %v7882_v38 = vmov 1966171168   ;;  %vm662_vm5 = vcmask 130112  }
  0x16   :  { %6627 = vmatpush3.bf16.xpose.msk.msra.mxu1 %vm7991_vm1, %v6625_v34  ;;  %v191_v39 = vrot.slane %v190_v35, 1  ;;  %v6629_v44 = vpack.c.bf16 %v212_v42, %v211_v41  ;;  %v338_v47 = vld [vmem:[%s10521_s9 + $0x10] sm:$0xff]  ;;  %v339_v48 = vld [vmem:[%s10521_s9 + $0x18] sm:$0xff]  ;;  %v341_v54 = vld [vmem:[%s10521_s9 + $0x28] sm:$0xff]  ;;  %vm675_vm6 = vcmask 123904   ;;  %s7883_s3 = smov 32  }
  0x17   :  { %v200_v40 = vrot.slane %v199_v36, 1  ;;  %6628 = vmatprep.subr.bf16.mxu1 %v10536_v3  ;;  %v8101_v51 = vpack.c.bf16 %v339_v48, %v338_v47  ;;  %v8119_v55 = vpack.c.bf16 %v341_v54, %v340_v53  ;;  %v342_v56 = vld [vmem:[%s10521_s9 + $0x30] sm:$0xff]  ;;  %v343_v57 = vld [vmem:[%s10521_s9 + $0x38] sm:$0xff]  ;;  %v344_v59 = vld [vmem:[%s10521_s9 + $0x40] sm:$0xff]  ;;  %s7884_s24 = smov 96   ;;  %vm930_vm7 = vcmask 130048  }
  0x18   :  { %v192_v45 = vadd.f32 %v191_v39, %v190_v35  ;;  %v8131_v58 = vpack.c.bf16 %v343_v57, %v342_v56  ;;  %v345_v60 = vld [vmem:[%s10521_s9 + $0x48] sm:$0xff]  ;;  %v346_v62 = vld [vmem:[%s10521_s9 + $0x50] sm:$0xff]  ;;  %v347_v63 = vld [vmem:[%s10521_s9 + $0x58] sm:$0xff]  ;;  %v10532_v35 = vmov 0   ;;  %v579_v39 = vunpack.c.l.s4 %v7882_v38  ;;  %s7885_s19 = smov 64   ;;  %s10628_s22 = sld [smem:[#allocation38_spill]] }
  0x19   :  { %v201_v46 = vadd.f32 %v200_v40, %v199_v36  ;;  %v8143_v61 = vpack.c.bf16 %v345_v60, %v344_v59  ;;  %v8155_v0 = vpack.c.bf16 %v347_v63, %v346_v62  ;;  %v348_v1 = vld [vmem:[%s10521_s9 + $0x60] sm:$0xff]  ;;  %v349_v2 = vld [vmem:[%s10521_s9 + $0x68] sm:$0xff]  ;;  %v350_v6 = vld [vmem:[%s10521_s9 + $0x70] sm:$0xff]  ;;  %7651 = vset.pattern.permute.xlu0 %v10532_v35  ;;  %7652 = vset.pattern.permute.xlu1 %v10532_v35  ;;  %v415_v36 = vlaneseq }
  0x1a   :  { %v203_v49 = vmul.f32 0.0625, %v192_v45  ;;  %v8167_v5 = vpack.c.bf16 %v349_v2, %v348_v1  ;;  %v351_v7 = vld [vmem:[%s10521_s9 + $0x78] sm:$0xff]  ;;  %v352_v14 = vld [vmem:[%s10521_s9 + $0x80] sm:$0xff]  ;;  %v353_v15 = vld [vmem:[%s10521_s9 + $0x88] sm:$0xff]  ;;  %v580_v42 = vunpack.c.0.s8 %v579_v39 }
  0x1b   :  { %5845 = vmatmul.mubr.msk.f32.vlgmr.msra.gmra.mrb[0].mxu0 %vm74_vm0, %v8013_v10  ;;  %v204_v50 = vmul.f32 0.0625, %v201_v46  ;;  %v8179_v13 = vpack.c.bf16 %v351_v7, %v350_v6  ;;  %v8191_v16 = vpack.c.bf16 %v353_v15, %v352_v14  ;;  %v354_v17 = vld [vmem:[%s10521_s9 + $0x90] sm:$0xff]  ;;  %v355_v18 = vld [vmem:[%s10521_s9 + $0x98] sm:$0xff]  ;;  %v356_v20 = vld [vmem:[%s10521_s9 + $0xa0] sm:$0xff]  ;;  %v416_v37 = vshrl.u32 %v415_v36, 7 }
  0x1c   :  { %6635 = vmatpush1.bf16.xpose.msk.msra.mxu0 %vm7991_vm1, %v8081_v43  ;;  %5847 = vmatprep.mubr.msk.f32.mxu0 %vm74_vm0, %v8018_v11  ;;  %v8203_v19 = vpack.c.bf16 %v355_v18, %v354_v17  ;;  %v357_v21 = vld [vmem:[%s10521_s9 + $0xa8] sm:$0xff]  ;;  %v358_v23 = vld [vmem:[%s10521_s9 + $0xb0] sm:$0xff]  ;;  %v359_v24 = vld [vmem:[%s10521_s9 + $0xb8] sm:$0xff]  ;;  %v652_v39 = vand.u32 127, %v415_v36 }
  0x1d   :  { %6636 = vmatprep.subr.bf16.mxu0 %v10536_v3  ;;  %v223_v52 = vsel %vm222_vm3, %v204_v50, %v203_v49  ;;  %v8215_v22 = vpack.c.bf16 %v357_v21, %v356_v20  ;;  %v8227_v25 = vpack.c.bf16 %v359_v24, %v358_v23  ;;  %v4896_v30 = vld [vmem:[%s10520_s8] ss:$0 sm:$0xff]  ;;  %v8248_v40 = vsub.s32 1, %v416_v37  ;;  %vm8464_vm8 = vmpackc.low %vm930_vm7, %vm930_vm7 }
  0x1e   :  { %6631 = vmatpush3.bf16.xpose.msk.msra.mxu1 %vm7991_vm1, %v6629_v44  ;;  %10612 = vst [vmem:[#allocation11_spill] sm:$0xff] %v8203_v19  ;;  %v8253_v41 = vld [vmem:[%s10522_s10] sm:$0x3]  ;;  %v8261_v46 = vsub.s32 %v580_v42, %v416_v37 }
  0x1f   :  { %5848 = vmatmul.mubr.msk.f32.gmra.mrb[2].mxu0 %vm74_vm0, %v8024_v12  ;;  %6680 = vmatprep.subr.bf16.mxu1 %v10536_v3  ;;  %10613 = vst [vmem:[#allocation12_spill] sm:$0xff] %v8215_v22  ;;  %10614 = vst [vmem:[#allocation13_spill] sm:$0xff] %v8227_v25  ;;  %v8257_v44 = vrot.slane %v8253_v41, %v8248_v40  ;;  %v4887_v50 = vld [vmem:[%s10516_s4] ss:$0 sm:$0xff] }
  0x20   :  { %564 = vmatprep.mubr.f32.mxu0 %v10534_v8  ;;  %10615 = vst [vmem:[#allocation14_spill] sm:$0xff] %v8248_v40  ;;  %10617 = vst [vmem:[#allocation16_spill] sm:$0xff] %v8261_v46  ;;  %v8290_v7 = vld [vmem:[%s10517_s5] ss:$0 sm:$0xff] }
  0x21   :  { %10616 = vst [vmem:[#allocation15_spill] sm:$0xff] %v8257_v44 }
  0x24   :  { %6639 = vmatpush1.bf16.xpose.msk.msra.mxu0 %vm7991_vm1, %v8101_v51 }
  0x25   :  { %6640 = vmatprep.subr.bf16.mxu0 %v10536_v3  ;;  %5867 = vmatmul.mubr.msk.f32.vlgmr.msra.gmra.mrb[0].mxu1 %vm74_vm0, %v223_v52  ;;  %v8271_v52 = vsub.s32 0, %v416_v37 }
  0x26   :  { %5901 = vmatprep.mubr.msk.f32.mxu1 %vm7879_vm2, %v10534_v8 }
  0x27   :  { %10618 = vst [vmem:[#allocation17_spill] sm:$0xff] %v8271_v52 }
  0x2c   :  { %6643 = vmatpush1.bf16.xpose.msk.msra.mxu0 %vm7991_vm1, %v8119_v55 }
  0x2d   :  { %6644 = vmatprep.subr.bf16.mxu0 %v10536_v3 }
  0x34   :  { %6647 = vmatpush1.bf16.xpose.msk.msra.mxu0 %vm7991_vm1, %v8131_v58 }
  0x35   :  { %6648 = vmatprep.subr.bf16.mxu0 %v10536_v3 }
  0x3c   :  { %6651 = vmatpush1.bf16.xpose.msk.msra.mxu0 %vm7991_vm1, %v8143_v61 }
  0x3d   :  { %6652 = vmatprep.subr.bf16.mxu0 %v10536_v3 }
  0x44   :  { %6655 = vmatpush1.bf16.xpose.msk.msra.mxu0 %vm7991_vm1, %v8155_v0 }
  0x45   :  { %6656 = vmatprep.subr.bf16.mxu0 %v10536_v3 }
  0x4c   :  { %6659 = vmatpush1.bf16.xpose.msk.msra.mxu0 %vm7991_vm1, %v8167_v5 }
  0x4d   :  { %6660 = vmatprep.subr.bf16.mxu0 %v10536_v3 }
  0x54   :  { %6663 = vmatpush1.bf16.xpose.msk.msra.mxu0 %vm7991_vm1, %v8179_v13 }
  0x55   :  { %6664 = vmatprep.subr.bf16.mxu0 %v10536_v3 }
  0x5c   :  { %6667 = vmatpush1.bf16.xpose.msk.msra.mxu0 %vm7991_vm1, %v8191_v16 }
  0x5d   :  { %6668 = vmatprep.subr.bf16.mxu0 %v10536_v3 }
  0x64   :  { %6671 = vmatpush1.bf16.xpose.msk.msra.mxu0 %vm7991_vm1, %v8203_v19 }
  0x65   :  { %6672 = vmatprep.subr.bf16.mxu0 %v10536_v3 }
  0x6c   :  { %6675 = vmatpush1.bf16.xpose.msk.msra.mxu0 %vm7991_vm1, %v8215_v22 }
  0x6d   :  { %6676 = vmatprep.subr.bf16.mxu0 %v10536_v3 }
  0x74   :  { %6679 = vmatpush1.bf16.xpose.msk.msra.mxu0 %vm7991_vm1, %v8227_v25 }
  0x75   :  { %6744 = vmatprep.subr.bf16.mxu0 %v10536_v3 }
  0xee   :  { %v5846_v26 = vpop.f32.mrb[0].mxu0 }
  0xef   :  { %v165_v27 = vpop.f32.mrb[1].mxu0  ;;  %v8274_v56 = vadd.f32 %v5846_v26, %v4887_v50 }
  0xf0   :  { %v8276_v57 = vadd.f32 %v4887_v50, %v165_v27 }
  0xf1   :  { %10619 = vst [vmem:[#allocation18_spill] sm:$0xff] %v8274_v56 }
  0xf2   :  { %v5849_v28 = vpop.f32.mrb[2].mxu0  ;;  %10620 = vst [vmem:[#allocation19_spill] sm:$0xff] %v8276_v57 }
  0xf3   :  { %v175_v29 = vpop.f32.mrb[3].mxu0  ;;  %v8280_v62 = vadd.f32 %v5849_v28, %v4887_v50 }
  0xf4   :  { %v8282_v63 = vadd.f32 %v4887_v50, %v175_v29  ;;  %v8302_v50 = vsub.s32 %v652_v39, %v416_v37 }
  0xf5   :  { %10621 = vst [vmem:[#allocation20_spill] sm:$0xff] %v8280_v62 }
  0xf6   :  { %10622 = vst [vmem:[#allocation21_spill] sm:$0xff] %v8282_v63 }
  0xf8   :  { %v316_v31 = vpop.f32.mrb[0].mxu1 }
  0xf9   :  { %v8236_v32 = vadd.f32 %v4896_v30, %v316_v31  ;;  %v5868_v33 = vpop.f32.mrb[1].mxu1 }
  0xfa   :  { %v4933_v33 = vld [vmem:[#allocation4] ss:$0 sm:$0xff] }
  0xfb   :  { %321 = vst.msk [vmem:[#allocation2] sm:$0x3] %vm320_vm4, %v8236_v32 }
 0x102   :  { %v8240_v34 = vld [vmem:[#allocation2] sm:$0x3] }
 0x103   :  { %4931 = vmatmul.mubr.msk.f32.vlgmr.msra.gmra.mrb[4].mxu0 %vm74_vm0, %v8240_v34 }
 0x104   :  { %5971 = vmatprep.mubr.msk.f32.mxu0 %vm7879_vm2, %v10534_v8 }
 0x1d6   :  { %v8259_v45 = vpop.f32.mrb[4].mxu0 }
 0x1d7   :  { %v568_v47 = vpop.f32.mrb[5].mxu0 }
 0x1d8   :  { %v8264_v48 = vadd.f32 %v568_v47, %v8257_v44  ;;  %v657_v47 = vadd.s32 4294967288, %v652_v39 }
 0x1da   :  { %v584_v49 = vrot.slane %v8264_v48, %v8261_v46 }
 0x1dc   :  { %v585_v53 = vcombine.high %v584_v49, %v584_v49  ;;  %v592_v54 = vrot.slane %v584_v49, %v8261_v46 }
 0x1de   :  { %v599_v59 = vrot.slane %v585_v53, %v8261_v46  ;;  %v603_v60 = vrot.slane %v592_v54, %v8271_v52  ;;  %v8304_v53 = vsub.s32 %v657_v47, %v416_v37 }
 0x1e0   :  { %v610_v1 = vadd.f32 %v603_v60, %v8276_v57  ;;  %v607_v2 = vrot.slane %v599_v59, %v8271_v52  ;;  %v611_v6 = vadd.f32 %v603_v60, %v8274_v56 }
 0x1e2   :  { %v614_v14 = vmax.f32 %v610_v1, 0.0  ;;  %v612_v15 = vadd.f32 %v607_v2, %v8282_v63  ;;  %v615_v17 = vmax.f32 %v611_v6, 0.0  ;;  %v613_v18 = vadd.f32 %v607_v2, %v8280_v62 }
 0x1e4   :  { %v618_v20 = vmul.f32 %v8290_v7, %v614_v14  ;;  %v616_v21 = vmax.f32 %v612_v15, 0.0  ;;  %v617_v23 = vmax.f32 %v613_v18, 0.0  ;;  %v619_v27 = vmul.f32 %v8290_v7, %v615_v17 }
 0x1e6   :  { %v622_v24 = vsel %vm74_vm0, %v618_v20, 0.0  ;;  %v620_v26 = vmul.f32 %v8290_v7, %v616_v21  ;;  %v621_v29 = vmul.f32 %v8290_v7, %v617_v23  ;;  %v625_v30 = vsel %vm74_vm0, %v619_v27, 0.0 }
 0x1e7   :  { %623 = vadd.xlane.f32.xlu0 %v622_v24 }
 0x1e8   :  { %v628_v28 = vsel %vm74_vm0, %v620_v26, 0.0  ;;  %v631_v31 = vsel %vm74_vm0, %v621_v29, 0.0 }
 0x1e9   :  { %629 = vadd.xlane.f32.xlu1 %v628_v28 }
 0x1eb   :  { %626 = vadd.xlane.f32.xlu0 %v625_v30 }
 0x1ed   :  { %632 = vadd.xlane.f32.xlu1 %v631_v31 }
 0x201   :  { %640 = vperm.xlu0 %7651, %v4933_v33  }
 0x274   :  { %v624_v38 = vpop.xlane.xlu0 %623 }
 0x276   :  { %v630_v42 = vpop.xlane.xlu1 %629 }
 0x278   :  { %v627_v49 = vpop.xlane.xlu0 %626 }
 0x27a   :  { %v633_v54 = vpop.xlane.xlu1 %632 }
 0x280   :  { %v8306_v59 = vpop.permute.xlu0 %640 }
 0x281   :  { %10623 = vst [vmem:[#allocation22_spill] sm:$0xff] %v8306_v59  ;;  %v643_v60 = vadd.f32 %v8306_v59, %v624_v38  ;;  %v644_v1 = vadd.f32 %v8306_v59, %v627_v49  ;;  %v645_v2 = vadd.f32 %v8306_v59, %v630_v42  ;;  %v646_v6 = vadd.f32 %v8306_v59, %v633_v54 }
 0x283   :  { %v656_v36 = vrot.slane %v643_v60, %v8302_v50  ;;  %v661_v14 = vrot.slane %v644_v1, %v8304_v53  ;;  %v667_v15 = vrot.slane %v645_v2, %v8302_v50  ;;  %v671_v37 = vrot.slane %v646_v6, %v8304_v53 }
 0x285   :  { %v663_v17 = vsel %vm662_vm5, %v661_v14, %v656_v36  ;;  %v672_v18 = vsel %vm662_vm5, %v671_v37, %v667_v15 }
 0x286   :  { %v673_v20 = vsel %vm222_vm3, %v672_v18, %v663_v17 }
 0x287   :  { %v676_v21 = vsel %vm675_vm6, %v673_v20, -inf }
 0x288   :  { %677 = vmax.xlane.f32.xlu1 %v676_v21 }
 0x315   :  { %v678_v23 = vpop.xlane.xlu1 %677 }
 0x316   :  { %v683_v24 = vrot.slane %v678_v23, %v8271_v52  ;;  %v687_v26 = vrot.slane %v678_v23, %v8248_v40 }
 0x318   :  { %v690_v27 = vsub.f32 %v643_v60, %v683_v24  ;;  %v691_v28 = vsub.f32 %v644_v1, %v683_v24  ;;  %v692_v30 = vsub.f32 %v645_v2, %v687_v26  ;;  %v693_v33 = vsub.f32 %v646_v6, %v687_v26 }
 0x31a   :  { %v694_v29 = vmul.f32 1.442695, %v690_v27  ;;  %v696_v31 = vmul.f32 1.442695, %v691_v28  ;;  %v698_v38 = vmul.f32 1.442695, %v692_v30 }
 0x31b   :  { %v700_v39 = vmul.f32 1.442695, %v693_v33 }
 0x31c   :  { %7653 = vpow2.f32 %v694_v29 }
 0x31d   :  { %7655 = vpow2.f32 %v696_v31 }
 0x31e   :  { %7657 = vpow2.f32 %v698_v38 }
 0x31f   :  { %7659 = vpow2.f32 %v700_v39 }
 0x326   :  { %v7654_v42 = vpop.eup %7653 }
 0x327   :  { %707 = vperm.xlu1 %7652, %v7654_v42   ;;  %v7656_v47 = vpop.eup %7655 }
 0x328   :  { %v7658_v49 = vpop.eup %7657 }
 0x329   :  { %v7660_v54 = vpop.eup %7659 }
 0x32b   :  { %710 = vperm.xlu1 %7652, %v7656_v47  }
 0x32f   :  { %713 = vperm.xlu1 %7652, %v7658_v49  }
 0x333   :  { %716 = vperm.xlu1 %7652, %v7660_v54  }
 0x3a6   :  { %v708_v60 = vpop.permute.xlu1 %707 }
 0x3a7   :  { %v721_v6 = vrot.slane %v708_v60, %v8302_v50 }
 0x3aa   :  { %v711_v1 = vpop.permute.xlu1 %710 }
 0x3ab   :  { %v725_v2 = vrot.slane %v711_v1, %v8304_v53 }
 0x3ad   :  { %v726_v17 = vsel %vm662_vm5, %v725_v2, %v721_v6 }
 0x3ae   :  { %v714_v36 = vpop.permute.xlu1 %713 }
 0x3af   :  { %v730_v15 = vrot.slane %v714_v36, %v8302_v50 }
 0x3b2   :  { %v717_v14 = vpop.permute.xlu1 %716 }
 0x3b3   :  { %v734_v37 = vrot.slane %v717_v14, %v8304_v53 }
 0x3b5   :  { %v735_v18 = vsel %vm662_vm5, %v734_v37, %v730_v15 }
 0x3b6   :  { %v736_v20 = vsel %vm222_vm3, %v735_v18, %v726_v17 }
 0x3b7   :  { %v738_v21 = vsel %vm675_vm6, %v736_v20, 0.0 }
 0x3b8   :  { %739 = vadd.xlane.f32.xlu1 %v738_v21 }
 0x445   :  { %v740_v23 = vpop.xlane.xlu1 %739 }
 0x446   :  { %7661 = vrcp.f32 %v740_v23 }
 0x450   :  { %v7662_v24 = vpop.eup %7661 }
 0x451   :  { %v746_v26 = vrot.slane %v7662_v24, %v8271_v52  ;;  %v750_v29 = vrot.slane %v7662_v24, %v8248_v40 }
 0x453   :  { %v753_v27 = vmul.f32 %v7654_v42, %v746_v26  ;;  %v754_v28 = vmul.f32 %v7656_v47, %v746_v26  ;;  %v755_v30 = vmul.f32 %v7658_v49, %v750_v29  ;;  %v756_v31 = vmul.f32 %v7660_v54, %v750_v29 }
 0x455   :  { %759 = vperm.xlu0 %7651, %v753_v27  }
 0x459   :  { %764 = vperm.xlu0 %7651, %v754_v28  }
 0x45d   :  { %769 = vperm.xlu0 %7651, %v755_v30   ;;  %v379_v30 = vld [vmem:[%s10524_s12 + $0x10] sm:$0xff] }
 0x461   :  { %774 = vperm.xlu0 %7651, %v756_v31   ;;  %v380_v31 = vld [vmem:[%s10524_s12 + $0x18] sm:$0xff] }
 0x4d4   :  { %v8332_v33 = vpop.permute.xlu0 %759 }
 0x4d5   :  { %v777_v38 = vmul.f32 %v8332_v33, %v8008_v9 }
 0x4d7   :  { %v781_v42 = vsel %vm74_vm0, %v777_v38, 0.0 }
 0x4d8   :  { %v8336_v39 = vpop.permute.xlu0 %764 }
 0x4d9   :  { %v778_v60 = vmul.f32 %v8336_v39, %v8013_v10 }
 0x4db   :  { %v782_v47 = vsel %vm74_vm0, %v778_v60, 0.0  ;;  %v8372_v60 = vpack.c.bf16 %v380_v31, %v379_v30 }
 0x4dc   :  { %v783_v1 = vadd.f32 %v782_v47, %v781_v42  ;;  %v8342_v36 = vpop.permute.xlu0 %769  ;;  %v381_v42 = vld [vmem:[%s10524_s12 + $0x20] sm:$0xff]  ;;  %v382_v47 = vld [vmem:[%s10524_s12 + $0x28] sm:$0xff] }
 0x4dd   :  { %v779_v54 = vmul.f32 %v8342_v36, %v8018_v11  ;;  %v377_v11 = vld [vmem:[%s10524_s12] sm:$0xff] }
 0x4de   :  { %v784_v49 = vrot.slane %v783_v1, 4 }
 0x4df   :  { %v790_v6 = vsel %vm74_vm0, %v779_v54, 0.0  ;;  %v384_v54 = vld [vmem:[%s10524_s12 + $0x38] sm:$0xff] }
 0x4e0   :  { %v785_v2 = vadd.f32 %v784_v49, %v783_v1  ;;  %v8346_v14 = vpop.permute.xlu0 %774  ;;  %v8384_v1 = vpack.c.bf16 %v382_v47, %v381_v42  ;;  %v383_v49 = vld [vmem:[%s10524_s12 + $0x30] sm:$0xff] }
 0x4e1   :  { %v780_v9 = vmul.f32 %v8346_v14, %v8024_v12  ;;  %v378_v12 = vld [vmem:[%s10524_s12 + $0x8] sm:$0xff] }
 0x4e2   :  { %v786_v37 = vrot.slane %v785_v2, 2  ;;  %v8358_v26 = vpack.c.bf16 %v378_v12, %v377_v11  ;;  %v4932_v12 = vmul.f32 -1.442695, %v8264_v48  ;;  %v362_v48 = vld [vmem:[%s10523_s11 + $0x8] sm:$0xff] }
 0x4e3   :  { %v791_v10 = vsel %vm74_vm0, %v780_v9, 0.0  ;;  %v385_v9 = vld [vmem:[%s10524_s12 + $0x40] sm:$0xff] }
 0x4e4   :  { %v792_v15 = vadd.f32 %v791_v10, %v790_v6  ;;  %v787_v20 = vadd.f32 %v786_v37, %v785_v2  ;;  %10624 = vst [vmem:[#allocation23_spill] sm:$0xff] %v8358_v26  ;;  %6683 = vmatpush3.bf16.xpose.msk.msra.mxu1 %vm7991_vm1, %v8358_v26  ;;  %v8396_v2 = vpack.c.bf16 %v384_v54, %v383_v49  ;;  %v386_v6 = vld [vmem:[%s10524_s12 + $0x48] sm:$0xff]  ;;  %v388_v37 = vld [vmem:[%s10524_s12 + $0x58] sm:$0xff]  ;;  %7663 = vpow2.f32 %v4932_v12 }
 0x4e5   :  { %6684 = vmatprep.subr.bf16.mxu1 %v10536_v3  ;;  %v8408_v10 = vpack.c.bf16 %v386_v6, %v385_v9  ;;  %v364_v54 = vld [vmem:[%s10523_s11 + $0x18] sm:$0xff] }
 0x4e6   :  { %v793_v17 = vrot.slane %v792_v15, 4  ;;  %v788_v23 = vrot.slane %v787_v20, 1 }
 0x4e8   :  { %v794_v18 = vadd.f32 %v793_v17, %v792_v15  ;;  %v789_v28 = vadd.f32 %v788_v23, %v787_v20  ;;  %v387_v15 = vld [vmem:[%s10524_s12 + $0x50] sm:$0xff]  ;;  %v390_v20 = vld [vmem:[%s10524_s12 + $0x68] sm:$0xff] }
 0x4e9   :  { %v8420_v17 = vpack.c.bf16 %v388_v37, %v387_v15  ;;  %v391_v23 = vld [vmem:[%s10524_s12 + $0x70] sm:$0xff]  ;;  %v365_v15 = vld [vmem:[%s10523_s11 + $0x20] sm:$0xff]  ;;  %v366_v37 = vld [vmem:[%s10523_s11 + $0x28] sm:$0xff] }
 0x4ea   :  { %v795_v21 = vrot.slane %v794_v18, 2 }
 0x4ec   :  { %v796_v24 = vadd.f32 %v795_v21, %v794_v18  ;;  %6687 = vmatpush3.bf16.xpose.msk.msra.mxu1 %vm7991_vm1, %v8372_v60  ;;  %v389_v18 = vld [vmem:[%s10524_s12 + $0x60] sm:$0xff] }
 0x4ed   :  { %6688 = vmatprep.subr.bf16.mxu1 %v10536_v3  ;;  %v8432_v21 = vpack.c.bf16 %v390_v20, %v389_v18  ;;  %v8495_v20 = vpack.c.bf16 %v366_v37, %v365_v15  ;;  %v806_v37 = vld [vmem:[%s10514_s2] sm:$0x3] }
 0x4ee   :  { %v797_v27 = vrot.slane %v796_v24, 1 }
 0x4f0   :  { %v798_v29 = vadd.f32 %v797_v27, %v796_v24  ;;  %v392_v24 = vld [vmem:[%s10524_s12 + $0x78] sm:$0xff]  ;;  %v7664_v27 = vpop.eup %7663 }
 0x4f1   :  { %v8444_v11 = vpack.c.bf16 %v392_v24, %v391_v23  ;;  %v367_v23 = vld [vmem:[%s10523_s11 + $0x30] sm:$0xff]  ;;  %v368_v24 = vld [vmem:[%s10523_s11 + $0x38] sm:$0xff] }
 0x4f2   :  { %v801_v38 = vsel %vm222_vm3, %v798_v29, %v789_v28  ;;  %v574_v28 = vadd.f32 1.0, %v7664_v27  ;;  %v8507_v12 = vpack.c.bf16 %v368_v24, %v367_v23  ;;  %v369_v27 = vld [vmem:[%s10523_s11 + $0x40] sm:$0xff]  ;;  %v8616_v24 = vrot.slane %v8253_v41, %v8271_v52 }
 0x4f3   :  { %802 = vrot.lane.b32.xlu0 %v801_v38, %s7883_s3  ;;  %v361_v38 = vld [vmem:[%s10523_s11] sm:$0xff] }
 0x4f4   :  { %6691 = vmatpush3.bf16.xpose.msk.msra.mxu1 %vm7991_vm1, %v8384_v1  ;;  %7665 = vrcp.f32 %v574_v28  ;;  %v8460_v42 = vpack.c.bf16 %v362_v48, %v361_v38  ;;  %v370_v28 = vld [vmem:[%s10523_s11 + $0x48] sm:$0xff]  ;;  %v373_v48 = vld [vmem:[%s10523_s11 + $0x60] sm:$0xff]  ;;  %10627 = vst [vmem:[#allocation24_spill] sm:$0xff] %v8616_v24 }
 0x4f5   :  { %6692 = vmatprep.subr.bf16.mxu1 %v10536_v3 }
 0x4fc   :  { %6695 = vmatpush3.bf16.xpose.msk.msra.mxu1 %vm7991_vm1, %v8396_v2 }
 0x4fd   :  { %6696 = vmatprep.subr.bf16.mxu1 %v10536_v3 }
 0x4fe   :  { %v7666_v29 = vpop.eup %7665 }
 0x504   :  { %6699 = vmatpush3.bf16.xpose.msk.msra.mxu1 %vm7991_vm1, %v8408_v10 }
 0x505   :  { %6700 = vmatprep.subr.bf16.mxu1 %v10536_v3 }
 0x50c   :  { %6703 = vmatpush3.bf16.xpose.msk.msra.mxu1 %vm7991_vm1, %v8420_v17 }
 0x50d   :  { %6704 = vmatprep.subr.bf16.mxu1 %v10536_v3 }
 0x514   :  { %6707 = vmatpush3.bf16.xpose.msk.msra.mxu1 %vm7991_vm1, %v8432_v21 }
 0x515   :  { %6708 = vmatprep.subr.bf16.mxu1 %v10536_v3 }
 0x51c   :  { %6711 = vmatpush3.bf16.xpose.msk.msra.mxu1 %vm7991_vm1, %v8444_v11 }
 0x51d   :  { %6712 = vmatprep.subr.bf16.mxu1 %v10536_v3 }
 0x565   :  { %v803_v30 = vpop.permute.xlu0 %802 }
 0x566   :  { %v805_v31 = vmul.f32 %v7666_v29, %v803_v30  ;;  %v8519_v29 = vpack.c.bf16 %v370_v28, %v369_v27  ;;  %v371_v30 = vld [vmem:[%s10523_s11 + $0x50] sm:$0xff]  ;;  %v8621_v27 = vld [vmem:[%s10525_s13] ss:$0 sm:$0xff] }
 0x568   :  { %808 = vrot.lane.b32.xlu0 %v805_v31, %s7884_s24  ;;  %v372_v31 = vld [vmem:[%s10523_s11 + $0x58] sm:$0xff] }
 0x569   :  { %v8531_v38 = vpack.c.bf16 %v372_v31, %v371_v30 }
 0x56c   :  { %323 = vrot.lane.b32.xlu0 %v8236_v32, %s7884_s24  ;;  %v363_v32 = vld [vmem:[%s10523_s11 + $0x10] sm:$0xff] }
 0x56d   :  { %v8482_v6 = vpack.c.bf16 %v364_v54, %v363_v32  ;;  %v375_v54 = vld [vmem:[%s10523_s11 + $0x70] sm:$0xff] }
 0x5da   :  { %v809_v49 = vpop.permute.xlu0 %808 }
 0x5db   :  { %5902 = vmatmul.mubr.msk.f32.vlgmr.msra.gmra.mrb[2].mxu1 %vm74_vm0, %v809_v49  ;;  %v374_v49 = vld [vmem:[%s10523_s11 + $0x68] sm:$0xff] }
 0x5dc   :  { %6715 = vmatpush3.bf16.xpose.msk.msra.mxu1 %vm8464_vm8, %v8460_v42  ;;  %5936 = vmatprep.mubr.msk.f32.mxu1 %vm7879_vm2, %v10534_v8  ;;  %v8543_v32 = vpack.c.bf16 %v374_v49, %v373_v48  ;;  %v567_v48 = vadd.f32 %v8259_v45, %v8616_v24  ;;  %v8632_v45 = vld [vmem:[%s10628_s22] sm:$0x3] }
 0x5dd   :  { %6716 = vmatprep.subr.bf16.mxu1 %v10536_v3  ;;  %vm413_vm9 = vcmp.gt.s32.totalorder %v8632_v45, 0  ;;  %vm1263_vm11 = vcmp.gt.s32.totalorder %v8632_v45, 1 }
 0x5de   :  { %v324_v9 = vpop.permute.xlu0 %323 }
 0x5df   :  { %326 = vst.msk [vmem:[#allocation3] sm:$0x3] %vm320_vm4, %v324_v9  ;;  %v376_v9 = vld [vmem:[%s10523_s11 + $0x78] sm:$0xff] }
 0x5e0   :  { %v8555_v15 = vpack.c.bf16 %v376_v9, %v375_v54 }
 0x5e4   :  { %6719 = vmatpush3.bf16.xpose.msk.msra.mxu1 %vm8464_vm8, %v8482_v6 }
 0x5e5   :  { %6720 = vmatprep.subr.bf16.mxu1 %v10536_v3 }
 0x5e6   :  { %v412_v18 = vld [vmem:[#allocation3] sm:$0x3] }
 0x5e7   :  { %1068 = vrot.lane.b32.xlu0 %v412_v18, %s7883_s3 }
 0x5ec   :  { %6723 = vmatpush3.bf16.xpose.msk.msra.mxu1 %vm8464_vm8, %v8495_v20 }
 0x5ed   :  { %6724 = vmatprep.subr.bf16.mxu1 %v10536_v3 }
 0x5f4   :  { %6727 = vmatpush3.bf16.xpose.msk.msra.mxu1 %vm8464_vm8, %v8507_v12 }
 0x5f5   :  { %6728 = vmatprep.subr.bf16.mxu1 %v10536_v3 }
 0x5fc   :  { %6731 = vmatpush3.bf16.xpose.msk.msra.mxu1 %vm8464_vm8, %v8519_v29 }
 0x5fd   :  { %6732 = vmatprep.subr.bf16.mxu1 %v10536_v3 }
 0x604   :  { %6735 = vmatpush3.bf16.xpose.msk.msra.mxu1 %vm8464_vm8, %v8531_v38 }
 0x605   :  { %6736 = vmatprep.subr.bf16.mxu1 %v10536_v3 }
 0x60c   :  { %6739 = vmatpush3.bf16.xpose.msk.msra.mxu1 %vm8464_vm8, %v8543_v32 }
 0x60d   :  { %6740 = vmatprep.subr.bf16.mxu1 %v10536_v3 }
 0x614   :  { %6743 = vmatpush3.bf16.xpose.msk.msra.mxu1 %vm8464_vm8, %v8555_v15 }
 0x615   :  { %6776 = vmatprep.subr.bf16.mxu1 %v10536_v3 }
 0x61b   :  { %5937 = vmatmul.mubr.msk.f32.vlgmr.msra.gmra.mrb[4].mxu1 %vm930_vm7, %v806_v37 }
 0x61c   :  { %6779 = vmatpush1.bf16.xpose.msk.msra.mxu1 %vm7991_vm1, %v8081_v43  ;;  %1331 = vmatprep.mubr.f32.mxu1 %v10534_v8 }
 0x61d   :  { %6780 = vmatprep.subr.bf16.mxu1 %v10536_v3 }
 0x624   :  { %6783 = vmatpush1.bf16.xpose.msk.msra.mxu1 %vm7991_vm1, %v8101_v51 }
 0x625   :  { %6784 = vmatprep.subr.bf16.mxu1 %v10536_v3 }
 0x62c   :  { %6787 = vmatpush1.bf16.xpose.msk.msra.mxu1 %vm7991_vm1, %v8119_v55 }
 0x62d   :  { %6788 = vmatprep.subr.bf16.mxu1 %v10536_v3 }
 0x634   :  { %6791 = vmatpush1.bf16.xpose.msk.msra.mxu1 %vm7991_vm1, %v8131_v58 }
 0x635   :  { %6792 = vmatprep.subr.bf16.mxu1 %v10536_v3 }
 0x63c   :  { %6795 = vmatpush1.bf16.xpose.msk.msra.mxu1 %vm7991_vm1, %v8143_v61 }
 0x63d   :  { %6796 = vmatprep.subr.bf16.mxu1 %v10536_v3 }
 0x644   :  { %6799 = vmatpush1.bf16.xpose.msk.msra.mxu1 %vm7991_vm1, %v8155_v0 }
 0x645   :  { %6800 = vmatprep.subr.bf16.mxu1 %v10536_v3 }
 0x64c   :  { %6803 = vmatpush1.bf16.xpose.msk.msra.mxu1 %vm7991_vm1, %v8167_v5 }
 0x64d   :  { %6804 = vmatprep.subr.bf16.mxu1 %v10536_v3 }
 0x654   :  { %6807 = vmatpush1.bf16.xpose.msk.msra.mxu1 %vm7991_vm1, %v8179_v13 }
 0x655   :  { %6808 = vmatprep.subr.bf16.mxu1 %v10536_v3 }
 0x65c   :  { %6811 = vmatpush1.bf16.xpose.msk.msra.mxu1 %vm7991_vm1, %v8191_v16 }
 0x65d   :  { %6812 = vmatprep.subr.bf16.mxu1 %v10536_v3 }
 0x664   :  { %6815 = vmatpush1.bf16.xpose.msk.msra.mxu1 %vm7991_vm1, %v8203_v19 }
 0x665   :  { %6816 = vmatprep.subr.bf16.mxu1 %v10536_v3 }
 0x66c   :  { %6819 = vmatpush1.bf16.xpose.msk.msra.mxu1 %vm7991_vm1, %v8215_v22 }
 0x66d   :  { %6820 = vmatprep.subr.bf16.mxu1 %v10536_v3 }
 0x674   :  { %6823 = vmatpush1.bf16.xpose.msk.msra.mxu1 %vm7991_vm1, %v8227_v25 }
 0x675   :  { %6888 = vmatprep.subr.bf16.mxu1 %v10536_v3 }
 0x6ae   :  { %v926_v18 = vpop.f32.mrb[2].mxu1 }
 0x6af   :  { %v5903_v23 = vpop.f32.mrb[3].mxu1 }
 0x6ee   :  { %v1048_v28 = vpop.f32.mrb[4].mxu1 }
 0x6ef   :  { %v1049_v30 = vadd.f32 %v1048_v28, %v926_v18  ;;  %v5938_v31 = vpop.f32.mrb[5].mxu1 }
 0x6f0   :  { %v1217_v31 = vsel %vm413_vm9, 1, %v10532_v35 }
 0x6f1   :  { %v1058_v49 = vadd.f32 %v8621_v27, %v1049_v30 }
 0x6f3   :  { %v1059_v54 = vadd.f32 %v1058_v49, %v567_v48 }
 0x6f5   :  { %7667 = vtanh.f32 %v1059_v54  ;;  %v4969_v41 = vmul.f32 -1.442695, %v1059_v54 }
 0x6f7   :  { %7669 = vpow2.f32 %v4969_v41 }
 0x6ff   :  { %v7668_v9 = vpop.eup %7667 }
 0x700   :  { %1073 = vrot.lane.b32.xlu1 %v7668_v9, %s7885_s19  ;;  %v1255_v9 = vrot.slane %v8346_v14, %v8304_v53 }
 0x701   :  { %v7670_v37 = vpop.eup %7669 }
 0x702   :  { %v1063_v23 = vadd.f32 1.0, %v7670_v37  ;;  %v1246_v37 = vrot.slane %v8336_v39, %v8304_v53 }
 0x704   :  { %1222 = vrot.lane.b32.xlu1 %v8240_v34, %s7884_s24  ;;  %7671 = vrcp.f32 %v1063_v23  ;;  %v8637_v34 = vpop.permute.xlu0 %1068  ;;  %v1251_v23 = vrot.slane %v8342_v36, %v8302_v50 }
 0x70e   :  { %v7672_v18 = vpop.eup %7671 }
 0x70f   :  { %v1071_v48 = vmul.f32 %v7672_v18, %v8637_v34 }
 0x772   :  { %v1074_v28 = vpop.permute.xlu1 %1073 }
 0x773   :  { %v1076_v30 = vmul.f32 %v7672_v18, %v1074_v28  ;;  %v1242_v28 = vrot.slane %v8332_v33, %v8302_v50 }
 0x775   :  { %1078 = vrot.lane.b32.xlu0 %v1076_v30, %s7883_s3  ;;  %v1256_v30 = vsel %vm662_vm5, %v1255_v9, %v1251_v23 }
 0x779   :  { %1219 = vperm.xlu0 %7651, %v1217_v31   ;;  %v1247_v31 = vsel %vm662_vm5, %v1246_v37, %v1242_v28 }
 0x77a   :  { %v1257_v14 = vsel %vm222_vm3, %v1256_v30, %v1247_v31 }
 0x7e7   :  { %v1079_v49 = vpop.permute.xlu0 %1078 }
 0x7e8   :  { %v8640_v54 = vadd.f32 %v1079_v49, %v1071_v48 }
 0x7ea   :  { %7673 = vtanh.f32 %v8640_v54 }
 0x7f4   :  { %v7674_v41 = vpop.eup %7673 }
 0x7f5   :  { %1084 = vrot.lane.b32.xlu0 %v7674_v41, %s7885_s19  ;;  %v1223_v41 = vpop.permute.xlu1 %1222 }
 0x7f8   :  { %v8654_v48 = vpop.permute.xlu0 %1219 }
 0x7f9   :  { %vm1221_vm10 = vcmp.eq.s32.totalorder %v8654_v48, 1  ;;  %v5014_v48 = vld [vmem:[%s10514_s2 + $0x2] sm:$0x3] }
 0x7fa   :  { %v1259_v39 = vsel %vm1221_vm10, %v1257_v14, 0.0 }
 0x7fb   :  { %1260 = vst.msk [vmem:[#allocation7] sm:$0x3] %vm675_vm6, %v1259_v39 }
 0x867   :  { %v1085_v36 = vpop.permute.xlu0 %1084 }
 0x868   :  { %v8661_v49 = vmul.f32 %v7672_v18, %v1085_v36 }
 0x86a   :  { %v1225_v33 = vsel %vm1221_vm10, %v8661_v49, %v1223_v41 }
 0x86b   :  { %1227 = vrot.lane.b32.xlu0 %v1225_v33, %s7883_s3 }
 0x8dd   :  { %v1228_v9 = vpop.permute.xlu0 %1227 }
 0x8de   :  { %1230 = vst.msk [vmem:[#allocation2] sm:$0x3] %vm320_vm4, %v1228_v9 }
 0x8e5   :  { %v8668_v37 = vld [vmem:[#allocation2] sm:$0x3] }
 0x8e6   :  { %10629 = vst [vmem:[#allocation25_spill] sm:$0xff] %v8668_v37  ;;  %5012 = vmatmul.mubr.msk.f32.vlgmr.msra.gmra.mrb[6].mxu1 %vm74_vm0, %v8668_v37 }
 0x8e7   :  { %6076 = vmatprep.mubr.msk.f32.mxu1 %vm7879_vm2, %v10534_v8 }
 0x9b9   :  { %v8674_v18 = vpop.f32.mrb[6].mxu1 }
 0x9ba   :  { %v1335_v23 = vpop.f32.mrb[7].mxu1 }
 0x9bb   :  { %v8677_v28 = vadd.f32 %v1335_v23, %v8257_v44 }
 0x9bd   :  { %v1351_v30 = vrot.slane %v8677_v28, %v8261_v46 }
 0x9bf   :  { %v1352_v31 = vcombine.high %v1351_v30, %v1351_v30  ;;  %v1359_v14 = vrot.slane %v1351_v30, %v8261_v46 }
 0x9c1   :  { %v1366_v39 = vrot.slane %v1352_v31, %v8261_v46  ;;  %v1370_v36 = vrot.slane %v1359_v14, %v8271_v52 }
 0x9c3   :  { %v1378_v41 = vadd.f32 %v1370_v36, %v8274_v56  ;;  %v1377_v33 = vadd.f32 %v1370_v36, %v8276_v57  ;;  %v1374_v9 = vrot.slane %v1366_v39, %v8271_v52 }
 0x9c5   :  { %v1382_v35 = vmax.f32 %v1378_v41, 0.0  ;;  %v1381_v8 = vmax.f32 %v1377_v33, 0.0  ;;  %v1380_v23 = vadd.f32 %v1374_v9, %v8280_v62  ;;  %v1379_v3 = vadd.f32 %v1374_v9, %v8282_v63 }
 0x9c7   :  { %v1386_v44 = vmul.f32 %v8290_v7, %v1382_v35  ;;  %v1385_v30 = vmul.f32 %v8290_v7, %v1381_v8  ;;  %v1384_v37 = vmax.f32 %v1380_v23, 0.0  ;;  %v1383_v31 = vmax.f32 %v1379_v3, 0.0 }
 0x9c9   :  { %v1392_v14 = vsel %vm74_vm0, %v1386_v44, 0.0  ;;  %v1389_v56 = vsel %vm74_vm0, %v1385_v30, 0.0  ;;  %v1388_v36 = vmul.f32 %v8290_v7, %v1384_v37  ;;  %v1387_v39 = vmul.f32 %v8290_v7, %v1383_v31 }
 0x9ca   :  { %1393 = vadd.xlane.f32.xlu0 %v1392_v14  ;;  %1390 = vadd.xlane.f32.xlu1 %v1389_v56 }
 0x9cb   :  { %v1398_v41 = vsel %vm74_vm0, %v1388_v36, 0.0  ;;  %v1395_v33 = vsel %vm74_vm0, %v1387_v39, 0.0 }
 0x9ce   :  { %1399 = vadd.xlane.f32.xlu1 %v1398_v41  ;;  %1396 = vadd.xlane.f32.xlu0 %v1395_v33 }
 0xa57   :  { %v1394_v35 = vpop.xlane.xlu0 %1393  ;;  %v1391_v8 = vpop.xlane.xlu1 %1390 }
 0xa58   :  { %v1402_v3 = vadd.f32 %v1394_v35, %v8306_v59  ;;  %v1401_v44 = vadd.f32 %v1391_v8, %v8306_v59 }
 0xa5a   :  { %v1416_v37 = vrot.slane %v1402_v3, %v8304_v53  ;;  %v1412_v7 = vrot.slane %v1401_v44, %v8302_v50 }
 0xa5b   :  { %v1400_v9 = vpop.xlane.xlu1 %1399  ;;  %v1397_v23 = vpop.xlane.xlu0 %1396 }
 0xa5c   :  { %v1404_v56 = vadd.f32 %v1400_v9, %v8306_v59  ;;  %v1403_v30 = vadd.f32 %v1397_v23, %v8306_v59  ;;  %v1417_v36 = vsel %vm662_vm5, %v1416_v37, %v1412_v7 }
 0xa5e   :  { %v1425_v31 = vrot.slane %v1404_v56, %v8304_v53  ;;  %v1421_v14 = vrot.slane %v1403_v30, %v8302_v50 }
 0xa60   :  { %v1426_v39 = vsel %vm662_vm5, %v1425_v31, %v1421_v14 }
 0xa61   :  { %v1427_v41 = vsel %vm222_vm3, %v1426_v39, %v1417_v36 }
 0xa62   :  { %v1429_v33 = vsel %vm675_vm6, %v1427_v41, -inf }
 0xa63   :  { %1430 = vmax.xlane.f32.xlu0 %v1429_v33 }
 0xaf0   :  { %v1431_v35 = vpop.xlane.xlu0 %1430 }
 0xaf1   :  { %v1436_v8 = vrot.slane %v1431_v35, %v8271_v52  ;;  %v1440_v9 = vrot.slane %v1431_v35, %v8248_v40 }
 0xaf3   :  { %v1443_v63 = vsub.f32 %v1401_v44, %v1436_v8  ;;  %v1444_v23 = vsub.f32 %v1402_v3, %v1436_v8  ;;  %v1445_v59 = vsub.f32 %v1403_v30, %v1440_v9  ;;  %v1446_v46 = vsub.f32 %v1404_v56, %v1440_v9  ;;  %v394_v8 = vld [vmem:[%s10526_s14] sm:$0xff]  ;;  %v395_v9 = vld [vmem:[%s10526_s14 + $0x8] sm:$0xff] }
 0xaf5   :  { %v1447_v62 = vmul.f32 1.442695, %v1443_v63  ;;  %v1449_v57 = vmul.f32 1.442695, %v1444_v23  ;;  %v1451_v37 = vmul.f32 1.442695, %v1445_v59  ;;  %v8737_v23 = vpack.c.bf16 %v395_v9, %v394_v8 }
 0xaf6   :  { %v1453_v7 = vmul.f32 1.442695, %v1446_v46  ;;  %v405_v8 = vld [vmem:[%s10526_s14 + $0x58] sm:$0xff] }
 0xaf7   :  { %7675 = vpow2.f32 %v1447_v62  ;;  %10630 = vst [vmem:[#allocation26_spill] sm:$0xff] %v8737_v23  ;;  %6747 = vmatpush3.bf16.xpose.msk.msra.mxu0 %vm7991_vm1, %v8737_v23  ;;  %6891 = vmatpush3.bf16.xpose.msk.msra.mxu1 %vm7991_vm1, %v8737_v23 }
 0xaf8   :  { %7677 = vpow2.f32 %v1449_v57 }
 0xaf9   :  { %7679 = vpow2.f32 %v1451_v37  ;;  %v10631_v37 = vmov 0.0|0.0  }
 0xafa   :  { %7681 = vpow2.f32 %v1453_v7  ;;  %6748 = vmatprep.subr.bf16.mxu0 %v10631_v37  ;;  %v396_v7 = vld [vmem:[%s10526_s14 + $0x10] sm:$0xff]  ;;  %6892 = vmatprep.subr.bf16.mxu1 %v10631_v37 }
 0xb01   :  { %v8711_v31 = vpop.eup %7675 }
 0xb02   :  { %v8713_v14 = vpop.eup %7677  ;;  %1460 = vperm.xlu1 %7652, %v8711_v31  }
 0xb03   :  { %1463 = vperm.xlu0 %7651, %v8713_v14   ;;  %v8717_v44 = vpop.eup %7679 }
 0xb04   :  { %v8720_v63 = vpop.eup %7681 }
 0xb06   :  { %1466 = vperm.xlu1 %7652, %v8717_v44  }
 0xb0a   :  { %1469 = vperm.xlu1 %7652, %v8720_v63  }
 0xb81   :  { %v1461_v57 = vpop.permute.xlu1 %1460 }
 0xb82   :  { %v1464_v62 = vpop.permute.xlu0 %1463  ;;  %v1474_v3 = vrot.slane %v1461_v57, %v8302_v50  ;;  %v397_v57 = vld [vmem:[%s10526_s14 + $0x18] sm:$0xff] }
 0xb83   :  { %v1478_v59 = vrot.slane %v1464_v62, %v8304_v53  ;;  %v8753_v62 = vpack.c.bf16 %v397_v57, %v396_v7 }
 0xb85   :  { %v1467_v46 = vpop.permute.xlu1 %1466  ;;  %v1479_v39 = vsel %vm662_vm5, %v1478_v59, %v1474_v3  ;;  %10632 = vst [vmem:[#allocation27_spill] sm:$0xff] %v8753_v62  ;;  %6751 = vmatpush3.bf16.xpose.msk.msra.mxu0 %vm7991_vm1, %v8753_v62  ;;  %6895 = vmatpush3.bf16.xpose.msk.msra.mxu1 %vm7991_vm1, %v8753_v62  ;;  %v399_v59 = vld [vmem:[%s10526_s14 + $0x28] sm:$0xff] }
 0xb86   :  { %v1483_v30 = vrot.slane %v1467_v46, %v8302_v50  ;;  %6752 = vmatprep.subr.bf16.mxu0 %v10631_v37  ;;  %v398_v46 = vld [vmem:[%s10526_s14 + $0x20] sm:$0xff]  ;;  %6896 = vmatprep.subr.bf16.mxu1 %v10631_v37 }
 0xb87   :  { %v8769_v3 = vpack.c.bf16 %v399_v59, %v398_v46 }
 0xb89   :  { %v1470_v56 = vpop.permute.xlu1 %1469  ;;  %10633 = vst [vmem:[#allocation28_spill] sm:$0xff] %v8769_v3 }
 0xb8a   :  { %v1487_v36 = vrot.slane %v1470_v56, %v8304_v53  ;;  %v400_v56 = vld [vmem:[%s10526_s14 + $0x30] sm:$0xff] }
 0xb8c   :  { %v1488_v41 = vsel %vm662_vm5, %v1487_v36, %v1483_v30  ;;  %v401_v30 = vld [vmem:[%s10526_s14 + $0x38] sm:$0xff] }
 0xb8d   :  { %v1489_v33 = vsel %vm222_vm3, %v1488_v41, %v1479_v39  ;;  %6755 = vmatpush3.bf16.xpose.msk.msra.mxu0 %vm7991_vm1, %v8769_v3  ;;  %6899 = vmatpush3.bf16.xpose.msk.msra.mxu1 %vm7991_vm1, %v8769_v3  ;;  %v8785_v36 = vpack.c.bf16 %v401_v30, %v400_v56  ;;  %v402_v39 = vld [vmem:[%s10526_s14 + $0x40] sm:$0xff]  ;;  %v403_v41 = vld [vmem:[%s10526_s14 + $0x48] sm:$0xff] }
 0xb8e   :  { %v1491_v35 = vsel %vm675_vm6, %v1489_v33, 0.0  ;;  %6756 = vmatprep.subr.bf16.mxu0 %v10631_v37  ;;  %6900 = vmatprep.subr.bf16.mxu1 %v10631_v37  ;;  %v8801_v33 = vpack.c.bf16 %v403_v41, %v402_v39  ;;  %v406_v56 = vld [vmem:[%s10526_s14 + $0x60] sm:$0xff]  ;;  %v407_v30 = vld [vmem:[%s10526_s14 + $0x68] sm:$0xff] }
 0xb8f   :  { %1492 = vadd.xlane.f32.xlu0 %v1491_v35  ;;  %10634 = vst [vmem:[#allocation29_spill] sm:$0xff] %v8785_v36  ;;  %v404_v35 = vld [vmem:[%s10526_s14 + $0x50] sm:$0xff] }
 0xb90   :  { %10635 = vst [vmem:[#allocation30_spill] sm:$0xff] %v8801_v33  ;;  %v8817_v9 = vpack.c.bf16 %v405_v8, %v404_v35  ;;  %v8837_v35 = vpack.c.bf16 %v407_v30, %v406_v56  ;;  %v409_v8 = vld [vmem:[%s10526_s14 + $0x78] sm:$0xff]  ;;  %v8881_v56 = vld [vmem:[%s10611_s20 + $0x8] sm:$0xff] }
 0xb91   :  { %10640 = vst [vmem:[#allocation35_spill] sm:$0xff] %v8881_v56 }
 0xb92   :  { %10636 = vst [vmem:[#allocation31_spill] sm:$0xff] %v8817_v9  ;;  %10637 = vst [vmem:[#allocation32_spill] sm:$0xff] %v8837_v35 }
 0xb95   :  { %6759 = vmatpush3.bf16.xpose.msk.msra.mxu0 %vm7991_vm1, %v8785_v36  ;;  %6903 = vmatpush3.bf16.xpose.msk.msra.mxu1 %vm7991_vm1, %v8785_v36 }
 0xb96   :  { %6760 = vmatprep.subr.bf16.mxu0 %v10631_v37  ;;  %6904 = vmatprep.subr.bf16.mxu1 %v10631_v37 }
 0xb9d   :  { %6763 = vmatpush3.bf16.xpose.msk.msra.mxu0 %vm7991_vm1, %v8801_v33  ;;  %6907 = vmatpush3.bf16.xpose.msk.msra.mxu1 %vm7991_vm1, %v8801_v33 }
 0xb9e   :  { %6764 = vmatprep.subr.bf16.mxu0 %v10631_v37  ;;  %6908 = vmatprep.subr.bf16.mxu1 %v10631_v37 }
 0xba5   :  { %6767 = vmatpush3.bf16.xpose.msk.msra.mxu0 %vm7991_vm1, %v8817_v9  ;;  %6911 = vmatpush3.bf16.xpose.msk.msra.mxu1 %vm7991_vm1, %v8817_v9 }
 0xba6   :  { %6768 = vmatprep.subr.bf16.mxu0 %v10631_v37  ;;  %6912 = vmatprep.subr.bf16.mxu1 %v10631_v37 }
 0xbad   :  { %6771 = vmatpush3.bf16.xpose.msk.msra.mxu0 %vm7991_vm1, %v8837_v35  ;;  %6915 = vmatpush3.bf16.xpose.msk.msra.mxu1 %vm7991_vm1, %v8837_v35 }
 0xbae   :  { %6772 = vmatprep.subr.bf16.mxu0 %v10631_v37  ;;  %6916 = vmatprep.subr.bf16.mxu1 %v10631_v37 }
 0xc1c   :  { %v1493_v7 = vpop.xlane.xlu0 %1492 }
 0xc1d   :  { %7683 = vrcp.f32 %v1493_v7 }
 0xc27   :  { %v7684_v57 = vpop.eup %7683 }
 0xc28   :  { %v1499_v46 = vrot.slane %v7684_v57, %v8271_v52  ;;  %v1503_v41 = vrot.slane %v7684_v57, %v8248_v40 }
 0xc2a   :  { %v1506_v59 = vmul.f32 %v8711_v31, %v1499_v46  ;;  %v1507_v39 = vmul.f32 %v8713_v14, %v1499_v46  ;;  %v1508_v31 = vmul.f32 %v8717_v44, %v1503_v41  ;;  %v408_v14 = vld [vmem:[%s10526_s14 + $0x70] sm:$0xff]  ;;  %v1509_v7 = vmul.f32 %v8720_v63, %v1503_v41  ;;  %v8872_v63 = vld [vmem:[%s10611_s20] sm:$0xff] }
 0xc2b   :  { %v8855_v57 = vpack.c.bf16 %v409_v8, %v408_v14  ;;  %10639 = vst [vmem:[#allocation34_spill] sm:$0xff] %v8872_v63  ;;  %v8892_v8 = vld [vmem:[%s10611_s20 + $0x10] sm:$0xff] }
 0xc2c   :  { %1512 = vperm.xlu1 %7652, %v1506_v59   ;;  %10641 = vst [vmem:[#allocation36_spill] sm:$0xff] %v8892_v8 }
 0xc2d   :  { %10638 = vst [vmem:[#allocation33_spill] sm:$0xff] %v8855_v57  ;;  %6775 = vmatpush3.bf16.xpose.msk.msra.mxu0 %vm7991_vm1, %v8855_v57  ;;  %6919 = vmatpush3.bf16.xpose.msk.msra.mxu1 %vm7991_vm1, %v8855_v57 }
 0xc2e   :  { %6824 = vmatprep.subr.bf16.mxu0 %v10631_v37  ;;  %6968 = vmatprep.subr.bf16.mxu1 %v10631_v37 }
 0xc30   :  { %1517 = vperm.xlu1 %7652, %v1507_v39  }
 0xc34   :  { %1522 = vperm.xlu1 %7652, %v1508_v31  }
 0xc38   :  { %1527 = vperm.xlu1 %7652, %v1509_v7  }
 0xc3c   :  { %1095 = vrot.lane.b32.xlu1 %v8661_v49, %s7883_s3 }
 0xcab   :  { %v8867_v44 = vpop.permute.xlu1 %1512 }
 0xcac   :  { %v1530_v46 = vmul.f32 %v8872_v63, %v8867_v44 }
 0xcae   :  { %v1534_v30 = vsel %vm74_vm0, %v1530_v46, 0.0  ;;  %v8901_v46 = vld [vmem:[%s10611_s20 + $0x18] sm:$0xff] }
 0xcaf   :  { %v8876_v59 = vpop.permute.xlu1 %1517  ;;  %10642 = vst [vmem:[#allocation37_spill] sm:$0xff] %v8901_v46 }
 0xcb0   :  { %v1531_v49 = vmul.f32 %v8881_v56, %v8876_v59  ;;  %v1844_v45 = vrot.slane %v8876_v59, %v8304_v53  ;;  %v10645_v59 = vld [vmem:[#allocation25_spill] sm:$0xff] }
 0xcb2   :  { %v1535_v39 = vsel %vm74_vm0, %v1531_v49, 0.0 }
 0xcb3   :  { %v1536_v41 = vadd.f32 %v1535_v39, %v1534_v30  ;;  %v8887_v31 = vpop.permute.xlu1 %1522 }
 0xcb4   :  { %v1532_v7 = vmul.f32 %v8892_v8, %v8887_v31 }
 0xcb5   :  { %v1537_v14 = vrot.slane %v1536_v41, 4 }
 0xcb6   :  { %v1543_v30 = vsel %vm74_vm0, %v1532_v7, 0.0 }
 0xcb7   :  { %v1538_v63 = vadd.f32 %v1537_v14, %v1536_v41  ;;  %v8896_v40 = vpop.permute.xlu1 %1527  ;;  %v10643_v14 = vmov 0.0  }
 0xcb8   :  { %v1533_v49 = vmul.f32 %v8901_v46, %v8896_v40 }
 0xcb9   :  { %v1539_v57 = vrot.slane %v1538_v63, 2 }
 0xcba   :  { %v1544_v39 = vsel %vm74_vm0, %v1533_v49, 0.0 }
 0xcbb   :  { %v1545_v56 = vadd.f32 %v1544_v39, %v1543_v30  ;;  %v1096_v52 = vpop.permute.xlu1 %1095  ;;  %v1540_v8 = vadd.f32 %v1539_v57, %v1538_v63 }
 0xcbc   :  { %5972 = vmatmul.mubr.msk.f32.vlgmr.msra.gmra.mrb[6].mxu0 %vm74_vm0, %v1096_v52 }
 0xcbd   :  { %v1546_v41 = vrot.slane %v1545_v56, 4  ;;  %6827 = vmatpush3.bf16.xpose.msk.msra.mxu0 %vm7991_vm1, %v8358_v26  ;;  %6006 = vmatprep.mubr.msk.f32.mxu0 %vm7879_vm2, %v10643_v14  ;;  %v1541_v35 = vrot.slane %v1540_v8, 1 }
 0xcbe   :  { %6828 = vmatprep.subr.bf16.mxu0 %v10631_v37 }
 0xcbf   :  { %v1547_v46 = vadd.f32 %v1546_v41, %v1545_v56  ;;  %v1542_v52 = vadd.f32 %v1541_v35, %v1540_v8 }
 0xcc1   :  { %v1548_v7 = vrot.slane %v1547_v46, 2 }
 0xcc3   :  { %v1549_v49 = vadd.f32 %v1548_v7, %v1547_v46  ;;  %v1231_v46 = vsel %vm1221_vm10, %v8640_v54, %v8637_v34 }
 0xcc5   :  { %v1550_v30 = vrot.slane %v1549_v49, 1  ;;  %6831 = vmatpush3.bf16.xpose.msk.msra.mxu0 %vm7991_vm1, %v8372_v60 }
 0xcc6   :  { %6832 = vmatprep.subr.bf16.mxu0 %v10631_v37 }
 0xcc7   :  { %v1551_v39 = vadd.f32 %v1550_v30, %v1549_v49 }
 0xcc9   :  { %v1554_v26 = vsel %vm222_vm3, %v1551_v39, %v1542_v52 }
 0xcca   :  { %1555 = vrot.lane.b32.xlu1 %v1554_v26, %s7883_s3  ;;  %v5013_v26 = vmul.f32 -1.442695, %v8677_v28  ;;  %v8954_v28 = vld [vmem:[%s10527_s15] ss:$0 sm:$0xff] }
 0xccc   :  { %7685 = vpow2.f32 %v5013_v26 }
 0xccd   :  { %6835 = vmatpush3.bf16.xpose.msk.msra.mxu0 %vm7991_vm1, %v8384_v1 }
 0xcce   :  { %6836 = vmatprep.subr.bf16.mxu0 %v10631_v37 }
 0xcd5   :  { %6839 = vmatpush3.bf16.xpose.msk.msra.mxu0 %vm7991_vm1, %v8396_v2 }
 0xcd6   :  { %6840 = vmatprep.subr.bf16.mxu0 %v10631_v37  ;;  %v7686_v35 = vpop.eup %7685 }
 0xcd7   :  { %v1341_v57 = vadd.f32 1.0, %v7686_v35 }
 0xcd9   :  { %7687 = vrcp.f32 %v1341_v57 }
 0xcdd   :  { %6843 = vmatpush3.bf16.xpose.msk.msra.mxu0 %vm7991_vm1, %v8408_v10 }
 0xcde   :  { %6844 = vmatprep.subr.bf16.mxu0 %v10631_v37 }
 0xce3   :  { %v7688_v63 = vpop.eup %7687 }
 0xce5   :  { %6847 = vmatpush3.bf16.xpose.msk.msra.mxu0 %vm7991_vm1, %v8420_v17 }
 0xce6   :  { %6848 = vmatprep.subr.bf16.mxu0 %v10631_v37 }
 0xced   :  { %6851 = vmatpush3.bf16.xpose.msk.msra.mxu0 %vm7991_vm1, %v8432_v21 }
 0xcee   :  { %6852 = vmatprep.subr.bf16.mxu0 %v10631_v37 }
 0xcf5   :  { %6855 = vmatpush3.bf16.xpose.msk.msra.mxu0 %vm7991_vm1, %v8444_v11 }
 0xcf6   :  { %6856 = vmatprep.subr.bf16.mxu0 %v10631_v37 }
 0xd3c   :  { %v1556_v56 = vpop.permute.xlu1 %1555 }
 0xd3d   :  { %v1558_v8 = vmul.f32 %v7688_v63, %v1556_v56  ;;  %v1334_v56 = vadd.f32 %v8674_v18, %v8616_v24  ;;  %v10644_v18 = vmov 0  }
 0xd3f   :  { %1562 = vrot.lane.b32.xlu1 %v1558_v8, %s7884_s24 }
 0xd43   :  { %1233 = vrot.lane.b32.xlu1 %v1231_v46, %s7884_s24 }
 0xd8f   :  { %v1213_v41 = vpop.f32.mrb[6].mxu0 }
 0xd90   :  { %v1214_v7 = vadd.f32 %v8954_v28, %v1213_v41  ;;  %v5973_v49 = vpop.f32.mrb[7].mxu0 }
 0xd92   :  { %v1237_v30 = vsel %vm1221_vm10, %v1214_v7, 0.0 }
 0xd93   :  { %1238 = vst [vmem:[#allocation5] sm:$0x3] %v1237_v30 }
 0xdb1   :  { %v1563_v52 = vpop.permute.xlu1 %1562 }
 0xdb2   :  { %6007 = vmatmul.mubr.msk.f32.vlgmr.msra.gmra.mrb[8].mxu0 %vm74_vm0, %v1563_v52 }
 0xdb3   :  { %6859 = vmatpush3.bf16.xpose.msk.msra.mxu0 %vm8464_vm8, %v8460_v42  ;;  %6041 = vmatprep.mubr.msk.f32.mxu0 %vm7879_vm2, %v10643_v14 }
 0xdb4   :  { %6860 = vmatprep.subr.bf16.mxu0 %v10631_v37 }
 0xdb5   :  { %v1234_v34 = vpop.permute.xlu1 %1233 }
 0xdb6   :  { %1236 = vst.msk [vmem:[#allocation3] sm:$0x3] %vm320_vm4, %v1234_v34 }
 0xdbb   :  { %6863 = vmatpush3.bf16.xpose.msk.msra.mxu0 %vm8464_vm8, %v8482_v6 }
 0xdbc   :  { %6864 = vmatprep.subr.bf16.mxu0 %v10631_v37 }
 0xdbd   :  { %v1262_v54 = vld [vmem:[#allocation3] sm:$0x3] }
 0xdbe   :  { %1719 = vrot.lane.b32.xlu1 %v1262_v54, %s7883_s3 }
 0xdc3   :  { %6867 = vmatpush3.bf16.xpose.msk.msra.mxu0 %vm8464_vm8, %v8495_v20 }
 0xdc4   :  { %6868 = vmatprep.subr.bf16.mxu0 %v10631_v37 }
 0xdcb   :  { %6871 = vmatpush3.bf16.xpose.msk.msra.mxu0 %vm8464_vm8, %v8507_v12 }
 0xdcc   :  { %6872 = vmatprep.subr.bf16.mxu0 %v10631_v37 }
 0xdd3   :  { %6875 = vmatpush3.bf16.xpose.msk.msra.mxu0 %vm8464_vm8, %v8519_v29 }
 0xdd4   :  { %6876 = vmatprep.subr.bf16.mxu0 %v10631_v37 }
 0xddb   :  { %6879 = vmatpush3.bf16.xpose.msk.msra.mxu0 %vm8464_vm8, %v8531_v38 }
 0xddc   :  { %6880 = vmatprep.subr.bf16.mxu0 %v10631_v37 }
 0xde3   :  { %6883 = vmatpush3.bf16.xpose.msk.msra.mxu0 %vm8464_vm8, %v8543_v32 }
 0xde4   :  { %6884 = vmatprep.subr.bf16.mxu0 %v10631_v37 }
 0xdeb   :  { %6887 = vmatpush3.bf16.xpose.msk.msra.mxu0 %vm8464_vm8, %v8555_v15 }
 0xdec   :  { %6920 = vmatprep.subr.bf16.mxu0 %v10631_v37 }
 0xdf2   :  { %6042 = vmatmul.mubr.msk.f32.vlgmr.msra.gmra.mrb[10].mxu0 %vm930_vm7, %v5014_v48  ;;  %v1814_v48 = vsel %vm1263_vm11, 1, %v10644_v18 }
 0xdf3   :  { %6923 = vmatpush1.bf16.xpose.msk.msra.mxu0 %vm7991_vm1, %v8081_v43  ;;  %1930 = vmatprep.mubr.f32.mxu0 %v10643_v14 }
 0xdf4   :  { %6924 = vmatprep.subr.bf16.mxu0 %v10631_v37 }
 0xdfb   :  { %6927 = vmatpush1.bf16.xpose.msk.msra.mxu0 %vm7991_vm1, %v8101_v51 }
 0xdfc   :  { %6928 = vmatprep.subr.bf16.mxu0 %v10631_v37 }
 0xe03   :  { %6931 = vmatpush1.bf16.xpose.msk.msra.mxu0 %vm7991_vm1, %v8119_v55 }
 0xe04   :  { %6932 = vmatprep.subr.bf16.mxu0 %v10631_v37 }
 0xe0b   :  { %6935 = vmatpush1.bf16.xpose.msk.msra.mxu0 %vm7991_vm1, %v8131_v58 }
 0xe0c   :  { %6936 = vmatprep.subr.bf16.mxu0 %v10631_v37 }
 0xe13   :  { %6939 = vmatpush1.bf16.xpose.msk.msra.mxu0 %vm7991_vm1, %v8143_v61 }
 0xe14   :  { %6940 = vmatprep.subr.bf16.mxu0 %v10631_v37 }
 0xe1b   :  { %6943 = vmatpush1.bf16.xpose.msk.msra.mxu0 %vm7991_vm1, %v8155_v0 }
 0xe1c   :  { %6944 = vmatprep.subr.bf16.mxu0 %v10631_v37 }
 0xe23   :  { %6947 = vmatpush1.bf16.xpose.msk.msra.mxu0 %vm7991_vm1, %v8167_v5 }
 0xe24   :  { %6948 = vmatprep.subr.bf16.mxu0 %v10631_v37 }
 0xe2b   :  { %6951 = vmatpush1.bf16.xpose.msk.msra.mxu0 %vm7991_vm1, %v8179_v13 }
 0xe2c   :  { %6952 = vmatprep.subr.bf16.mxu0 %v10631_v37 }
 0xe33   :  { %6955 = vmatpush1.bf16.xpose.msk.msra.mxu0 %vm7991_vm1, %v8191_v16 }
 0xe34   :  { %6956 = vmatprep.subr.bf16.mxu0 %v10631_v37 }
 0xe3b   :  { %6959 = vmatpush1.bf16.xpose.msk.msra.mxu0 %vm7991_vm1, %v8203_v19 }
 0xe3c   :  { %6960 = vmatprep.subr.bf16.mxu0 %v10631_v37 }
 0xe43   :  { %6963 = vmatpush1.bf16.xpose.msk.msra.mxu0 %vm7991_vm1, %v8215_v22 }
 0xe44   :  { %6964 = vmatprep.subr.bf16.mxu0 %v10631_v37 }
 0xe4b   :  { %6967 = vmatpush1.bf16.xpose.msk.msra.mxu0 %vm7991_vm1, %v8227_v25 }
 0xe4c   :  { %7032 = vmatprep.subr.bf16.mxu0 %v10631_v37 }
 0xe85   :  { %v1632_v39 = vpop.f32.mrb[8].mxu0 }
 0xe86   :  { %v6008_v26 = vpop.f32.mrb[9].mxu0 }
 0xec5   :  { %v1705_v35 = vpop.f32.mrb[10].mxu0 }
 0xec6   :  { %v1706_v57 = vadd.f32 %v1705_v35, %v1632_v39  ;;  %v6043_v63 = vpop.f32.mrb[11].mxu0 }
 0xec8   :  { %v1709_v8 = vadd.f32 %v8621_v27, %v1706_v57  ;;  %v9056_v27 = vpop.permute.xlu1 %1719  ;;  %v1853_v57 = vrot.slane %v8896_v40, %v8304_v53 }
 0xeca   :  { %v1710_v46 = vadd.f32 %v1709_v8, %v1334_v56  ;;  %v1849_v56 = vrot.slane %v8887_v31, %v8302_v50  ;;  %v1840_v8 = vrot.slane %v8867_v44, %v8302_v50 }
 0xecc   :  { %7689 = vtanh.f32 %v1710_v46  ;;  %v5049_v7 = vmul.f32 -1.442695, %v1710_v46  ;;  %v1854_v46 = vsel %vm662_vm5, %v1853_v57, %v1849_v56  ;;  %v10650_v56 = vld [vmem:[#allocation16_spill] sm:$0xff] }
 0xece   :  { %7691 = vpow2.f32 %v5049_v7 }
 0xed6   :  { %v7690_v41 = vpop.eup %7689 }
 0xed7   :  { %1724 = vrot.lane.b32.xlu0 %v7690_v41, %s7885_s19  ;;  %v1845_v41 = vsel %vm662_vm5, %v1844_v45, %v1840_v8 }
 0xed8   :  { %v7692_v49 = vpop.eup %7691  ;;  %v1855_v40 = vsel %vm222_vm3, %v1854_v46, %v1845_v41 }
 0xed9   :  { %v1714_v30 = vadd.f32 1.0, %v7692_v49 }
 0xedb   :  { %7693 = vrcp.f32 %v1714_v30 }
 0xee5   :  { %v7694_v52 = vpop.eup %7693 }
 0xee6   :  { %v1722_v39 = vmul.f32 %v7694_v52, %v9056_v27 }
 0xf49   :  { %v1725_v34 = vpop.permute.xlu0 %1724 }
 0xf4a   :  { %v1727_v54 = vmul.f32 %v7694_v52, %v1725_v34 }
 0xf4c   :  { %1729 = vrot.lane.b32.xlu1 %v1727_v54, %s7883_s3 }
 0xf50   :  { %1816 = vperm.xlu1 %7652, %v1814_v48  }
 0xfbe   :  { %v1730_v26 = vpop.permute.xlu1 %1729 }
 0xfbf   :  { %v9059_v35 = vadd.f32 %v1730_v26, %v1722_v39  ;;  %v10648_v39 = vld [vmem:[#allocation33_spill] sm:$0xff] }
 0xfc1   :  { %7695 = vtanh.f32 %v9059_v35 }
 0xfcb   :  { %v7696_v63 = vpop.eup %7695 }
 0xfcc   :  { %1735 = vrot.lane.b32.xlu1 %v7696_v63, %s7885_s19  ;;  %v10649_v63 = vld [vmem:[#allocation15_spill] sm:$0xff] }
 0xfcf   :  { %v9073_v7 = vpop.permute.xlu1 %1816 }
 0xfd0   :  { %vm1818_vm12 = vcmp.eq.s32.totalorder %v9073_v7, 1  ;;  %1819 = vrot.lane.b32.xlu1 %v10645_v59, %s7884_s24  ;;  %v10651_v59 = vld [vmem:[#allocation17_spill] sm:$0xff] }
 0xfd1   :  { %v1857_v31 = vsel %vm1818_vm12, %v1855_v40, 0.0 }
 0xfd2   :  { %1859 = vst.msk [vmem:[#allocation7 + $0x2] sm:$0x3] %vm675_vm6, %v1857_v31 }
0x103e   :  { %v1736_v49 = vpop.permute.xlu1 %1735 }
0x103f   :  { %v9082_v44 = vmul.f32 %v7694_v52, %v1736_v49  ;;  %v10647_v52 = vld [vmem:[#allocation32_spill] sm:$0xff]  ;;  %v10652_v49 = vld [vmem:[#allocation18_spill] sm:$0xff] }
0x1042   :  { %v1820_v30 = vpop.permute.xlu1 %1819 }
0x1043   :  { %v1822_v34 = vsel %vm1818_vm12, %v9082_v44, %v1820_v30 }
0x1044   :  { %1824 = vrot.lane.b32.xlu0 %v1822_v34, %s7883_s3  ;;  %v10653_v34 = vld [vmem:[#allocation19_spill] sm:$0xff] }
0x10b6   :  { %v1825_v54 = vpop.permute.xlu0 %1824 }
0x10b7   :  { %1827 = vst.msk [vmem:[#allocation2] sm:$0x3] %vm320_vm4, %v1825_v54 }
0x10be   :  { %v9089_v48 = vld [vmem:[#allocation2] sm:$0x3] }
0x10bf   :  { %10646 = vst [vmem:[#allocation25_spill] sm:$0xff] %v9089_v48  ;;  %5091 = vmatmul.mubr.msk.f32.vlgmr.msra.gmra.mrb[12].mxu0 %vm74_vm0, %v9089_v48 }
0x10c0   :  { %7035 = vmatpush3.bf16.xpose.msk.msra.mxu0 %vm7991_vm1, %v8737_v23  ;;  %6181 = vmatprep.mubr.msk.f32.mxu0 %vm7879_vm2, %v10643_v14 }
0x10c1   :  { %7036 = vmatprep.subr.bf16.mxu0 %v10631_v37 }
0x10c8   :  { %7039 = vmatpush3.bf16.xpose.msk.msra.mxu0 %vm7991_vm1, %v8753_v62 }
0x10c9   :  { %7040 = vmatprep.subr.bf16.mxu0 %v10631_v37 }
0x10d0   :  { %7043 = vmatpush3.bf16.xpose.msk.msra.mxu0 %vm7991_vm1, %v8769_v3  ;;  %v10658_v3 = vld [vmem:[#allocation14_spill] sm:$0xff] }
0x10d1   :  { %7044 = vmatprep.subr.bf16.mxu0 %v10631_v37 }
0x10d8   :  { %7047 = vmatpush3.bf16.xpose.msk.msra.mxu0 %vm7991_vm1, %v8785_v36 }
0x10d9   :  { %7048 = vmatprep.subr.bf16.mxu0 %v10631_v37 }
0x10e0   :  { %7051 = vmatpush3.bf16.xpose.msk.msra.mxu0 %vm7991_vm1, %v8801_v33  ;;  %v10655_v33 = vld [vmem:[#allocation21_spill] sm:$0xff] }
0x10e1   :  { %7052 = vmatprep.subr.bf16.mxu0 %v10631_v37 }
0x10e8   :  { %7055 = vmatpush3.bf16.xpose.msk.msra.mxu0 %vm7991_vm1, %v8817_v9 }
0x10e9   :  { %7056 = vmatprep.subr.bf16.mxu0 %v10631_v37 }
0x10f0   :  { %7059 = vmatpush3.bf16.xpose.msk.msra.mxu0 %vm7991_vm1, %v10647_v52 }
0x10f1   :  { %7060 = vmatprep.subr.bf16.mxu0 %v10631_v37 }
0x10f8   :  { %7063 = vmatpush3.bf16.xpose.msk.msra.mxu0 %vm7991_vm1, %v10648_v39 }
0x10f9   :  { %7112 = vmatprep.subr.bf16.mxu0 %v10631_v37 }
0x1192   :  { %v9127_v26 = vpop.f32.mrb[12].mxu0 }
0x1193   :  { %v1934_v57 = vpop.f32.mrb[13].mxu0 }
0x1194   :  { %v9130_v45 = vadd.f32 %v1934_v57, %v10649_v63  ;;  %v10654_v57 = vld [vmem:[#allocation20_spill] sm:$0xff] }
0x1196   :  { %v1950_v8 = vrot.slane %v9130_v45, %v10650_v56 }
0x1198   :  { %v1951_v46 = vcombine.high %v1950_v8, %v1950_v8  ;;  %v1958_v41 = vrot.slane %v1950_v8, %v10650_v56  ;;  %v9145_v8 = vld [vmem:[%s10517_s5] ss:$0 sm:$0xff] }
0x1199   :  { %10656 = vst [vmem:[#allocation17_spill] sm:$0xff] %v9145_v8 }
0x119a   :  { %v1965_v40 = vrot.slane %v1951_v46, %v10650_v56  ;;  %v1969_v31 = vrot.slane %v1958_v41, %v10651_v59 }
0x119c   :  { %v1977_v30 = vadd.f32 %v1969_v31, %v10652_v49  ;;  %v1976_v54 = vadd.f32 %v1969_v31, %v10653_v34  ;;  %v1973_v39 = vrot.slane %v1965_v40, %v10651_v59 }
0x119e   :  { %v1981_v52 = vmax.f32 %v1977_v30, 0.0  ;;  %v1980_v9 = vmax.f32 %v1976_v54, 0.0  ;;  %v1979_v63 = vadd.f32 %v1973_v39, %v10654_v57  ;;  %v1978_v36 = vadd.f32 %v1973_v39, %v10655_v33 }
0x11a0   :  { %v1985_v46 = vmul.f32 %v9145_v8, %v1981_v52  ;;  %v1984_v41 = vmul.f32 %v9145_v8, %v1980_v9  ;;  %v1983_v49 = vmax.f32 %v1979_v63, 0.0  ;;  %v1982_v56 = vmax.f32 %v1978_v36, 0.0  ;;  %v10657_v63 = vld [vmem:[#allocation22_spill] sm:$0xff] }
0x11a2   :  { %v1991_v31 = vsel %vm74_vm0, %v1985_v46, 0.0  ;;  %v1988_v40 = vsel %vm74_vm0, %v1984_v41, 0.0  ;;  %v1987_v30 = vmul.f32 %v9145_v8, %v1983_v49  ;;  %v1986_v54 = vmul.f32 %v9145_v8, %v1982_v56 }
0x11a3   :  { %1992 = vadd.xlane.f32.xlu0 %v1991_v31  ;;  %1989 = vadd.xlane.f32.xlu1 %v1988_v40 }
0x11a4   :  { %v1997_v39 = vsel %vm74_vm0, %v1987_v30, 0.0  ;;  %v1994_v33 = vsel %vm74_vm0, %v1986_v54, 0.0 }
0x11a7   :  { %1998 = vadd.xlane.f32.xlu1 %v1997_v39  ;;  %1995 = vadd.xlane.f32.xlu0 %v1994_v33 }
0x1230   :  { %v1993_v52 = vpop.xlane.xlu0 %1992  ;;  %v1990_v9 = vpop.xlane.xlu1 %1989 }
0x1231   :  { %v2001_v36 = vadd.f32 %v1993_v52, %v10657_v63  ;;  %v2000_v46 = vadd.f32 %v1990_v9, %v10657_v63 }
0x1233   :  { %v2015_v49 = vrot.slane %v2001_v36, %v8304_v53  ;;  %v2011_v56 = vrot.slane %v2000_v46, %v8302_v50 }
0x1234   :  { %v1999_v57 = vpop.xlane.xlu1 %1998  ;;  %v1996_v41 = vpop.xlane.xlu0 %1995 }
0x1235   :  { %v2003_v31 = vadd.f32 %v1999_v57, %v10657_v63  ;;  %v2002_v40 = vadd.f32 %v1996_v41, %v10657_v63  ;;  %v2016_v54 = vsel %vm662_vm5, %v2015_v49, %v2011_v56 }
0x1237   :  { %v2024_v30 = vrot.slane %v2003_v31, %v8304_v53  ;;  %v2020_v33 = vrot.slane %v2002_v40, %v8302_v50 }
0x1239   :  { %v2025_v39 = vsel %vm662_vm5, %v2024_v30, %v2020_v33 }
0x123a   :  { %v2026_v52 = vsel %vm222_vm3, %v2025_v39, %v2016_v54 }
0x123b   :  { %v2028_v9 = vsel %vm675_vm6, %v2026_v52, -inf }
0x123c   :  { %2029 = vmax.xlane.f32.xlu0 %v2028_v9 }
0x12c9   :  { %v2030_v8 = vpop.xlane.xlu0 %2029 }
0x12ca   :  { %v2035_v34 = vrot.slane %v2030_v8, %v10651_v59  ;;  %v2039_v57 = vrot.slane %v2030_v8, %v10658_v3 }
0x12cc   :  { %v2042_v62 = vsub.f32 %v2000_v46, %v2035_v34  ;;  %v2043_v41 = vsub.f32 %v2001_v36, %v2035_v34  ;;  %v2044_v63 = vsub.f32 %v2002_v40, %v2039_v57  ;;  %v2045_v18 = vsub.f32 %v2003_v31, %v2039_v57 }
0x12ce   :  { %v2046_v23 = vmul.f32 1.442695, %v2042_v62  ;;  %v2048_v48 = vmul.f32 1.442695, %v2043_v41  ;;  %v2050_v49 = vmul.f32 1.442695, %v2044_v63 }
0x12cf   :  { %v2052_v56 = vmul.f32 1.442695, %v2045_v18 }
0x12d0   :  { %7697 = vpow2.f32 %v2046_v23 }
0x12d1   :  { %7699 = vpow2.f32 %v2048_v48 }
0x12d2   :  { %7701 = vpow2.f32 %v2050_v49 }
0x12d3   :  { %7703 = vpow2.f32 %v2052_v56 }
0x12da   :  { %v7698_v30 = vpop.eup %7697 }
0x12db   :  { %v7700_v33 = vpop.eup %7699  ;;  %2059 = vperm.xlu1 %7652, %v7698_v30  }
0x12dc   :  { %2062 = vperm.xlu0 %7651, %v7700_v33   ;;  %v7702_v54 = vpop.eup %7701 }
0x12dd   :  { %v7704_v39 = vpop.eup %7703 }
0x12df   :  { %2065 = vperm.xlu1 %7652, %v7702_v54  }
0x12e3   :  { %2068 = vperm.xlu1 %7652, %v7704_v39  }
0x135a   :  { %v2060_v8 = vpop.permute.xlu1 %2059 }
0x135b   :  { %v2063_v34 = vpop.permute.xlu0 %2062  ;;  %v2073_v23 = vrot.slane %v2060_v8, %v8302_v50 }
0x135c   :  { %v2077_v62 = vrot.slane %v2063_v34, %v8304_v53 }
0x135e   :  { %v2066_v36 = vpop.permute.xlu1 %2065  ;;  %v2078_v46 = vsel %vm662_vm5, %v2077_v62, %v2073_v23  ;;  %v10659_v23 = vld [vmem:[#allocation34_spill] sm:$0xff] }
0x135f   :  { %v2082_v48 = vrot.slane %v2066_v36, %v8302_v50 }
0x1362   :  { %v2069_v63 = vpop.permute.xlu1 %2068 }
0x1363   :  { %v2086_v18 = vrot.slane %v2069_v63, %v8304_v53 }
0x1365   :  { %v2087_v31 = vsel %vm662_vm5, %v2086_v18, %v2082_v48 }
0x1366   :  { %v2088_v40 = vsel %vm222_vm3, %v2087_v31, %v2078_v46 }
0x1367   :  { %v2090_v52 = vsel %vm675_vm6, %v2088_v40, 0.0 }
0x1368   :  { %2091 = vadd.xlane.f32.xlu0 %v2090_v52 }
0x13f5   :  { %v2092_v9 = vpop.xlane.xlu0 %2091 }
0x13f6   :  { %7705 = vrcp.f32 %v2092_v9 }
0x1400   :  { %v7706_v57 = vpop.eup %7705 }
0x1401   :  { %v2098_v41 = vrot.slane %v7706_v57, %v10651_v59  ;;  %v2102_v8 = vrot.slane %v7706_v57, %v10658_v3  ;;  %v10662_v57 = vld [vmem:[#allocation37_spill] sm:$0xff] }
0x1403   :  { %v2105_v49 = vmul.f32 %v7698_v30, %v2098_v41  ;;  %v2106_v56 = vmul.f32 %v7700_v33, %v2098_v41  ;;  %v2107_v34 = vmul.f32 %v7702_v54, %v2102_v8  ;;  %v2108_v36 = vmul.f32 %v7704_v39, %v2102_v8  ;;  %v10660_v30 = vld [vmem:[#allocation35_spill] sm:$0xff] }
0x1405   :  { %2111 = vperm.xlu1 %7652, %v2105_v49  }
0x1409   :  { %2116 = vperm.xlu1 %7652, %v2106_v56  }
0x140d   :  { %2121 = vperm.xlu1 %7652, %v2107_v34  }
0x1411   :  { %2126 = vperm.xlu1 %7652, %v2108_v36  }
0x1415   :  { %1740 = vrot.lane.b32.xlu1 %v9082_v44, %s7883_s3  ;;  %v10661_v44 = vld [vmem:[#allocation36_spill] sm:$0xff] }
0x1484   :  { %v9181_v62 = vpop.permute.xlu1 %2111 }
0x1485   :  { %v2129_v63 = vmul.f32 %v10659_v23, %v9181_v62 }
0x1487   :  { %v2133_v18 = vsel %vm74_vm0, %v2129_v63, 0.0  ;;  %v10663_v63 = vld [vmem:[#allocation23_spill] sm:$0xff] }
0x1488   :  { %v9185_v48 = vpop.permute.xlu1 %2116 }
0x1489   :  { %v2130_v33 = vmul.f32 %v10660_v30, %v9185_v48 }
0x148b   :  { %v2134_v54 = vsel %vm74_vm0, %v2130_v33, 0.0 }
0x148c   :  { %v2135_v46 = vadd.f32 %v2134_v54, %v2133_v18  ;;  %v9191_v39 = vpop.permute.xlu1 %2121 }
0x148d   :  { %v2131_v40 = vmul.f32 %v10661_v44, %v9191_v39 }
0x148e   :  { %v2136_v31 = vrot.slane %v2135_v46, 4 }
0x148f   :  { %v2142_v49 = vsel %vm74_vm0, %v2131_v40, 0.0 }
0x1490   :  { %v2137_v52 = vadd.f32 %v2136_v31, %v2135_v46  ;;  %v9195_v9 = vpop.permute.xlu1 %2126 }
0x1491   :  { %v2132_v41 = vmul.f32 %v10662_v57, %v9195_v9 }
0x1492   :  { %v2138_v36 = vrot.slane %v2137_v52, 2 }
0x1493   :  { %v2143_v56 = vsel %vm74_vm0, %v2132_v41, 0.0 }
0x1494   :  { %v2144_v8 = vadd.f32 %v2143_v56, %v2142_v49  ;;  %v1741_v34 = vpop.permute.xlu1 %1740  ;;  %v2139_v33 = vadd.f32 %v2138_v36, %v2137_v52  ;;  %v5092_v52 = vmul.f32 -1.442695, %v9130_v45  ;;  %v1828_v36 = vsel %vm1818_vm12, %v9059_v35, %v9056_v27  ;;  %v5093_v35 = vld [vmem:[%s10514_s2 + $0x4] sm:$0x3] }
0x1495   :  { %6077 = vmatmul.mubr.msk.f32.vlgmr.msra.gmra.mrb[8].mxu1 %vm74_vm0, %v1741_v34 }
0x1496   :  { %v2145_v23 = vrot.slane %v2144_v8, 4  ;;  %6971 = vmatpush3.bf16.xpose.msk.msra.mxu1 %vm7991_vm1, %v10663_v63  ;;  %6111 = vmatprep.mubr.msk.f32.mxu1 %vm7879_vm2, %v10643_v14  ;;  %v2140_v54 = vrot.slane %v2139_v33, 1  ;;  %7707 = vpow2.f32 %v5092_v52 }
0x1497   :  { %6972 = vmatprep.subr.bf16.mxu1 %v10631_v37 }
0x1498   :  { %v2146_v30 = vadd.f32 %v2145_v23, %v2144_v8  ;;  %v2141_v44 = vadd.f32 %v2140_v54, %v2139_v33 }
0x149a   :  { %v2147_v18 = vrot.slane %v2146_v30, 2 }
0x149c   :  { %v2148_v46 = vadd.f32 %v2147_v18, %v2146_v30 }
0x149e   :  { %v2149_v31 = vrot.slane %v2148_v46, 1  ;;  %6975 = vmatpush3.bf16.xpose.msk.msra.mxu1 %vm7991_vm1, %v8372_v60 }
0x149f   :  { %6976 = vmatprep.subr.bf16.mxu1 %v10631_v37 }
0x14a0   :  { %v2150_v40 = vadd.f32 %v2149_v31, %v2148_v46  ;;  %v7708_v41 = vpop.eup %7707 }
0x14a1   :  { %v1940_v49 = vadd.f32 1.0, %v7708_v41 }
0x14a2   :  { %v2153_v57 = vsel %vm222_vm3, %v2150_v40, %v2141_v44  ;;  %v1933_v40 = vadd.f32 %v9127_v26, %v8616_v24 }
0x14a3   :  { %2154 = vrot.lane.b32.xlu1 %v2153_v57, %s7883_s3  ;;  %7709 = vrcp.f32 %v1940_v49  ;;  %v9343_v57 = vld [vmem:[%s10525_s13] ss:$0 sm:$0xff] }
0x14a4   :  { %10664 = vst [vmem:[#allocation14_spill] sm:$0xff] %v9343_v57 }
0x14a6   :  { %6979 = vmatpush3.bf16.xpose.msk.msra.mxu1 %vm7991_vm1, %v8384_v1 }
0x14a7   :  { %6980 = vmatprep.subr.bf16.mxu1 %v10631_v37 }
0x14ad   :  { %v7710_v56 = vpop.eup %7709 }
0x14ae   :  { %6983 = vmatpush3.bf16.xpose.msk.msra.mxu1 %vm7991_vm1, %v8396_v2 }
0x14af   :  { %6984 = vmatprep.subr.bf16.mxu1 %v10631_v37 }
0x14b6   :  { %6987 = vmatpush3.bf16.xpose.msk.msra.mxu1 %vm7991_vm1, %v8408_v10 }
0x14b7   :  { %6988 = vmatprep.subr.bf16.mxu1 %v10631_v37 }
0x14be   :  { %6991 = vmatpush3.bf16.xpose.msk.msra.mxu1 %vm7991_vm1, %v8420_v17 }
0x14bf   :  { %6992 = vmatprep.subr.bf16.mxu1 %v10631_v37 }
0x14c6   :  { %6995 = vmatpush3.bf16.xpose.msk.msra.mxu1 %vm7991_vm1, %v8432_v21 }
0x14c7   :  { %6996 = vmatprep.subr.bf16.mxu1 %v10631_v37 }
0x14ce   :  { %6999 = vmatpush3.bf16.xpose.msk.msra.mxu1 %vm7991_vm1, %v8444_v11 }
0x14cf   :  { %7000 = vmatprep.subr.bf16.mxu1 %v10631_v37 }
0x1515   :  { %v2155_v8 = vpop.permute.xlu1 %2154 }
0x1516   :  { %v2157_v34 = vmul.f32 %v7710_v56, %v2155_v8 }
0x1518   :  { %2161 = vrot.lane.b32.xlu1 %v2157_v34, %s7884_s24 }
0x151c   :  { %1830 = vrot.lane.b32.xlu1 %v1828_v36, %s7884_s24 }
0x1568   :  { %v1810_v23 = vpop.f32.mrb[8].mxu1 }
0x1569   :  { %v1811_v30 = vadd.f32 %v8954_v28, %v1810_v23  ;;  %v6078_v45 = vpop.f32.mrb[9].mxu1 }
0x156a   :  { %v10666_v45 = vmov 0  }
0x156b   :  { %v1834_v33 = vsel %vm1818_vm12, %v1811_v30, 0.0  ;;  %v9350_v30 = vld [vmem:[%s10628_s22] sm:$0x3] }
0x156c   :  { %1836 = vst [vmem:[#allocation5 + $0x2] sm:$0x3] %v1834_v33  ;;  %10665 = vst [vmem:[#allocation34_spill] sm:$0xff] %v9350_v30  ;;  %vm1862_vm13 = vcmp.gt.s32.totalorder %v9350_v30, 2 }
0x156d   :  { %v2413_v33 = vsel %vm1862_vm13, 1, %v10666_v45 }
0x158a   :  { %v2162_v18 = vpop.permute.xlu1 %2161 }
0x158b   :  { %6112 = vmatmul.mubr.msk.f32.vlgmr.msra.gmra.mrb[10].mxu1 %vm74_vm0, %v2162_v18 }
0x158c   :  { %7003 = vmatpush3.bf16.xpose.msk.msra.mxu1 %vm8464_vm8, %v8460_v42  ;;  %6146 = vmatprep.mubr.msk.f32.mxu1 %vm7879_vm2, %v10643_v14 }
0x158d   :  { %7004 = vmatprep.subr.bf16.mxu1 %v10631_v37 }
0x158e   :  { %v1831_v27 = vpop.permute.xlu1 %1830 }
0x158f   :  { %1833 = vst.msk [vmem:[#allocation3] sm:$0x3] %vm320_vm4, %v1831_v27 }
0x1594   :  { %7007 = vmatpush3.bf16.xpose.msk.msra.mxu1 %vm8464_vm8, %v8482_v6 }
0x1595   :  { %7008 = vmatprep.subr.bf16.mxu1 %v10631_v37 }
0x1596   :  { %v1861_v28 = vld [vmem:[#allocation3] sm:$0x3] }
0x1597   :  { %2318 = vrot.lane.b32.xlu1 %v1861_v28, %s7883_s3 }
0x159c   :  { %7011 = vmatpush3.bf16.xpose.msk.msra.mxu1 %vm8464_vm8, %v8495_v20 }
0x159d   :  { %7012 = vmatprep.subr.bf16.mxu1 %v10631_v37 }
0x15a4   :  { %7015 = vmatpush3.bf16.xpose.msk.msra.mxu1 %vm8464_vm8, %v8507_v12 }
0x15a5   :  { %7016 = vmatprep.subr.bf16.mxu1 %v10631_v37 }
0x15ac   :  { %7019 = vmatpush3.bf16.xpose.msk.msra.mxu1 %vm8464_vm8, %v8519_v29 }
0x15ad   :  { %7020 = vmatprep.subr.bf16.mxu1 %v10631_v37 }
0x15b4   :  { %7023 = vmatpush3.bf16.xpose.msk.msra.mxu1 %vm8464_vm8, %v8531_v38 }
0x15b5   :  { %7024 = vmatprep.subr.bf16.mxu1 %v10631_v37 }
0x15bc   :  { %7027 = vmatpush3.bf16.xpose.msk.msra.mxu1 %vm8464_vm8, %v8543_v32 }
0x15bd   :  { %7028 = vmatprep.subr.bf16.mxu1 %v10631_v37 }
0x15c4   :  { %7031 = vmatpush3.bf16.xpose.msk.msra.mxu1 %vm8464_vm8, %v8555_v15 }
0x15c5   :  { %7064 = vmatprep.subr.bf16.mxu1 %v10631_v37 }
0x15cb   :  { %6147 = vmatmul.mubr.msk.f32.vlgmr.msra.gmra.mrb[12].mxu1 %vm930_vm7, %v5093_v35 }
0x15cc   :  { %7067 = vmatpush1.bf16.xpose.msk.msra.mxu1 %vm7991_vm1, %v8081_v43  ;;  %2529 = vmatprep.mubr.f32.mxu1 %v10643_v14 }
0x15cd   :  { %7068 = vmatprep.subr.bf16.mxu1 %v10631_v37 }
0x15d4   :  { %7071 = vmatpush1.bf16.xpose.msk.msra.mxu1 %vm7991_vm1, %v8101_v51 }
0x15d5   :  { %7072 = vmatprep.subr.bf16.mxu1 %v10631_v37 }
0x15dc   :  { %7075 = vmatpush1.bf16.xpose.msk.msra.mxu1 %vm7991_vm1, %v8119_v55 }
0x15dd   :  { %7076 = vmatprep.subr.bf16.mxu1 %v10631_v37 }
0x15e4   :  { %7079 = vmatpush1.bf16.xpose.msk.msra.mxu1 %vm7991_vm1, %v8131_v58 }
0x15e5   :  { %7080 = vmatprep.subr.bf16.mxu1 %v10631_v37 }
0x15ec   :  { %7083 = vmatpush1.bf16.xpose.msk.msra.mxu1 %vm7991_vm1, %v8143_v61 }
0x15ed   :  { %7084 = vmatprep.subr.bf16.mxu1 %v10631_v37 }
0x15f4   :  { %7087 = vmatpush1.bf16.xpose.msk.msra.mxu1 %vm7991_vm1, %v8155_v0 }
0x15f5   :  { %7088 = vmatprep.subr.bf16.mxu1 %v10631_v37 }
0x15fc   :  { %7091 = vmatpush1.bf16.xpose.msk.msra.mxu1 %vm7991_vm1, %v8167_v5 }
0x15fd   :  { %7092 = vmatprep.subr.bf16.mxu1 %v10631_v37 }
0x1604   :  { %7095 = vmatpush1.bf16.xpose.msk.msra.mxu1 %vm7991_vm1, %v8179_v13 }
0x1605   :  { %7096 = vmatprep.subr.bf16.mxu1 %v10631_v37 }
0x1609   :  { %v9355_v18 = vpop.permute.xlu1 %2318 }
0x160c   :  { %7099 = vmatpush1.bf16.xpose.msk.msra.mxu1 %vm7991_vm1, %v8191_v16 }
0x160d   :  { %7100 = vmatprep.subr.bf16.mxu1 %v10631_v37 }
0x1614   :  { %7103 = vmatpush1.bf16.xpose.msk.msra.mxu1 %vm7991_vm1, %v8203_v19 }
0x1615   :  { %7104 = vmatprep.subr.bf16.mxu1 %v10631_v37 }
0x161c   :  { %7107 = vmatpush1.bf16.xpose.msk.msra.mxu1 %vm7991_vm1, %v8215_v22 }
0x161d   :  { %7108 = vmatprep.subr.bf16.mxu1 %v10631_v37 }
0x1624   :  { %7111 = vmatpush1.bf16.xpose.msk.msra.mxu1 %vm7991_vm1, %v8227_v25 }
0x1625   :  { %7176 = vmatprep.subr.bf16.mxu1 %v10631_v37 }
0x165e   :  { %v2231_v7 = vpop.f32.mrb[10].mxu1 }
0x165f   :  { %v6113_v54 = vpop.f32.mrb[11].mxu1 }
0x169e   :  { %v2304_v46 = vpop.f32.mrb[12].mxu1 }
0x169f   :  { %v2305_v31 = vadd.f32 %v2304_v46, %v2231_v7  ;;  %v6148_v44 = vpop.f32.mrb[13].mxu1  ;;  %v2452_v7 = vrot.slane %v9195_v9, %v8304_v53  ;;  %v2443_v46 = vrot.slane %v9185_v48, %v8304_v53  ;;  %v10667_v48 = vld [vmem:[#allocation25_spill] sm:$0xff] }
0x16a0   :  { %v2439_v44 = vrot.slane %v9181_v62, %v8302_v50 }
0x16a1   :  { %v2308_v52 = vadd.f32 %v9343_v57, %v2305_v31  ;;  %v2448_v31 = vrot.slane %v9191_v39, %v8302_v50 }
0x16a3   :  { %v2309_v41 = vadd.f32 %v2308_v52, %v1933_v40  ;;  %v2453_v40 = vsel %vm662_vm5, %v2452_v7, %v2448_v31  ;;  %v2444_v52 = vsel %vm662_vm5, %v2443_v46, %v2439_v44  ;;  %v10674_v7 = vld [vmem:[#allocation31_spill] sm:$0xff]  ;;  %v10676_v46 = vld [vmem:[#allocation33_spill] sm:$0xff] }
0x16a4   :  { %v2454_v9 = vsel %vm222_vm3, %v2453_v40, %v2444_v52  ;;  %v10677_v40 = vld [vmem:[#allocation15_spill] sm:$0xff] }
0x16a5   :  { %7711 = vtanh.f32 %v2309_v41  ;;  %v5128_v56 = vmul.f32 -1.442695, %v2309_v41 }
0x16a7   :  { %7713 = vpow2.f32 %v5128_v56 }
0x16af   :  { %v7712_v49 = vpop.eup %7711 }
0x16b0   :  { %2323 = vrot.lane.b32.xlu0 %v7712_v49, %s7885_s19 }
0x16b1   :  { %v7714_v8 = vpop.eup %7713 }
0x16b2   :  { %v2313_v34 = vadd.f32 1.0, %v7714_v8 }
0x16b4   :  { %7715 = vrcp.f32 %v2313_v34 }
0x16be   :  { %v7716_v36 = vpop.eup %7715 }
0x16bf   :  { %v2321_v27 = vmul.f32 %v7716_v36, %v9355_v18 }
0x1722   :  { %v2324_v23 = vpop.permute.xlu0 %2323 }
0x1723   :  { %v2326_v26 = vmul.f32 %v7716_v36, %v2324_v23 }
0x1725   :  { %2328 = vrot.lane.b32.xlu1 %v2326_v26, %s7883_s3  ;;  %v10669_v26 = vld [vmem:[#allocation26_spill] sm:$0xff] }
0x1729   :  { %2415 = vperm.xlu1 %7652, %v2413_v33   ;;  %v10671_v33 = vld [vmem:[#allocation28_spill] sm:$0xff] }
0x1797   :  { %v2329_v28 = vpop.permute.xlu1 %2328 }
0x1798   :  { %v9358_v35 = vadd.f32 %v2329_v28, %v2321_v27  ;;  %v10672_v27 = vld [vmem:[#allocation29_spill] sm:$0xff]  ;;  %v10673_v28 = vld [vmem:[#allocation30_spill] sm:$0xff] }
0x179a   :  { %7717 = vtanh.f32 %v9358_v35 }
0x17a4   :  { %v7718_v54 = vpop.eup %7717 }
0x17a5   :  { %2334 = vrot.lane.b32.xlu1 %v7718_v54, %s7885_s19  ;;  %v10675_v54 = vld [vmem:[#allocation32_spill] sm:$0xff] }
0x17a8   :  { %v9372_v41 = vpop.permute.xlu1 %2415 }
0x17a9   :  { %vm2417_vm14 = vcmp.eq.s32.totalorder %v9372_v41, 1  ;;  %2418 = vrot.lane.b32.xlu1 %v10667_v48, %s7884_s24  ;;  %v5172_v41 = vld [vmem:[%s10514_s2 + $0x6] sm:$0x3] }
0x17aa   :  { %v2456_v39 = vsel %vm2417_vm14, %v2454_v9, 0.0  ;;  %v10678_v9 = vld [vmem:[#allocation16_spill] sm:$0xff] }
0x17ab   :  { %2458 = vst.msk [vmem:[#allocation7 + $0x4] sm:$0x3] %vm675_vm6, %v2456_v39 }
0x1817   :  { %v2335_v49 = vpop.permute.xlu1 %2334 }
0x1818   :  { %v9381_v62 = vmul.f32 %v7716_v36, %v2335_v49  ;;  %v10670_v36 = vld [vmem:[#allocation27_spill] sm:$0xff] }
0x181b   :  { %v2419_v56 = vpop.permute.xlu1 %2418 }
0x181c   :  { %v2421_v8 = vsel %vm2417_vm14, %v9381_v62, %v2419_v56 }
0x181d   :  { %2423 = vrot.lane.b32.xlu0 %v2421_v8, %s7883_s3 }
0x188f   :  { %v2424_v34 = vpop.permute.xlu0 %2423 }
0x1890   :  { %2426 = vst.msk [vmem:[#allocation2] sm:$0x3] %vm320_vm4, %v2424_v34  ;;  %v10679_v34 = vld [vmem:[#allocation18_spill] sm:$0xff] }
0x1897   :  { %v9388_v23 = vld [vmem:[#allocation2] sm:$0x3] }
0x1898   :  { %10668 = vst [vmem:[#allocation35_spill] sm:$0xff] %v9388_v23  ;;  %5170 = vmatmul.mubr.msk.f32.vlgmr.msra.gmra.mrb[14].mxu1 %vm74_vm0, %v9388_v23  ;;  %v10683_v23 = vld [vmem:[#allocation17_spill] sm:$0xff] }
0x1899   :  { %7179 = vmatpush3.bf16.xpose.msk.msra.mxu1 %vm7991_vm1, %v10669_v26  ;;  %6286 = vmatprep.mubr.msk.f32.mxu1 %vm7879_vm2, %v10643_v14 }
0x189a   :  { %7180 = vmatprep.subr.bf16.mxu1 %v10631_v37 }
0x18a1   :  { %7183 = vmatpush3.bf16.xpose.msk.msra.mxu1 %vm7991_vm1, %v10670_v36  ;;  %v10682_v36 = vld [vmem:[#allocation21_spill] sm:$0xff] }
0x18a2   :  { %7184 = vmatprep.subr.bf16.mxu1 %v10631_v37 }
0x18a9   :  { %7187 = vmatpush3.bf16.xpose.msk.msra.mxu1 %vm7991_vm1, %v10671_v33 }
0x18aa   :  { %7188 = vmatprep.subr.bf16.mxu1 %v10631_v37 }
0x18b1   :  { %7191 = vmatpush3.bf16.xpose.msk.msra.mxu1 %vm7991_vm1, %v10672_v27 }
0x18b2   :  { %7192 = vmatprep.subr.bf16.mxu1 %v10631_v37 }
0x18b9   :  { %7195 = vmatpush3.bf16.xpose.msk.msra.mxu1 %vm7991_vm1, %v10673_v28 }
0x18ba   :  { %7196 = vmatprep.subr.bf16.mxu1 %v10631_v37 }
0x18c1   :  { %7199 = vmatpush3.bf16.xpose.msk.msra.mxu1 %vm7991_vm1, %v10674_v7 }
0x18c2   :  { %7200 = vmatprep.subr.bf16.mxu1 %v10631_v37 }
0x18c9   :  { %7203 = vmatpush3.bf16.xpose.msk.msra.mxu1 %vm7991_vm1, %v10675_v54  ;;  %v10680_v54 = vld [vmem:[#allocation19_spill] sm:$0xff] }
0x18ca   :  { %7204 = vmatprep.subr.bf16.mxu1 %v10631_v37 }
0x18d1   :  { %7207 = vmatpush3.bf16.xpose.msk.msra.mxu1 %vm7991_vm1, %v10676_v46 }
0x18d2   :  { %7256 = vmatprep.subr.bf16.mxu1 %v10631_v37 }
0x196b   :  { %v9426_v31 = vpop.f32.mrb[14].mxu1 }
0x196c   :  { %v2533_v44 = vpop.f32.mrb[15].mxu1 }
0x196d   :  { %v9429_v52 = vadd.f32 %v2533_v44, %v10677_v40  ;;  %v10681_v44 = vld [vmem:[#allocation20_spill] sm:$0xff] }
0x196f   :  { %v2549_v48 = vrot.slane %v9429_v52, %v10678_v9 }
0x1971   :  { %v2550_v39 = vcombine.high %v2549_v48, %v2549_v48  ;;  %v2557_v49 = vrot.slane %v2549_v48, %v10678_v9 }
0x1973   :  { %v2564_v56 = vrot.slane %v2550_v39, %v10678_v9  ;;  %v2568_v8 = vrot.slane %v2557_v49, %v10651_v59 }
0x1975   :  { %v2576_v46 = vadd.f32 %v2568_v8, %v10679_v34  ;;  %v2575_v7 = vadd.f32 %v2568_v8, %v10680_v54  ;;  %v2572_v28 = vrot.slane %v2564_v56, %v10651_v59 }
0x1977   :  { %v2580_v27 = vmax.f32 %v2576_v46, 0.0  ;;  %v2579_v33 = vmax.f32 %v2575_v7, 0.0  ;;  %v2578_v40 = vadd.f32 %v2572_v28, %v10681_v44  ;;  %v2577_v26 = vadd.f32 %v2572_v28, %v10682_v36  ;;  %v10684_v46 = vld [vmem:[#allocation22_spill] sm:$0xff] }
0x1979   :  { %v2584_v45 = vmul.f32 %v10683_v23, %v2580_v27  ;;  %v2583_v48 = vmul.f32 %v10683_v23, %v2579_v33  ;;  %v2582_v30 = vmax.f32 %v2578_v40, 0.0  ;;  %v2581_v39 = vmax.f32 %v2577_v26, 0.0 }
0x197b   :  { %v2590_v49 = vsel %vm74_vm0, %v2584_v45, 0.0  ;;  %v2587_v34 = vsel %vm74_vm0, %v2583_v48, 0.0  ;;  %v2586_v8 = vmul.f32 %v10683_v23, %v2582_v30  ;;  %v2585_v56 = vmul.f32 %v10683_v23, %v2581_v39 }
0x197c   :  { %2591 = vadd.xlane.f32.xlu0 %v2590_v49  ;;  %2588 = vadd.xlane.f32.xlu1 %v2587_v34 }
0x197d   :  { %v2596_v7 = vsel %vm74_vm0, %v2586_v8, 0.0  ;;  %v2593_v28 = vsel %vm74_vm0, %v2585_v56, 0.0 }
0x1980   :  { %2597 = vadd.xlane.f32.xlu1 %v2596_v7  ;;  %2594 = vadd.xlane.f32.xlu0 %v2593_v28 }
0x1a09   :  { %v2592_v27 = vpop.xlane.xlu0 %2591  ;;  %v2589_v33 = vpop.xlane.xlu1 %2588 }
0x1a0a   :  { %v2600_v26 = vadd.f32 %v2592_v27, %v10684_v46  ;;  %v2599_v45 = vadd.f32 %v2589_v33, %v10684_v46 }
0x1a0c   :  { %v2614_v30 = vrot.slane %v2600_v26, %v8304_v53  ;;  %v2610_v23 = vrot.slane %v2599_v45, %v8302_v50 }
0x1a0d   :  { %v2598_v40 = vpop.xlane.xlu1 %2597  ;;  %v2595_v48 = vpop.xlane.xlu0 %2594 }
0x1a0e   :  { %v2602_v34 = vadd.f32 %v2598_v40, %v10684_v46  ;;  %v2601_v39 = vadd.f32 %v2595_v48, %v10684_v46  ;;  %v2615_v56 = vsel %vm662_vm5, %v2614_v30, %v2610_v23 }
0x1a10   :  { %v2623_v49 = vrot.slane %v2602_v34, %v8304_v53  ;;  %v2619_v8 = vrot.slane %v2601_v39, %v8302_v50 }
0x1a12   :  { %v2624_v7 = vsel %vm662_vm5, %v2623_v49, %v2619_v8 }
0x1a13   :  { %v2625_v28 = vsel %vm222_vm3, %v2624_v7, %v2615_v56 }
0x1a14   :  { %v2627_v27 = vsel %vm675_vm6, %v2625_v28, -inf }
0x1a15   :  { %2628 = vmax.xlane.f32.xlu0 %v2627_v27 }
0x1aa2   :  { %v2629_v33 = vpop.xlane.xlu0 %2628 }
0x1aa3   :  { %v2634_v44 = vrot.slane %v2629_v33, %v10651_v59  ;;  %v2638_v40 = vrot.slane %v2629_v33, %v10658_v3 }
0x1aa5   :  { %v2641_v36 = vsub.f32 %v2599_v45, %v2634_v44  ;;  %v2642_v48 = vsub.f32 %v2600_v26, %v2634_v44  ;;  %v2643_v46 = vsub.f32 %v2601_v39, %v2638_v40  ;;  %v2644_v57 = vsub.f32 %v2602_v34, %v2638_v40 }
0x1aa7   :  { %v2645_v54 = vmul.f32 1.442695, %v2641_v36  ;;  %v2647_v9 = vmul.f32 1.442695, %v2642_v48  ;;  %v2649_v30 = vmul.f32 1.442695, %v2643_v46 }
0x1aa8   :  { %v2651_v23 = vmul.f32 1.442695, %v2644_v57 }
0x1aa9   :  { %7719 = vpow2.f32 %v2645_v54 }
0x1aaa   :  { %7721 = vpow2.f32 %v2647_v9 }
0x1aab   :  { %7723 = vpow2.f32 %v2649_v30 }
0x1aac   :  { %7725 = vpow2.f32 %v2651_v23 }
0x1ab3   :  { %v7720_v49 = vpop.eup %7719 }
0x1ab4   :  { %v7722_v8 = vpop.eup %7721  ;;  %2658 = vperm.xlu1 %7652, %v7720_v49  }
0x1ab5   :  { %2661 = vperm.xlu0 %7651, %v7722_v8   ;;  %v7724_v56 = vpop.eup %7723 }
0x1ab6   :  { %v7726_v7 = vpop.eup %7725 }
0x1ab8   :  { %2664 = vperm.xlu1 %7652, %v7724_v56  }
0x1abc   :  { %2667 = vperm.xlu1 %7652, %v7726_v7  }
0x1b33   :  { %v2659_v45 = vpop.permute.xlu1 %2658 }
0x1b34   :  { %v2662_v44 = vpop.permute.xlu0 %2661  ;;  %v2672_v54 = vrot.slane %v2659_v45, %v8302_v50 }
0x1b35   :  { %v2676_v36 = vrot.slane %v2662_v44, %v8304_v53 }
0x1b37   :  { %v2665_v26 = vpop.permute.xlu1 %2664  ;;  %v2677_v34 = vsel %vm662_vm5, %v2676_v36, %v2672_v54  ;;  %v9478_v54 = vld [vmem:[%s10611_s20] sm:$0xff] }
0x1b38   :  { %v2681_v9 = vrot.slane %v2665_v26, %v8302_v50 }
0x1b3b   :  { %v2668_v46 = vpop.permute.xlu1 %2667 }
0x1b3c   :  { %v2685_v57 = vrot.slane %v2668_v46, %v8304_v53 }
0x1b3e   :  { %v2686_v39 = vsel %vm662_vm5, %v2685_v57, %v2681_v9 }
0x1b3f   :  { %v2687_v28 = vsel %vm222_vm3, %v2686_v39, %v2677_v34 }
0x1b40   :  { %v2689_v27 = vsel %vm675_vm6, %v2687_v28, 0.0 }
0x1b41   :  { %2690 = vadd.xlane.f32.xlu0 %v2689_v27 }
0x1bce   :  { %v2691_v33 = vpop.xlane.xlu0 %2690 }
0x1bcf   :  { %7727 = vrcp.f32 %v2691_v33  ;;  %v9495_v33 = vld [vmem:[%s10611_s20 + $0x10] sm:$0xff] }
0x1bd9   :  { %v7728_v40 = vpop.eup %7727 }
0x1bda   :  { %v2697_v48 = vrot.slane %v7728_v40, %v10651_v59  ;;  %v2701_v45 = vrot.slane %v7728_v40, %v10658_v3 }
0x1bdc   :  { %v2704_v30 = vmul.f32 %v7720_v49, %v2697_v48  ;;  %v2705_v23 = vmul.f32 %v7722_v8, %v2697_v48  ;;  %v2706_v44 = vmul.f32 %v7724_v56, %v2701_v45  ;;  %v2707_v26 = vmul.f32 %v7726_v7, %v2701_v45  ;;  %v9485_v56 = vld [vmem:[%s10611_s20 + $0x8] sm:$0xff]  ;;  %v9502_v45 = vld [vmem:[%s10611_s20 + $0x18] sm:$0xff] }
0x1bde   :  { %2710 = vperm.xlu1 %7652, %v2704_v30  }
0x1be2   :  { %2715 = vperm.xlu1 %7652, %v2705_v23  }
0x1be6   :  { %2720 = vperm.xlu1 %7652, %v2706_v44  }
0x1bea   :  { %2725 = vperm.xlu1 %7652, %v2707_v26  }
0x1bee   :  { %2339 = vrot.lane.b32.xlu1 %v9381_v62, %s7883_s3 }
0x1c5d   :  { %v2711_v36 = vpop.permute.xlu1 %2710 }
0x1c5e   :  { %v2728_v49 = vmul.f32 %v9478_v54, %v2711_v36  ;;  %v3038_v8 = vrot.slane %v2711_v36, %v8302_v50 }
0x1c60   :  { %v2732_v9 = vsel %vm74_vm0, %v2728_v49, 0.0 }
0x1c61   :  { %v2716_v46 = vpop.permute.xlu1 %2715 }
0x1c62   :  { %v2729_v7 = vmul.f32 %v9485_v56, %v2716_v46  ;;  %v3042_v62 = vrot.slane %v2716_v46, %v8304_v53 }
0x1c64   :  { %v2733_v57 = vsel %vm74_vm0, %v2729_v7, 0.0  ;;  %v3043_v34 = vsel %vm662_vm5, %v3042_v62, %v3038_v8 }
0x1c65   :  { %v2734_v39 = vadd.f32 %v2733_v57, %v2732_v9  ;;  %v2721_v28 = vpop.permute.xlu1 %2720 }
0x1c66   :  { %v2730_v40 = vmul.f32 %v9495_v33, %v2721_v28  ;;  %v3047_v23 = vrot.slane %v2721_v28, %v8302_v50 }
0x1c67   :  { %v2735_v27 = vrot.slane %v2734_v39, 4 }
0x1c68   :  { %v2741_v36 = vsel %vm74_vm0, %v2730_v40, 0.0 }
0x1c69   :  { %v2736_v48 = vadd.f32 %v2735_v27, %v2734_v39  ;;  %v2726_v30 = vpop.permute.xlu1 %2725 }
0x1c6a   :  { %v2731_v44 = vmul.f32 %v9502_v45, %v2726_v30  ;;  %v3051_v26 = vrot.slane %v2726_v30, %v8304_v53 }
0x1c6b   :  { %v2737_v8 = vrot.slane %v2736_v48, 2 }
0x1c6c   :  { %v2742_v49 = vsel %vm74_vm0, %v2731_v44, 0.0  ;;  %v3052_v46 = vsel %vm662_vm5, %v3051_v26, %v3047_v23 }
0x1c6d   :  { %v2743_v7 = vadd.f32 %v2742_v49, %v2741_v36  ;;  %v2340_v62 = vpop.permute.xlu1 %2339  ;;  %v9510_v9 = vsel %vm222_vm3, %v3052_v46, %v3043_v34  ;;  %v2738_v39 = vadd.f32 %v2737_v8, %v2736_v48  ;;  %v5171_v48 = vmul.f32 -1.442695, %v9429_v52  ;;  %v9559_v52 = vld [vmem:[%s10527_s15] ss:$0 sm:$0xff] }
0x1c6e   :  { %6182 = vmatmul.mubr.msk.f32.vlgmr.msra.gmra.mrb[14].mxu0 %vm74_vm0, %v2340_v62  ;;  %v2427_v62 = vsel %vm2417_vm14, %v9358_v35, %v9355_v18 }
0x1c6f   :  { %v2744_v57 = vrot.slane %v2743_v7, 4  ;;  %7115 = vmatpush3.bf16.xpose.msk.msra.mxu0 %vm7991_vm1, %v10663_v63  ;;  %6216 = vmatprep.mubr.msk.f32.mxu0 %vm7879_vm2, %v10643_v14  ;;  %v2739_v30 = vrot.slane %v2738_v39, 1  ;;  %7729 = vpow2.f32 %v5171_v48  ;;  %v2532_v48 = vadd.f32 %v9426_v31, %v8616_v24 }
0x1c70   :  { %7116 = vmatprep.subr.bf16.mxu0 %v10631_v37  ;;  %v10687_v31 = vmov 0  }
0x1c71   :  { %v2745_v28 = vadd.f32 %v2744_v57, %v2743_v7  ;;  %v2740_v34 = vadd.f32 %v2739_v30, %v2738_v39 }
0x1c73   :  { %v2746_v27 = vrot.slane %v2745_v28, 2 }
0x1c75   :  { %v2747_v40 = vadd.f32 %v2746_v27, %v2745_v28 }
0x1c77   :  { %v2748_v23 = vrot.slane %v2747_v40, 1  ;;  %7119 = vmatpush3.bf16.xpose.msk.msra.mxu0 %vm7991_vm1, %v8372_v60 }
0x1c78   :  { %7120 = vmatprep.subr.bf16.mxu0 %v10631_v37 }
0x1c79   :  { %v2749_v44 = vadd.f32 %v2748_v23, %v2747_v40  ;;  %v7730_v36 = vpop.eup %7729 }
0x1c7a   :  { %v2539_v49 = vadd.f32 1.0, %v7730_v36  ;;  %v10685_v36 = vld [vmem:[#allocation14_spill] sm:$0xff] }
0x1c7b   :  { %v2752_v26 = vsel %vm222_vm3, %v2749_v44, %v2740_v34 }
0x1c7c   :  { %2753 = vrot.lane.b32.xlu1 %v2752_v26, %s7883_s3  ;;  %7731 = vrcp.f32 %v2539_v49 }
0x1c7f   :  { %7123 = vmatpush3.bf16.xpose.msk.msra.mxu0 %vm7991_vm1, %v8384_v1 }
0x1c80   :  { %7124 = vmatprep.subr.bf16.mxu0 %v10631_v37 }
0x1c86   :  { %v7732_v46 = vpop.eup %7731 }
0x1c87   :  { %7127 = vmatpush3.bf16.xpose.msk.msra.mxu0 %vm7991_vm1, %v8396_v2 }
0x1c88   :  { %7128 = vmatprep.subr.bf16.mxu0 %v10631_v37 }
0x1c8f   :  { %7131 = vmatpush3.bf16.xpose.msk.msra.mxu0 %vm7991_vm1, %v8408_v10 }
0x1c90   :  { %7132 = vmatprep.subr.bf16.mxu0 %v10631_v37 }
0x1c97   :  { %7135 = vmatpush3.bf16.xpose.msk.msra.mxu0 %vm7991_vm1, %v8420_v17 }
0x1c98   :  { %7136 = vmatprep.subr.bf16.mxu0 %v10631_v37 }
0x1c9f   :  { %7139 = vmatpush3.bf16.xpose.msk.msra.mxu0 %vm7991_vm1, %v8432_v21 }
0x1ca0   :  { %7140 = vmatprep.subr.bf16.mxu0 %v10631_v37 }
0x1ca7   :  { %7143 = vmatpush3.bf16.xpose.msk.msra.mxu0 %vm7991_vm1, %v8444_v11 }
0x1ca8   :  { %7144 = vmatprep.subr.bf16.mxu0 %v10631_v37 }
0x1cee   :  { %v2754_v8 = vpop.permute.xlu1 %2753 }
0x1cef   :  { %v2756_v7 = vmul.f32 %v7732_v46, %v2754_v8 }
0x1cf1   :  { %2760 = vrot.lane.b32.xlu1 %v2756_v7, %s7884_s24 }
0x1cf5   :  { %2429 = vrot.lane.b32.xlu1 %v2427_v62, %s7884_s24 }
0x1d41   :  { %v2409_v57 = vpop.f32.mrb[14].mxu0 }
0x1d42   :  { %v2410_v39 = vadd.f32 %v9559_v52, %v2409_v57  ;;  %v6183_v28 = vpop.f32.mrb[15].mxu0 }
0x1d44   :  { %v2433_v27 = vsel %vm2417_vm14, %v2410_v39, 0.0 }
0x1d45   :  { %2435 = vst [vmem:[#allocation5 + $0x4] sm:$0x3] %v2433_v27 }
0x1d63   :  { %v2761_v40 = vpop.permute.xlu1 %2760 }
0x1d64   :  { %6217 = vmatmul.mubr.msk.f32.vlgmr.msra.gmra.mrb[16].mxu0 %vm74_vm0, %v2761_v40  ;;  %v10686_v40 = vld [vmem:[#allocation34_spill] sm:$0xff] }
0x1d65   :  { %7147 = vmatpush3.bf16.xpose.msk.msra.mxu0 %vm8464_vm8, %v8460_v42  ;;  %6251 = vmatprep.mubr.msk.f32.mxu0 %vm7879_vm2, %v10643_v14  ;;  %vm2461_vm15 = vcmp.gt.s32.totalorder %v10686_v40, 3  ;;  %v10695_v40 = vld [vmem:[#allocation31_spill] sm:$0xff] }
0x1d66   :  { %7148 = vmatprep.subr.bf16.mxu0 %v10631_v37 }
0x1d67   :  { %v2430_v18 = vpop.permute.xlu1 %2429 }
0x1d68   :  { %2432 = vst.msk [vmem:[#allocation3] sm:$0x3] %vm320_vm4, %v2430_v18  ;;  %v3012_v18 = vsel %vm2461_vm15, 1, %v10687_v31  ;;  %v10704_v31 = vld [vmem:[#allocation20_spill] sm:$0xff] }
0x1d6d   :  { %7151 = vmatpush3.bf16.xpose.msk.msra.mxu0 %vm8464_vm8, %v8482_v6 }
0x1d6e   :  { %7152 = vmatprep.subr.bf16.mxu0 %v10631_v37 }
0x1d6f   :  { %v2460_v35 = vld [vmem:[#allocation3] sm:$0x3] }
0x1d70   :  { %2917 = vrot.lane.b32.xlu1 %v2460_v35, %s7883_s3 }
0x1d75   :  { %7155 = vmatpush3.bf16.xpose.msk.msra.mxu0 %vm8464_vm8, %v8495_v20 }
0x1d76   :  { %7156 = vmatprep.subr.bf16.mxu0 %v10631_v37 }
0x1d7d   :  { %7159 = vmatpush3.bf16.xpose.msk.msra.mxu0 %vm8464_vm8, %v8507_v12 }
0x1d7e   :  { %7160 = vmatprep.subr.bf16.mxu0 %v10631_v37 }
0x1d85   :  { %7163 = vmatpush3.bf16.xpose.msk.msra.mxu0 %vm8464_vm8, %v8519_v29 }
0x1d86   :  { %7164 = vmatprep.subr.bf16.mxu0 %v10631_v37 }
0x1d8d   :  { %7167 = vmatpush3.bf16.xpose.msk.msra.mxu0 %vm8464_vm8, %v8531_v38 }
0x1d8e   :  { %7168 = vmatprep.subr.bf16.mxu0 %v10631_v37 }
0x1d95   :  { %7171 = vmatpush3.bf16.xpose.msk.msra.mxu0 %vm8464_vm8, %v8543_v32 }
0x1d96   :  { %7172 = vmatprep.subr.bf16.mxu0 %v10631_v37 }
0x1d9d   :  { %7175 = vmatpush3.bf16.xpose.msk.msra.mxu0 %vm8464_vm8, %v8555_v15 }
0x1d9e   :  { %7208 = vmatprep.subr.bf16.mxu0 %v10631_v37 }
0x1da4   :  { %6252 = vmatmul.mubr.msk.f32.vlgmr.msra.gmra.mrb[18].mxu0 %vm930_vm7, %v5172_v41 }
0x1da5   :  { %7211 = vmatpush1.bf16.xpose.msk.msra.mxu0 %vm7991_vm1, %v8081_v43  ;;  %3128 = vmatprep.mubr.f32.mxu0 %v10643_v14 }
0x1da6   :  { %7212 = vmatprep.subr.bf16.mxu0 %v10631_v37 }
0x1dad   :  { %7215 = vmatpush1.bf16.xpose.msk.msra.mxu0 %vm7991_vm1, %v8101_v51 }
0x1dae   :  { %7216 = vmatprep.subr.bf16.mxu0 %v10631_v37 }
0x1db5   :  { %7219 = vmatpush1.bf16.xpose.msk.msra.mxu0 %vm7991_vm1, %v8119_v55 }
0x1db6   :  { %7220 = vmatprep.subr.bf16.mxu0 %v10631_v37 }
0x1dbd   :  { %7223 = vmatpush1.bf16.xpose.msk.msra.mxu0 %vm7991_vm1, %v8131_v58 }
0x1dbe   :  { %7224 = vmatprep.subr.bf16.mxu0 %v10631_v37 }
0x1dc5   :  { %7227 = vmatpush1.bf16.xpose.msk.msra.mxu0 %vm7991_vm1, %v8143_v61 }
0x1dc6   :  { %7228 = vmatprep.subr.bf16.mxu0 %v10631_v37 }
0x1dcd   :  { %7231 = vmatpush1.bf16.xpose.msk.msra.mxu0 %vm7991_vm1, %v8155_v0 }
0x1dce   :  { %7232 = vmatprep.subr.bf16.mxu0 %v10631_v37 }
0x1dd5   :  { %7235 = vmatpush1.bf16.xpose.msk.msra.mxu0 %vm7991_vm1, %v8167_v5 }
0x1dd6   :  { %7236 = vmatprep.subr.bf16.mxu0 %v10631_v37 }
0x1ddd   :  { %7239 = vmatpush1.bf16.xpose.msk.msra.mxu0 %vm7991_vm1, %v8179_v13 }
0x1dde   :  { %7240 = vmatprep.subr.bf16.mxu0 %v10631_v37 }
0x1de2   :  { %v9661_v35 = vpop.permute.xlu1 %2917 }
0x1de5   :  { %7243 = vmatpush1.bf16.xpose.msk.msra.mxu0 %vm7991_vm1, %v8191_v16 }
0x1de6   :  { %7244 = vmatprep.subr.bf16.mxu0 %v10631_v37 }
0x1ded   :  { %7247 = vmatpush1.bf16.xpose.msk.msra.mxu0 %vm7991_vm1, %v8203_v19 }
0x1dee   :  { %7248 = vmatprep.subr.bf16.mxu0 %v10631_v37 }
0x1df5   :  { %7251 = vmatpush1.bf16.xpose.msk.msra.mxu0 %vm7991_vm1, %v8215_v22 }
0x1df6   :  { %7252 = vmatprep.subr.bf16.mxu0 %v10631_v37 }
0x1dfd   :  { %7255 = vmatpush1.bf16.xpose.msk.msra.mxu0 %vm7991_vm1, %v8227_v25 }
0x1dfe   :  { %7320 = vmatprep.subr.bf16.mxu0 %v10631_v37 }
0x1e37   :  { %v2830_v30 = vpop.f32.mrb[16].mxu0 }
0x1e38   :  { %v6218_v23 = vpop.f32.mrb[17].mxu0 }
0x1e77   :  { %v2903_v34 = vpop.f32.mrb[18].mxu0 }
0x1e78   :  { %v2904_v44 = vadd.f32 %v2903_v34, %v2830_v30  ;;  %v6253_v26 = vpop.f32.mrb[19].mxu0 }
0x1e79   :  { %v10688_v26 = vld [vmem:[#allocation35_spill] sm:$0xff] }
0x1e7a   :  { %v2907_v49 = vadd.f32 %v10685_v36, %v2904_v44 }
0x1e7c   :  { %v2908_v46 = vadd.f32 %v2907_v49, %v2532_v48 }
0x1e7e   :  { %7733 = vtanh.f32 %v2908_v46  ;;  %v5207_v7 = vmul.f32 -1.442695, %v2908_v46 }
0x1e80   :  { %7735 = vpow2.f32 %v5207_v7 }
0x1e88   :  { %v7734_v8 = vpop.eup %7733 }
0x1e89   :  { %2922 = vrot.lane.b32.xlu0 %v7734_v8, %s7885_s19 }
0x1e8a   :  { %v7736_v62 = vpop.eup %7735 }
0x1e8b   :  { %v2912_v57 = vadd.f32 1.0, %v7736_v62 }
0x1e8d   :  { %7737 = vrcp.f32 %v2912_v57  ;;  %v10691_v57 = vld [vmem:[#allocation27_spill] sm:$0xff] }
0x1e97   :  { %v7738_v39 = vpop.eup %7737 }
0x1e98   :  { %v2920_v41 = vmul.f32 %v7738_v39, %v9661_v35 }
0x1efb   :  { %v2923_v28 = vpop.permute.xlu0 %2922 }
0x1efc   :  { %v2925_v27 = vmul.f32 %v7738_v39, %v2923_v28  ;;  %v10693_v28 = vld [vmem:[#allocation29_spill] sm:$0xff] }
0x1efe   :  { %2927 = vrot.lane.b32.xlu1 %v2925_v27, %s7883_s3  ;;  %v10694_v27 = vld [vmem:[#allocation30_spill] sm:$0xff] }
0x1f02   :  { %3014 = vperm.xlu1 %7652, %v3012_v18   ;;  %v10696_v18 = vld [vmem:[#allocation32_spill] sm:$0xff] }
0x1f70   :  { %v2928_v30 = vpop.permute.xlu1 %2927 }
0x1f71   :  { %v9664_v23 = vadd.f32 %v2928_v30, %v2920_v41  ;;  %v10697_v41 = vld [vmem:[#allocation33_spill] sm:$0xff] }
0x1f73   :  { %7739 = vtanh.f32 %v9664_v23 }
0x1f7d   :  { %v7740_v34 = vpop.eup %7739 }
0x1f7e   :  { %2933 = vrot.lane.b32.xlu1 %v7740_v34, %s7885_s19 }
0x1f81   :  { %v9668_v44 = vpop.permute.xlu1 %3014 }
0x1f82   :  { %vm3016_vm9 = vcmp.eq.s32.totalorder %v9668_v44, 1  ;;  %3017 = vrot.lane.b32.xlu1 %v10688_v26, %s7884_s24  ;;  %v10699_v26 = vld [vmem:[#allocation15_spill] sm:$0xff] }
0x1f83   :  { %v3055_v48 = vsel %vm3016_vm9, %v9510_v9, 0.0  ;;  %v10690_v9 = vld [vmem:[#allocation26_spill] sm:$0xff]  ;;  %v10707_v44 = vld [vmem:[#allocation11_spill] sm:$0xff] }
0x1f84   :  { %3057 = vst.msk [vmem:[#allocation7 + $0x6] sm:$0x3] %vm675_vm6, %v3055_v48 }
0x1ff0   :  { %v2934_v36 = vpop.permute.xlu1 %2933 }
0x1ff1   :  { %v9677_v49 = vmul.f32 %v7738_v39, %v2934_v36  ;;  %v10692_v39 = vld [vmem:[#allocation28_spill] sm:$0xff] }
0x1ff2   :  { %v10700_v36 = vld [vmem:[#allocation16_spill] sm:$0xff] }
0x1ff4   :  { %v3018_v46 = vpop.permute.xlu1 %3017 }
0x1ff5   :  { %v3020_v8 = vsel %vm3016_vm9, %v9677_v49, %v3018_v46 }
0x1ff6   :  { %3022 = vrot.lane.b32.xlu1 %v3020_v8, %s7883_s3 }
0x2068   :  { %v3023_v7 = vpop.permute.xlu1 %3022 }
0x2069   :  { %3025 = vst.msk [vmem:[#allocation2] sm:$0x3] %vm320_vm4, %v3023_v7 }
0x2070   :  { %v9684_v62 = vld [vmem:[#allocation2] sm:$0x3] }
0x2071   :  { %10689 = vst [vmem:[#allocation36_spill] sm:$0xff] %v9684_v62  ;;  %5249 = vmatmul.mubr.msk.f32.vlgmr.msra.gmra.mrb[20].mxu0 %vm74_vm0, %v9684_v62 }
0x2072   :  { %7323 = vmatpush3.bf16.xpose.msk.msra.mxu0 %vm7991_vm1, %v10690_v9  ;;  %6391 = vmatprep.mubr.msk.f32.mxu0 %vm7879_vm2, %v10643_v14 }
0x2073   :  { %7324 = vmatprep.subr.bf16.mxu0 %v10631_v37 }
0x207a   :  { %7327 = vmatpush3.bf16.xpose.msk.msra.mxu0 %vm7991_vm1, %v10691_v57 }
0x207b   :  { %7328 = vmatprep.subr.bf16.mxu0 %v10631_v37 }
0x2082   :  { %7331 = vmatpush3.bf16.xpose.msk.msra.mxu0 %vm7991_vm1, %v10692_v39 }
0x2083   :  { %7332 = vmatprep.subr.bf16.mxu0 %v10631_v37 }
0x208a   :  { %7335 = vmatpush3.bf16.xpose.msk.msra.mxu0 %vm7991_vm1, %v10693_v28  ;;  %v10702_v28 = vld [vmem:[#allocation19_spill] sm:$0xff] }
0x208b   :  { %7336 = vmatprep.subr.bf16.mxu0 %v10631_v37 }
0x2092   :  { %7339 = vmatpush3.bf16.xpose.msk.msra.mxu0 %vm7991_vm1, %v10694_v27  ;;  %v10701_v27 = vld [vmem:[#allocation18_spill] sm:$0xff] }
0x2093   :  { %7340 = vmatprep.subr.bf16.mxu0 %v10631_v37 }
0x209a   :  { %7343 = vmatpush3.bf16.xpose.msk.msra.mxu0 %vm7991_vm1, %v10695_v40 }
0x209b   :  { %7344 = vmatprep.subr.bf16.mxu0 %v10631_v37 }
0x20a2   :  { %7347 = vmatpush3.bf16.xpose.msk.msra.mxu0 %vm7991_vm1, %v10696_v18 }
0x20a3   :  { %7348 = vmatprep.subr.bf16.mxu0 %v10631_v37 }
0x20aa   :  { %7351 = vmatpush3.bf16.xpose.msk.msra.mxu0 %vm7991_vm1, %v10697_v41 }
0x20ab   :  { %7400 = vmatprep.subr.bf16.mxu0 %v10631_v37 }
0x2144   :  { %v9722_v30 = vpop.f32.mrb[20].mxu0 }
0x2145   :  { %10698 = vst [vmem:[#allocation37_spill] sm:$0xff] %v9722_v30  ;;  %v3132_v34 = vpop.f32.mrb[21].mxu0 }
0x2146   :  { %v9725_v48 = vadd.f32 %v3132_v34, %v10699_v26  ;;  %v10703_v34 = vld [vmem:[#allocation21_spill] sm:$0xff] }
0x2148   :  { %v3148_v46 = vrot.slane %v9725_v48, %v10700_v36 }
0x214a   :  { %v3149_v8 = vcombine.high %v3148_v46, %v3148_v46  ;;  %v3156_v7 = vrot.slane %v3148_v46, %v10700_v36  ;;  %v9740_v46 = vld [vmem:[%s10517_s5] ss:$0 sm:$0xff] }
0x214b   :  { %10705 = vst [vmem:[#allocation23_spill] sm:$0xff] %v9740_v46 }
0x214c   :  { %v3163_v18 = vrot.slane %v3149_v8, %v10700_v36  ;;  %v3167_v40 = vrot.slane %v3156_v7, %v10651_v59 }
0x214e   :  { %v3175_v41 = vadd.f32 %v3167_v40, %v10701_v27  ;;  %v3174_v39 = vadd.f32 %v3167_v40, %v10702_v28  ;;  %v3171_v57 = vrot.slane %v3163_v18, %v10651_v59  ;;  %v10706_v28 = vld [vmem:[#allocation22_spill] sm:$0xff] }
0x2150   :  { %v3179_v9 = vmax.f32 %v3175_v41, 0.0  ;;  %v3178_v62 = vmax.f32 %v3174_v39, 0.0  ;;  %v3176_v26 = vadd.f32 %v3171_v57, %v10703_v34  ;;  %v3177_v30 = vadd.f32 %v3171_v57, %v10704_v31 }
0x2152   :  { %v3183_v8 = vmul.f32 %v9740_v46, %v3179_v9  ;;  %v3182_v7 = vmul.f32 %v9740_v46, %v3178_v62  ;;  %v3180_v27 = vmax.f32 %v3176_v26, 0.0  ;;  %v3181_v41 = vmax.f32 %v3177_v30, 0.0 }
0x2154   :  { %v3189_v40 = vsel %vm74_vm0, %v3183_v8, 0.0  ;;  %v3186_v18 = vsel %vm74_vm0, %v3182_v7, 0.0  ;;  %v3184_v39 = vmul.f32 %v9740_v46, %v3180_v27  ;;  %v3185_v34 = vmul.f32 %v9740_v46, %v3181_v41 }
0x2155   :  { %3190 = vadd.xlane.f32.xlu1 %v3189_v40  ;;  %3187 = vadd.xlane.f32.xlu0 %v3186_v18 }
0x2156   :  { %v3192_v57 = vsel %vm74_vm0, %v3184_v39, 0.0  ;;  %v3195_v31 = vsel %vm74_vm0, %v3185_v34, 0.0 }
0x2159   :  { %3193 = vadd.xlane.f32.xlu0 %v3192_v57 }
0x215d   :  { %3196 = vadd.xlane.f32.xlu0 %v3195_v31 }
0x21e2   :  { %v3188_v9 = vpop.xlane.xlu0 %3187  ;;  %v3191_v62 = vpop.xlane.xlu1 %3190 }
0x21e3   :  { %v3199_v8 = vadd.f32 %v3191_v62, %v10706_v28  ;;  %v3198_v7 = vadd.f32 %v3188_v9, %v10706_v28 }
0x21e5   :  { %v3213_v40 = vrot.slane %v3199_v8, %v8304_v53  ;;  %v3209_v18 = vrot.slane %v3198_v7, %v8302_v50 }
0x21e6   :  { %v3194_v26 = vpop.xlane.xlu0 %3193 }
0x21e7   :  { %v3200_v27 = vadd.f32 %v3194_v26, %v10706_v28  ;;  %v3214_v34 = vsel %vm662_vm5, %v3213_v40, %v3209_v18 }
0x21e9   :  { %v3218_v41 = vrot.slane %v3200_v27, %v8302_v50 }
0x21ea   :  { %v3197_v30 = vpop.xlane.xlu0 %3196 }
0x21eb   :  { %v3201_v39 = vadd.f32 %v3197_v30, %v10706_v28 }
0x21ed   :  { %v3222_v31 = vrot.slane %v3201_v39, %v8304_v53 }
0x21ef   :  { %v3223_v57 = vsel %vm662_vm5, %v3222_v31, %v3218_v41 }
0x21f0   :  { %v3224_v62 = vsel %vm222_vm3, %v3223_v57, %v3214_v34 }
0x21f1   :  { %v3226_v9 = vsel %vm675_vm6, %v3224_v62, -inf }
0x21f2   :  { %3227 = vmax.xlane.f32.xlu0 %v3226_v9 }
0x227f   :  { %v3228_v26 = vpop.xlane.xlu0 %3227 }
0x2280   :  { %v3233_v46 = vrot.slane %v3228_v26, %v10651_v59  ;;  %v3237_v36 = vrot.slane %v3228_v26, %v10658_v3 }
0x2282   :  { %v3240_v24 = vsub.f32 %v3198_v7, %v3233_v46  ;;  %v3241_v30 = vsub.f32 %v3199_v8, %v3233_v46  ;;  %v3242_v28 = vsub.f32 %v3200_v27, %v3237_v36  ;;  %v3243_v19 = vsub.f32 %v3201_v39, %v3237_v36 }
0x2284   :  { %v3244_v25 = vmul.f32 1.442695, %v3240_v24  ;;  %v3246_v22 = vmul.f32 1.442695, %v3241_v30  ;;  %v3248_v40 = vmul.f32 1.442695, %v3242_v28 }
0x2285   :  { %v3250_v18 = vmul.f32 1.442695, %v3243_v19 }
0x2286   :  { %7741 = vpow2.f32 %v3244_v25 }
0x2287   :  { %7743 = vpow2.f32 %v3246_v22 }
0x2288   :  { %7745 = vpow2.f32 %v3248_v40 }
0x2289   :  { %7747 = vpow2.f32 %v3250_v18 }
0x2290   :  { %v7742_v41 = vpop.eup %7741 }
0x2291   :  { %v7744_v31 = vpop.eup %7743  ;;  %3257 = vperm.xlu1 %7652, %v7742_v41  }
0x2292   :  { %3260 = vperm.xlu0 %7651, %v7744_v31   ;;  %v7746_v34 = vpop.eup %7745 }
0x2293   :  { %v7748_v57 = vpop.eup %7747 }
0x2295   :  { %3263 = vperm.xlu1 %7652, %v7746_v34  }
0x2299   :  { %3266 = vperm.xlu1 %7652, %v7748_v57  }
0x2310   :  { %v3258_v7 = vpop.permute.xlu1 %3257 }
0x2311   :  { %v3261_v46 = vpop.permute.xlu0 %3260  ;;  %v3271_v25 = vrot.slane %v3258_v7, %v8302_v50 }
0x2312   :  { %v3275_v24 = vrot.slane %v3261_v46, %v8304_v53 }
0x2314   :  { %v3264_v8 = vpop.permute.xlu1 %3263  ;;  %v3276_v36 = vsel %vm662_vm5, %v3275_v24, %v3271_v25 }
0x2315   :  { %v3280_v22 = vrot.slane %v3264_v8, %v8302_v50 }
0x2318   :  { %v3267_v28 = vpop.permute.xlu1 %3266 }
0x2319   :  { %v3284_v19 = vrot.slane %v3267_v28, %v8304_v53 }
0x231b   :  { %v3285_v27 = vsel %vm662_vm5, %v3284_v19, %v3280_v22 }
0x231c   :  { %v3286_v39 = vsel %vm222_vm3, %v3285_v27, %v3276_v36 }
0x231d   :  { %v3288_v62 = vsel %vm675_vm6, %v3286_v39, 0.0 }
0x231e   :  { %3289 = vadd.xlane.f32.xlu1 %v3288_v62 }
0x23ab   :  { %v3290_v9 = vpop.xlane.xlu1 %3289 }
0x23ac   :  { %7749 = vrcp.f32 %v3290_v9 }
0x23b6   :  { %v7750_v26 = vpop.eup %7749 }
0x23b7   :  { %v3296_v30 = vrot.slane %v7750_v26, %v10651_v59  ;;  %v3300_v7 = vrot.slane %v7750_v26, %v10658_v3 }
0x23b9   :  { %v3303_v40 = vmul.f32 %v7742_v41, %v3296_v30  ;;  %v3304_v18 = vmul.f32 %v7744_v31, %v3296_v30  ;;  %v3305_v46 = vmul.f32 %v7746_v34, %v3300_v7  ;;  %v3306_v8 = vmul.f32 %v7748_v57, %v3300_v7 }
0x23bb   :  { %3309 = vperm.xlu0 %7651, %v3303_v40  }
0x23bf   :  { %3314 = vperm.xlu0 %7651, %v3304_v18  }
0x23c3   :  { %3319 = vperm.xlu0 %7651, %v3305_v46  }
0x23c7   :  { %3324 = vperm.xlu0 %7651, %v3306_v8  }
0x23cb   :  { %2938 = vrot.lane.b32.xlu0 %v9677_v49, %s7883_s3 }
0x243a   :  { %v3310_v24 = vpop.permute.xlu0 %3309 }
0x243b   :  { %v3327_v25 = vmul.f32 %v9478_v54, %v3310_v24  ;;  %v3637_v22 = vrot.slane %v3310_v24, %v8302_v50 }
0x243d   :  { %v3331_v19 = vsel %vm74_vm0, %v3327_v25, 0.0 }
0x243e   :  { %v3315_v28 = vpop.permute.xlu0 %3314 }
0x243f   :  { %v3328_v41 = vmul.f32 %v9485_v56, %v3315_v28  ;;  %v3641_v31 = vrot.slane %v3315_v28, %v8304_v53 }
0x2441   :  { %v3332_v34 = vsel %vm74_vm0, %v3328_v41, 0.0  ;;  %v3642_v57 = vsel %vm662_vm5, %v3641_v31, %v3637_v22 }
0x2442   :  { %v3333_v36 = vadd.f32 %v3332_v34, %v3331_v19  ;;  %v3320_v27 = vpop.permute.xlu0 %3319 }
0x2443   :  { %v3329_v49 = vmul.f32 %v9495_v33, %v3320_v27  ;;  %v3646_v9 = vrot.slane %v3320_v27, %v8302_v50 }
0x2444   :  { %v3334_v39 = vrot.slane %v3333_v36, 4 }
0x2445   :  { %v3340_v30 = vsel %vm74_vm0, %v3329_v49, 0.0 }
0x2446   :  { %v3335_v62 = vadd.f32 %v3334_v39, %v3333_v36  ;;  %v3325_v54 = vpop.permute.xlu0 %3324  ;;  %v5250_v36 = vmul.f32 -1.442695, %v9725_v48 }
0x2447   :  { %v3330_v26 = vmul.f32 %v9502_v45, %v3325_v54  ;;  %v3650_v56 = vrot.slane %v3325_v54, %v8304_v53 }
0x2448   :  { %v3336_v7 = vrot.slane %v3335_v62, 2  ;;  %7751 = vpow2.f32 %v5250_v36 }
0x2449   :  { %v3341_v40 = vsel %vm74_vm0, %v3330_v26, 0.0  ;;  %v3651_v18 = vsel %vm662_vm5, %v3650_v56, %v3646_v9  ;;  %v3026_v9 = vsel %vm3016_vm9, %v9664_v23, %v9661_v35  ;;  %v5251_v23 = vld [vmem:[%s10514_s2 + $0x8] sm:$0x3] }
0x244a   :  { %v3342_v46 = vadd.f32 %v3341_v40, %v3340_v30  ;;  %v2939_v8 = vpop.permute.xlu0 %2938  ;;  %v9791_v24 = vsel %vm222_vm3, %v3651_v18, %v3642_v57  ;;  %v3337_v25 = vadd.f32 %v3336_v7, %v3335_v62  ;;  %v10708_v18 = vld [vmem:[#allocation12_spill] sm:$0xff]  ;;  %v10709_v7 = vld [vmem:[#allocation13_spill] sm:$0xff] }
0x244b   :  { %6287 = vmatmul.mubr.msk.f32.vlgmr.msra.gmra.mrb[16].mxu1 %vm74_vm0, %v2939_v8 }
0x244c   :  { %v3343_v33 = vrot.slane %v3342_v46, 4  ;;  %7259 = vmatpush3.bf16.xpose.msk.msra.mxu1 %vm7991_vm1, %v10663_v63  ;;  %6321 = vmatprep.mubr.msk.f32.mxu1 %vm7879_vm2, %v10643_v14  ;;  %v3338_v22 = vrot.slane %v3337_v25, 1 }
0x244d   :  { %7260 = vmatprep.subr.bf16.mxu1 %v10631_v37 }
0x244e   :  { %v3344_v45 = vadd.f32 %v3343_v33, %v3342_v46  ;;  %v3339_v19 = vadd.f32 %v3338_v22, %v3337_v25  ;;  %v10711_v22 = vld [vmem:[#allocation37_spill] sm:$0xff] }
0x2450   :  { %v3345_v28 = vrot.slane %v3344_v45, 2 }
0x2452   :  { %v3346_v41 = vadd.f32 %v3345_v28, %v3344_v45  ;;  %v7752_v27 = vpop.eup %7751  ;;  %v10710_v28 = vld [vmem:[#allocation24_spill] sm:$0xff] }
0x2453   :  { %v3138_v39 = vadd.f32 1.0, %v7752_v27 }
0x2454   :  { %v3347_v31 = vrot.slane %v3346_v41, 1  ;;  %7263 = vmatpush3.bf16.xpose.msk.msra.mxu1 %vm7991_vm1, %v8372_v60 }
0x2455   :  { %7264 = vmatprep.subr.bf16.mxu1 %v10631_v37  ;;  %7753 = vrcp.f32 %v3138_v39 }
0x2456   :  { %v3348_v34 = vadd.f32 %v3347_v31, %v3346_v41  ;;  %v3131_v41 = vadd.f32 %v10711_v22, %v10710_v28  ;;  %v9935_v31 = vld [vmem:[%s10525_s13] ss:$0 sm:$0xff] }
0x2457   :  { %10712 = vst [vmem:[#allocation25_spill] sm:$0xff] %v9935_v31 }
0x2458   :  { %v3351_v57 = vsel %vm222_vm3, %v3348_v34, %v3339_v19 }
0x2459   :  { %3352 = vrot.lane.b32.xlu0 %v3351_v57, %s7883_s3 }
0x245c   :  { %7267 = vmatpush3.bf16.xpose.msk.msra.mxu1 %vm7991_vm1, %v8384_v1 }
0x245d   :  { %7268 = vmatprep.subr.bf16.mxu1 %v10631_v37 }
0x245f   :  { %v7754_v49 = vpop.eup %7753 }
0x2464   :  { %7271 = vmatpush3.bf16.xpose.msk.msra.mxu1 %vm7991_vm1, %v8396_v2 }
0x2465   :  { %7272 = vmatprep.subr.bf16.mxu1 %v10631_v37 }
0x246c   :  { %7275 = vmatpush3.bf16.xpose.msk.msra.mxu1 %vm7991_vm1, %v8408_v10 }
0x246d   :  { %7276 = vmatprep.subr.bf16.mxu1 %v10631_v37 }
0x2474   :  { %7279 = vmatpush3.bf16.xpose.msk.msra.mxu1 %vm7991_vm1, %v8420_v17 }
0x2475   :  { %7280 = vmatprep.subr.bf16.mxu1 %v10631_v37 }
0x247c   :  { %7283 = vmatpush3.bf16.xpose.msk.msra.mxu1 %vm7991_vm1, %v8432_v21 }
0x247d   :  { %7284 = vmatprep.subr.bf16.mxu1 %v10631_v37 }
0x2484   :  { %7287 = vmatpush3.bf16.xpose.msk.msra.mxu1 %vm7991_vm1, %v8444_v11 }
0x2485   :  { %7288 = vmatprep.subr.bf16.mxu1 %v10631_v37 }
0x24cb   :  { %v3353_v62 = vpop.permute.xlu0 %3352 }
0x24cc   :  { %v3355_v54 = vmul.f32 %v7754_v49, %v3353_v62 }
0x24ce   :  { %3359 = vrot.lane.b32.xlu0 %v3355_v54, %s7884_s24 }
0x24d2   :  { %3028 = vrot.lane.b32.xlu0 %v3026_v9, %s7884_s24  ;;  %v9942_v9 = vld [vmem:[%s10628_s22] sm:$0x3] }
0x24d3   :  { %10713 = vst [vmem:[#allocation17_spill] sm:$0xff] %v9942_v9  ;;  %vm3060_vm10 = vcmp.gt.s32.totalorder %v9942_v9, 4 }
0x251e   :  { %v3008_v26 = vpop.f32.mrb[16].mxu1 }
0x251f   :  { %v3009_v56 = vadd.f32 %v9559_v52, %v3008_v26  ;;  %v6288_v48 = vpop.f32.mrb[17].mxu1  ;;  %v10714_v26 = vmov 0  }
0x2521   :  { %v3032_v30 = vsel %vm3016_vm9, %v3009_v56, 0.0  ;;  %v3611_v56 = vsel %vm3060_vm10, 1, %v10714_v26 }
0x2522   :  { %3034 = vst [vmem:[#allocation5 + $0x6] sm:$0x3] %v3032_v30 }
0x2540   :  { %v3360_v40 = vpop.permute.xlu0 %3359 }
0x2541   :  { %6322 = vmatmul.mubr.msk.f32.vlgmr.msra.gmra.mrb[18].mxu1 %vm74_vm0, %v3360_v40 }
0x2542   :  { %7291 = vmatpush3.bf16.xpose.msk.msra.mxu1 %vm8464_vm8, %v8460_v42  ;;  %6356 = vmatprep.mubr.msk.f32.mxu1 %vm7879_vm2, %v10643_v14 }
0x2543   :  { %7292 = vmatprep.subr.bf16.mxu1 %v10631_v37 }
0x2544   :  { %v3029_v35 = vpop.permute.xlu0 %3028 }
0x2545   :  { %3031 = vst.msk [vmem:[#allocation3] sm:$0x3] %vm320_vm4, %v3029_v35 }
0x254a   :  { %7295 = vmatpush3.bf16.xpose.msk.msra.mxu1 %vm8464_vm8, %v8482_v6 }
0x254b   :  { %7296 = vmatprep.subr.bf16.mxu1 %v10631_v37 }
0x254c   :  { %v3059_v52 = vld [vmem:[#allocation3] sm:$0x3] }
0x254d   :  { %3516 = vrot.lane.b32.xlu1 %v3059_v52, %s7883_s3 }
0x2552   :  { %7299 = vmatpush3.bf16.xpose.msk.msra.mxu1 %vm8464_vm8, %v8495_v20 }
0x2553   :  { %7300 = vmatprep.subr.bf16.mxu1 %v10631_v37 }
0x255a   :  { %7303 = vmatpush3.bf16.xpose.msk.msra.mxu1 %vm8464_vm8, %v8507_v12 }
0x255b   :  { %7304 = vmatprep.subr.bf16.mxu1 %v10631_v37 }
0x2562   :  { %7307 = vmatpush3.bf16.xpose.msk.msra.mxu1 %vm8464_vm8, %v8519_v29 }
0x2563   :  { %7308 = vmatprep.subr.bf16.mxu1 %v10631_v37 }
0x256a   :  { %7311 = vmatpush3.bf16.xpose.msk.msra.mxu1 %vm8464_vm8, %v8531_v38 }
0x256b   :  { %7312 = vmatprep.subr.bf16.mxu1 %v10631_v37 }
0x2572   :  { %7315 = vmatpush3.bf16.xpose.msk.msra.mxu1 %vm8464_vm8, %v8543_v32 }
0x2573   :  { %7316 = vmatprep.subr.bf16.mxu1 %v10631_v37 }
0x257a   :  { %7319 = vmatpush3.bf16.xpose.msk.msra.mxu1 %vm8464_vm8, %v8555_v15 }
0x257b   :  { %7352 = vmatprep.subr.bf16.mxu1 %v10631_v37 }
0x2581   :  { %6357 = vmatmul.mubr.msk.f32.vlgmr.msra.gmra.mrb[20].mxu1 %vm930_vm7, %v5251_v23 }
0x2582   :  { %7355 = vmatpush1.bf16.xpose.msk.msra.mxu1 %vm7991_vm1, %v8081_v43  ;;  %3727 = vmatprep.mubr.f32.mxu1 %v10643_v14 }
0x2583   :  { %7356 = vmatprep.subr.bf16.mxu1 %v10631_v37 }
0x258a   :  { %7359 = vmatpush1.bf16.xpose.msk.msra.mxu1 %vm7991_vm1, %v8101_v51 }
0x258b   :  { %7360 = vmatprep.subr.bf16.mxu1 %v10631_v37 }
0x2592   :  { %7363 = vmatpush1.bf16.xpose.msk.msra.mxu1 %vm7991_vm1, %v8119_v55 }
0x2593   :  { %7364 = vmatprep.subr.bf16.mxu1 %v10631_v37 }
0x259a   :  { %7367 = vmatpush1.bf16.xpose.msk.msra.mxu1 %vm7991_vm1, %v8131_v58 }
0x259b   :  { %7368 = vmatprep.subr.bf16.mxu1 %v10631_v37 }
0x25a2   :  { %7371 = vmatpush1.bf16.xpose.msk.msra.mxu1 %vm7991_vm1, %v8143_v61 }
0x25a3   :  { %7372 = vmatprep.subr.bf16.mxu1 %v10631_v37 }
0x25aa   :  { %7375 = vmatpush1.bf16.xpose.msk.msra.mxu1 %vm7991_vm1, %v8155_v0 }
0x25ab   :  { %7376 = vmatprep.subr.bf16.mxu1 %v10631_v37 }
0x25b2   :  { %7379 = vmatpush1.bf16.xpose.msk.msra.mxu1 %vm7991_vm1, %v8167_v5 }
0x25b3   :  { %7380 = vmatprep.subr.bf16.mxu1 %v10631_v37 }
0x25ba   :  { %7383 = vmatpush1.bf16.xpose.msk.msra.mxu1 %vm7991_vm1, %v8179_v13 }
0x25bb   :  { %7384 = vmatprep.subr.bf16.mxu1 %v10631_v37 }
0x25bf   :  { %v9947_v48 = vpop.permute.xlu1 %3516 }
0x25c2   :  { %7387 = vmatpush1.bf16.xpose.msk.msra.mxu1 %vm7991_vm1, %v8191_v16 }
0x25c3   :  { %7388 = vmatprep.subr.bf16.mxu1 %v10631_v37 }
0x25ca   :  { %7391 = vmatpush1.bf16.xpose.msk.msra.mxu1 %vm7991_vm1, %v10707_v44 }
0x25cb   :  { %7392 = vmatprep.subr.bf16.mxu1 %v10631_v37 }
0x25d2   :  { %7395 = vmatpush1.bf16.xpose.msk.msra.mxu1 %vm7991_vm1, %v10708_v18 }
0x25d3   :  { %7396 = vmatprep.subr.bf16.mxu1 %v10631_v37 }
0x25da   :  { %7399 = vmatpush1.bf16.xpose.msk.msra.mxu1 %vm7991_vm1, %v10709_v7 }
0x25db   :  { %7464 = vmatprep.subr.bf16.mxu1 %v10631_v37 }
0x2614   :  { %v3429_v46 = vpop.f32.mrb[18].mxu1 }
0x2615   :  { %v6323_v8 = vpop.f32.mrb[19].mxu1 }
0x2654   :  { %v3502_v33 = vpop.f32.mrb[20].mxu1 }
0x2655   :  { %v3503_v45 = vadd.f32 %v3502_v33, %v3429_v46  ;;  %v6358_v25 = vpop.f32.mrb[21].mxu1  ;;  %v10715_v46 = vld [vmem:[#allocation36_spill] sm:$0xff] }
0x2657   :  { %v3506_v19 = vadd.f32 %v9935_v31, %v3503_v45 }
0x2659   :  { %v3507_v34 = vadd.f32 %v3506_v19, %v3131_v41 }
0x265b   :  { %7755 = vtanh.f32 %v3507_v34  ;;  %v5286_v36 = vmul.f32 -1.442695, %v3507_v34  ;;  %v10718_v34 = vld [vmem:[#allocation27_spill] sm:$0xff] }
0x265d   :  { %7757 = vpow2.f32 %v5286_v36  ;;  %v10720_v36 = vld [vmem:[#allocation29_spill] sm:$0xff] }
0x2665   :  { %v7756_v57 = vpop.eup %7755 }
0x2666   :  { %3521 = vrot.lane.b32.xlu0 %v7756_v57, %s7885_s19  ;;  %v10719_v57 = vld [vmem:[#allocation28_spill] sm:$0xff] }
0x2667   :  { %v7758_v27 = vpop.eup %7757 }
0x2668   :  { %v3511_v39 = vadd.f32 1.0, %v7758_v27  ;;  %v10721_v27 = vld [vmem:[#allocation30_spill] sm:$0xff] }
0x266a   :  { %7759 = vrcp.f32 %v3511_v39  ;;  %v10722_v39 = vld [vmem:[#allocation31_spill] sm:$0xff] }
0x2674   :  { %v7760_v49 = vpop.eup %7759 }
0x2675   :  { %v3519_v30 = vmul.f32 %v7760_v49, %v9947_v48 }
0x26d8   :  { %v3522_v62 = vpop.permute.xlu0 %3521 }
0x26d9   :  { %v3524_v54 = vmul.f32 %v7760_v49, %v3522_v62  ;;  %v10724_v62 = vld [vmem:[#allocation33_spill] sm:$0xff] }
0x26db   :  { %3526 = vrot.lane.b32.xlu0 %v3524_v54, %s7883_s3 }
0x26df   :  { %3613 = vperm.xlu0 %7651, %v3611_v56  }
0x274d   :  { %v3527_v40 = vpop.permute.xlu0 %3526 }
0x274e   :  { %v9950_v35 = vadd.f32 %v3527_v40, %v3519_v30  ;;  %v10725_v30 = vld [vmem:[#allocation15_spill] sm:$0xff] }
0x2750   :  { %7761 = vtanh.f32 %v9950_v35 }
0x275a   :  { %v7762_v52 = vpop.eup %7761 }
0x275b   :  { %3532 = vrot.lane.b32.xlu0 %v7762_v52, %s7885_s19  ;;  %v10726_v52 = vld [vmem:[#allocation16_spill] sm:$0xff] }
0x275e   :  { %v9954_v23 = vpop.permute.xlu0 %3613 }
0x275f   :  { %vm3615_vm11 = vcmp.eq.s32.totalorder %v9954_v23, 1  ;;  %3616 = vrot.lane.b32.xlu0 %v10715_v46, %s7884_s24  ;;  %v5330_v23 = vld [vmem:[%s10514_s2 + $0xa] sm:$0x3] }
0x2760   :  { %v3654_v8 = vsel %vm3615_vm11, %v9791_v24, 0.0  ;;  %v10717_v24 = vld [vmem:[#allocation26_spill] sm:$0xff] }
0x2761   :  { %3656 = vst.msk [vmem:[#allocation7 + $0x8] sm:$0x3] %vm675_vm6, %v3654_v8 }
0x27cd   :  { %v3533_v33 = vpop.permute.xlu0 %3532 }
0x27ce   :  { %v9963_v45 = vmul.f32 %v7760_v49, %v3533_v33  ;;  %v10723_v49 = vld [vmem:[#allocation32_spill] sm:$0xff] }
0x27d1   :  { %v3617_v25 = vpop.permute.xlu0 %3616 }
0x27d2   :  { %v3619_v22 = vsel %vm3615_vm11, %v9963_v45, %v3617_v25 }
0x27d3   :  { %3621 = vrot.lane.b32.xlu0 %v3619_v22, %s7883_s3 }
0x2845   :  { %v3622_v41 = vpop.permute.xlu0 %3621 }
0x2846   :  { %3624 = vst.msk [vmem:[#allocation2] sm:$0x3] %vm320_vm4, %v3622_v41  ;;  %v10727_v41 = vld [vmem:[#allocation18_spill] sm:$0xff] }
0x284d   :  { %v9970_v19 = vld [vmem:[#allocation2] sm:$0x3] }
0x284e   :  { %10716 = vst [vmem:[#allocation14_spill] sm:$0xff] %v9970_v19  ;;  %5328 = vmatmul.mubr.msk.f32.vlgmr.msra.gmra.mrb[22].mxu1 %vm74_vm0, %v9970_v19  ;;  %v10731_v19 = vld [vmem:[#allocation23_spill] sm:$0xff] }
0x284f   :  { %7467 = vmatpush3.bf16.xpose.msk.msra.mxu1 %vm7991_vm1, %v10717_v24  ;;  %6496 = vmatprep.mubr.msk.f32.mxu1 %vm7879_vm2, %v10643_v14 }
0x2850   :  { %7468 = vmatprep.subr.bf16.mxu1 %v10631_v37 }
0x2857   :  { %7471 = vmatpush3.bf16.xpose.msk.msra.mxu1 %vm7991_vm1, %v10718_v34  ;;  %v10730_v34 = vld [vmem:[#allocation21_spill] sm:$0xff] }
0x2858   :  { %7472 = vmatprep.subr.bf16.mxu1 %v10631_v37 }
0x285f   :  { %7475 = vmatpush3.bf16.xpose.msk.msra.mxu1 %vm7991_vm1, %v10719_v57 }
0x2860   :  { %7476 = vmatprep.subr.bf16.mxu1 %v10631_v37 }
0x2867   :  { %7479 = vmatpush3.bf16.xpose.msk.msra.mxu1 %vm7991_vm1, %v10720_v36 }
0x2868   :  { %7480 = vmatprep.subr.bf16.mxu1 %v10631_v37 }
0x286f   :  { %7483 = vmatpush3.bf16.xpose.msk.msra.mxu1 %vm7991_vm1, %v10721_v27 }
0x2870   :  { %7484 = vmatprep.subr.bf16.mxu1 %v10631_v37 }
0x2877   :  { %7487 = vmatpush3.bf16.xpose.msk.msra.mxu1 %vm7991_vm1, %v10722_v39 }
0x2878   :  { %7488 = vmatprep.subr.bf16.mxu1 %v10631_v37 }
0x287f   :  { %7491 = vmatpush3.bf16.xpose.msk.msra.mxu1 %vm7991_vm1, %v10723_v49  ;;  %v10728_v49 = vld [vmem:[#allocation19_spill] sm:$0xff] }
0x2880   :  { %7492 = vmatprep.subr.bf16.mxu1 %v10631_v37 }
0x2887   :  { %7495 = vmatpush3.bf16.xpose.msk.msra.mxu1 %vm7991_vm1, %v10724_v62 }
0x2888   :  { %7544 = vmatprep.subr.bf16.mxu1 %v10631_v37 }
0x2921   :  { %v10008_v54 = vpop.f32.mrb[22].mxu1 }
0x2922   :  { %v3731_v56 = vpop.f32.mrb[23].mxu1 }
0x2923   :  { %v10011_v40 = vadd.f32 %v3731_v56, %v10725_v30  ;;  %v10729_v56 = vld [vmem:[#allocation20_spill] sm:$0xff] }
0x2925   :  { %v3747_v46 = vrot.slane %v10011_v40, %v10726_v52 }
0x2927   :  { %v3748_v8 = vcombine.high %v3747_v46, %v3747_v46  ;;  %v3755_v33 = vrot.slane %v3747_v46, %v10726_v52 }
0x2929   :  { %v3762_v25 = vrot.slane %v3748_v8, %v10726_v52  ;;  %v3766_v22 = vrot.slane %v3755_v33, %v10651_v59 }
0x292b   :  { %v3774_v62 = vadd.f32 %v3766_v22, %v10727_v41  ;;  %v3773_v39 = vadd.f32 %v3766_v22, %v10728_v49  ;;  %v3770_v27 = vrot.slane %v3762_v25, %v10651_v59 }
0x292d   :  { %v3778_v36 = vmax.f32 %v3774_v62, 0.0  ;;  %v3777_v57 = vmax.f32 %v3773_v39, 0.0  ;;  %v3776_v30 = vadd.f32 %v3770_v27, %v10729_v56  ;;  %v3775_v24 = vadd.f32 %v3770_v27, %v10730_v34  ;;  %v10732_v62 = vld [vmem:[#allocation22_spill] sm:$0xff] }
0x292f   :  { %v3782_v26 = vmul.f32 %v10731_v19, %v3778_v36  ;;  %v3781_v46 = vmul.f32 %v10731_v19, %v3777_v57  ;;  %v3780_v9 = vmax.f32 %v3776_v30, 0.0  ;;  %v3779_v8 = vmax.f32 %v3775_v24, 0.0 }
0x2931   :  { %v3788_v33 = vsel %vm74_vm0, %v3782_v26, 0.0  ;;  %v3785_v41 = vsel %vm74_vm0, %v3781_v46, 0.0  ;;  %v3784_v22 = vmul.f32 %v10731_v19, %v3780_v9  ;;  %v3783_v25 = vmul.f32 %v10731_v19, %v3779_v8 }
0x2932   :  { %3789 = vadd.xlane.f32.xlu0 %v3788_v33  ;;  %3786 = vadd.xlane.f32.xlu1 %v3785_v41 }
0x2933   :  { %v3794_v39 = vsel %vm74_vm0, %v3784_v22, 0.0  ;;  %v3791_v27 = vsel %vm74_vm0, %v3783_v25, 0.0 }
0x2936   :  { %3795 = vadd.xlane.f32.xlu1 %v3794_v39  ;;  %3792 = vadd.xlane.f32.xlu0 %v3791_v27 }
0x29bf   :  { %v3790_v36 = vpop.xlane.xlu0 %3789  ;;  %v3787_v57 = vpop.xlane.xlu1 %3786 }
0x29c0   :  { %v3798_v24 = vadd.f32 %v3790_v36, %v10732_v62  ;;  %v3797_v26 = vadd.f32 %v3787_v57, %v10732_v62 }
0x29c2   :  { %v3812_v9 = vrot.slane %v3798_v24, %v8304_v53  ;;  %v3808_v19 = vrot.slane %v3797_v26, %v8302_v50 }
0x29c3   :  { %v3796_v30 = vpop.xlane.xlu1 %3795  ;;  %v3793_v46 = vpop.xlane.xlu0 %3792 }
0x29c4   :  { %v3800_v41 = vadd.f32 %v3796_v30, %v10732_v62  ;;  %v3799_v8 = vadd.f32 %v3793_v46, %v10732_v62  ;;  %v3813_v25 = vsel %vm662_vm5, %v3812_v9, %v3808_v19 }
0x29c6   :  { %v3821_v33 = vrot.slane %v3800_v41, %v8304_v53  ;;  %v3817_v22 = vrot.slane %v3799_v8, %v8302_v50 }
0x29c8   :  { %v3822_v39 = vsel %vm662_vm5, %v3821_v33, %v3817_v22 }
0x29c9   :  { %v3823_v27 = vsel %vm222_vm3, %v3822_v39, %v3813_v25 }
0x29ca   :  { %v3825_v36 = vsel %vm675_vm6, %v3823_v27, -inf }
0x29cb   :  { %3826 = vmax.xlane.f32.xlu0 %v3825_v36 }
0x2a58   :  { %v3827_v57 = vpop.xlane.xlu0 %3826 }
0x2a59   :  { %v3832_v56 = vrot.slane %v3827_v57, %v10651_v59  ;;  %v3836_v30 = vrot.slane %v3827_v57, %v10658_v3 }
0x2a5b   :  { %v3839_v34 = vsub.f32 %v3797_v26, %v3832_v56  ;;  %v3840_v46 = vsub.f32 %v3798_v24, %v3832_v56  ;;  %v3841_v62 = vsub.f32 %v3799_v8, %v3836_v30  ;;  %v3842_v31 = vsub.f32 %v3800_v41, %v3836_v30 }
0x2a5d   :  { %v3843_v49 = vmul.f32 1.442695, %v3839_v34  ;;  %v3845_v52 = vmul.f32 1.442695, %v3840_v46  ;;  %v3847_v9 = vmul.f32 1.442695, %v3841_v62 }
0x2a5e   :  { %v3849_v19 = vmul.f32 1.442695, %v3842_v31 }
0x2a5f   :  { %7763 = vpow2.f32 %v3843_v49 }
0x2a60   :  { %7765 = vpow2.f32 %v3845_v52 }
0x2a61   :  { %7767 = vpow2.f32 %v3847_v9 }
0x2a62   :  { %7769 = vpow2.f32 %v3849_v19 }
0x2a69   :  { %v7764_v33 = vpop.eup %7763 }
0x2a6a   :  { %v7766_v22 = vpop.eup %7765  ;;  %3856 = vperm.xlu1 %7652, %v7764_v33  }
0x2a6b   :  { %3859 = vperm.xlu0 %7651, %v7766_v22   ;;  %v7768_v25 = vpop.eup %7767 }
0x2a6c   :  { %v7770_v39 = vpop.eup %7769 }
0x2a6e   :  { %3862 = vperm.xlu1 %7652, %v7768_v25  }
0x2a72   :  { %3865 = vperm.xlu1 %7652, %v7770_v39  }
0x2ae9   :  { %v3857_v26 = vpop.permute.xlu1 %3856 }
0x2aea   :  { %v3860_v56 = vpop.permute.xlu0 %3859  ;;  %v3870_v49 = vrot.slane %v3857_v26, %v8302_v50 }
0x2aeb   :  { %v3874_v34 = vrot.slane %v3860_v56, %v8304_v53 }
0x2aed   :  { %v3863_v24 = vpop.permute.xlu1 %3862  ;;  %v3875_v41 = vsel %vm662_vm5, %v3874_v34, %v3870_v49  ;;  %v10060_v49 = vld [vmem:[%s10611_s20] sm:$0xff] }
0x2aee   :  { %v3879_v52 = vrot.slane %v3863_v24, %v8302_v50 }
0x2af1   :  { %v3866_v62 = vpop.permute.xlu1 %3865 }
0x2af2   :  { %v3883_v31 = vrot.slane %v3866_v62, %v8304_v53 }
0x2af4   :  { %v3884_v8 = vsel %vm662_vm5, %v3883_v31, %v3879_v52 }
0x2af5   :  { %v3885_v27 = vsel %vm222_vm3, %v3884_v8, %v3875_v41 }
0x2af6   :  { %v3887_v36 = vsel %vm675_vm6, %v3885_v27, 0.0 }
0x2af7   :  { %3888 = vadd.xlane.f32.xlu0 %v3887_v36 }
0x2b84   :  { %v3889_v57 = vpop.xlane.xlu0 %3888 }
0x2b85   :  { %7771 = vrcp.f32 %v3889_v57  ;;  %v10077_v57 = vld [vmem:[%s10611_s20 + $0x10] sm:$0xff] }
0x2b8f   :  { %v7772_v30 = vpop.eup %7771 }
0x2b90   :  { %v3895_v46 = vrot.slane %v7772_v30, %v10651_v59  ;;  %v3899_v26 = vrot.slane %v7772_v30, %v10658_v3 }
0x2b92   :  { %v3902_v9 = vmul.f32 %v7764_v33, %v3895_v46  ;;  %v3903_v19 = vmul.f32 %v7766_v22, %v3895_v46  ;;  %v3904_v56 = vmul.f32 %v7768_v25, %v3899_v26  ;;  %v3905_v24 = vmul.f32 %v7770_v39, %v3899_v26  ;;  %v10067_v25 = vld [vmem:[%s10611_s20 + $0x8] sm:$0xff]  ;;  %v10084_v26 = vld [vmem:[%s10611_s20 + $0x18] sm:$0xff] }
0x2b94   :  { %3908 = vperm.xlu1 %7652, %v3902_v9  }
0x2b98   :  { %3913 = vperm.xlu1 %7652, %v3903_v19  }
0x2b9c   :  { %3918 = vperm.xlu1 %7652, %v3904_v56  }
0x2ba0   :  { %3923 = vperm.xlu1 %7652, %v3905_v24  }
0x2ba4   :  { %3537 = vrot.lane.b32.xlu1 %v9963_v45, %s7883_s3 }
0x2c13   :  { %v3909_v34 = vpop.permute.xlu1 %3908 }
0x2c14   :  { %v3926_v33 = vmul.f32 %v10060_v49, %v3909_v34  ;;  %v4236_v22 = vrot.slane %v3909_v34, %v8302_v50 }
0x2c16   :  { %v3930_v52 = vsel %vm74_vm0, %v3926_v33, 0.0 }
0x2c17   :  { %v3914_v62 = vpop.permute.xlu1 %3913 }
0x2c18   :  { %v3927_v39 = vmul.f32 %v10067_v25, %v3914_v62  ;;  %v4240_v45 = vrot.slane %v3914_v62, %v8304_v53 }
0x2c1a   :  { %v3931_v31 = vsel %vm74_vm0, %v3927_v39, 0.0  ;;  %v4241_v41 = vsel %vm662_vm5, %v4240_v45, %v4236_v22 }
0x2c1b   :  { %v3932_v8 = vadd.f32 %v3931_v31, %v3930_v52  ;;  %v3919_v27 = vpop.permute.xlu1 %3918 }
0x2c1c   :  { %v3928_v30 = vmul.f32 %v10077_v57, %v3919_v27  ;;  %v4245_v19 = vrot.slane %v3919_v27, %v8302_v50 }
0x2c1d   :  { %v3933_v36 = vrot.slane %v3932_v8, 4 }
0x2c1e   :  { %v3939_v34 = vsel %vm74_vm0, %v3928_v30, 0.0 }
0x2c1f   :  { %v3934_v46 = vadd.f32 %v3933_v36, %v3932_v8  ;;  %v3924_v9 = vpop.permute.xlu1 %3923 }
0x2c20   :  { %v3929_v56 = vmul.f32 %v10084_v26, %v3924_v9  ;;  %v4249_v24 = vrot.slane %v3924_v9, %v8304_v53 }
0x2c21   :  { %v3935_v22 = vrot.slane %v3934_v46, 2 }
0x2c22   :  { %v3940_v33 = vsel %vm74_vm0, %v3929_v56, 0.0  ;;  %v4250_v62 = vsel %vm662_vm5, %v4249_v24, %v4245_v19 }
0x2c23   :  { %v3941_v39 = vadd.f32 %v3940_v33, %v3939_v34  ;;  %v3538_v45 = vpop.permute.xlu1 %3537  ;;  %v10092_v52 = vsel %vm222_vm3, %v4250_v62, %v4241_v41  ;;  %v3936_v8 = vadd.f32 %v3935_v22, %v3934_v46  ;;  %v5329_v46 = vmul.f32 -1.442695, %v10011_v40  ;;  %v10141_v40 = vld [vmem:[%s10527_s15] ss:$0 sm:$0xff] }
0x2c24   :  { %6392 = vmatmul.mubr.msk.f32.vlgmr.msra.gmra.mrb[22].mxu0 %vm74_vm0, %v3538_v45  ;;  %v3625_v45 = vsel %vm3615_vm11, %v9950_v35, %v9947_v48 }
0x2c25   :  { %v3942_v31 = vrot.slane %v3941_v39, 4  ;;  %7403 = vmatpush3.bf16.xpose.msk.msra.mxu0 %vm7991_vm1, %v10663_v63  ;;  %6426 = vmatprep.mubr.msk.f32.mxu0 %vm7879_vm2, %v10643_v14  ;;  %v3937_v9 = vrot.slane %v3936_v8, 1  ;;  %7773 = vpow2.f32 %v5329_v46 }
0x2c26   :  { %7404 = vmatprep.subr.bf16.mxu0 %v10631_v37 }
0x2c27   :  { %v3943_v27 = vadd.f32 %v3942_v31, %v3941_v39  ;;  %v3938_v41 = vadd.f32 %v3937_v9, %v3936_v8 }
0x2c29   :  { %v3944_v36 = vrot.slane %v3943_v27, 2 }
0x2c2b   :  { %v3945_v30 = vadd.f32 %v3944_v36, %v3943_v27 }
0x2c2d   :  { %v3946_v19 = vrot.slane %v3945_v30, 1  ;;  %7407 = vmatpush3.bf16.xpose.msk.msra.mxu0 %vm7991_vm1, %v8372_v60 }
0x2c2e   :  { %7408 = vmatprep.subr.bf16.mxu0 %v10631_v37 }
0x2c2f   :  { %v3947_v56 = vadd.f32 %v3946_v19, %v3945_v30  ;;  %v7774_v34 = vpop.eup %7773 }
0x2c30   :  { %v3737_v33 = vadd.f32 1.0, %v7774_v34 }
0x2c31   :  { %v3950_v24 = vsel %vm222_vm3, %v3947_v56, %v3938_v41 }
0x2c32   :  { %3951 = vrot.lane.b32.xlu1 %v3950_v24, %s7883_s3  ;;  %7775 = vrcp.f32 %v3737_v33  ;;  %v10734_v24 = vld [vmem:[#allocation17_spill] sm:$0xff] }
0x2c33   :  { %vm3659_vm12 = vcmp.gt.s32.totalorder %v10734_v24, 5 }
0x2c35   :  { %7411 = vmatpush3.bf16.xpose.msk.msra.mxu0 %vm7991_vm1, %v8384_v1 }
0x2c36   :  { %7412 = vmatprep.subr.bf16.mxu0 %v10631_v37 }
0x2c3c   :  { %v7776_v62 = vpop.eup %7775 }
0x2c3d   :  { %7415 = vmatpush3.bf16.xpose.msk.msra.mxu0 %vm7991_vm1, %v8396_v2 }
0x2c3e   :  { %7416 = vmatprep.subr.bf16.mxu0 %v10631_v37 }
0x2c45   :  { %7419 = vmatpush3.bf16.xpose.msk.msra.mxu0 %vm7991_vm1, %v8408_v10 }
0x2c46   :  { %7420 = vmatprep.subr.bf16.mxu0 %v10631_v37 }
0x2c4d   :  { %7423 = vmatpush3.bf16.xpose.msk.msra.mxu0 %vm7991_vm1, %v8420_v17 }
0x2c4e   :  { %7424 = vmatprep.subr.bf16.mxu0 %v10631_v37 }
0x2c55   :  { %7427 = vmatpush3.bf16.xpose.msk.msra.mxu0 %vm7991_vm1, %v8432_v21 }
0x2c56   :  { %7428 = vmatprep.subr.bf16.mxu0 %v10631_v37 }
0x2c5d   :  { %7431 = vmatpush3.bf16.xpose.msk.msra.mxu0 %vm7991_vm1, %v8444_v11 }
0x2c5e   :  { %7432 = vmatprep.subr.bf16.mxu0 %v10631_v37 }
0x2ca4   :  { %v3952_v22 = vpop.permute.xlu1 %3951 }
0x2ca5   :  { %v3954_v39 = vmul.f32 %v7776_v62, %v3952_v22 }
0x2ca7   :  { %3958 = vrot.lane.b32.xlu1 %v3954_v39, %s7884_s24 }
0x2cab   :  { %3627 = vrot.lane.b32.xlu1 %v3625_v45, %s7884_s24 }
0x2cf7   :  { %v3607_v31 = vpop.f32.mrb[22].mxu0 }
0x2cf8   :  { %v3608_v8 = vadd.f32 %v10141_v40, %v3607_v31  ;;  %v6393_v27 = vpop.f32.mrb[23].mxu0  ;;  %v10736_v31 = vld [vmem:[#allocation14_spill] sm:$0xff] }
0x2cfa   :  { %v3631_v36 = vsel %vm3615_vm11, %v3608_v8, 0.0 }
0x2cfb   :  { %3633 = vst [vmem:[#allocation5 + $0x8] sm:$0x3] %v3631_v36 }
0x2d19   :  { %v3959_v30 = vpop.permute.xlu1 %3958 }
0x2d1a   :  { %6427 = vmatmul.mubr.msk.f32.vlgmr.msra.gmra.mrb[24].mxu0 %vm74_vm0, %v3959_v30 }
0x2d1b   :  { %7435 = vmatpush3.bf16.xpose.msk.msra.mxu0 %vm8464_vm8, %v8460_v42  ;;  %6461 = vmatprep.mubr.msk.f32.mxu0 %vm7879_vm2, %v10643_v14 }
0x2d1c   :  { %7436 = vmatprep.subr.bf16.mxu0 %v10631_v37 }
0x2d1d   :  { %v3628_v48 = vpop.permute.xlu1 %3627 }
0x2d1e   :  { %3630 = vst.msk [vmem:[#allocation3] sm:$0x3] %vm320_vm4, %v3628_v48 }
0x2d23   :  { %7439 = vmatpush3.bf16.xpose.msk.msra.mxu0 %vm8464_vm8, %v8482_v6 }
0x2d24   :  { %7440 = vmatprep.subr.bf16.mxu0 %v10631_v37 }
0x2d25   :  { %v3658_v35 = vld [vmem:[#allocation3] sm:$0x3] }
0x2d26   :  { %4115 = vrot.lane.b32.xlu1 %v3658_v35, %s7883_s3 }
0x2d2b   :  { %7443 = vmatpush3.bf16.xpose.msk.msra.mxu0 %vm8464_vm8, %v8495_v20 }
0x2d2c   :  { %7444 = vmatprep.subr.bf16.mxu0 %v10631_v37 }
0x2d33   :  { %7447 = vmatpush3.bf16.xpose.msk.msra.mxu0 %vm8464_vm8, %v8507_v12 }
0x2d34   :  { %7448 = vmatprep.subr.bf16.mxu0 %v10631_v37 }
0x2d3b   :  { %7451 = vmatpush3.bf16.xpose.msk.msra.mxu0 %vm8464_vm8, %v8519_v29 }
0x2d3c   :  { %7452 = vmatprep.subr.bf16.mxu0 %v10631_v37 }
0x2d43   :  { %7455 = vmatpush3.bf16.xpose.msk.msra.mxu0 %vm8464_vm8, %v8531_v38 }
0x2d44   :  { %7456 = vmatprep.subr.bf16.mxu0 %v10631_v37 }
0x2d4b   :  { %7459 = vmatpush3.bf16.xpose.msk.msra.mxu0 %vm8464_vm8, %v8543_v32 }
0x2d4c   :  { %7460 = vmatprep.subr.bf16.mxu0 %v10631_v37 }
0x2d53   :  { %7463 = vmatpush3.bf16.xpose.msk.msra.mxu0 %vm8464_vm8, %v8555_v15 }
0x2d54   :  { %7496 = vmatprep.subr.bf16.mxu0 %v10631_v37 }
0x2d5a   :  { %6462 = vmatmul.mubr.msk.f32.vlgmr.msra.gmra.mrb[26].mxu0 %vm930_vm7, %v5330_v23 }
0x2d5b   :  { %7499 = vmatpush1.bf16.xpose.msk.msra.mxu0 %vm7991_vm1, %v8081_v43  ;;  %4326 = vmatprep.mubr.f32.mxu0 %v10643_v14 }
0x2d5c   :  { %7500 = vmatprep.subr.bf16.mxu0 %v10631_v37 }
0x2d63   :  { %7503 = vmatpush1.bf16.xpose.msk.msra.mxu0 %vm7991_vm1, %v8101_v51 }
0x2d64   :  { %7504 = vmatprep.subr.bf16.mxu0 %v10631_v37 }
0x2d6b   :  { %7507 = vmatpush1.bf16.xpose.msk.msra.mxu0 %vm7991_vm1, %v8119_v55 }
0x2d6c   :  { %7508 = vmatprep.subr.bf16.mxu0 %v10631_v37 }
0x2d73   :  { %7511 = vmatpush1.bf16.xpose.msk.msra.mxu0 %vm7991_vm1, %v8131_v58 }
0x2d74   :  { %7512 = vmatprep.subr.bf16.mxu0 %v10631_v37 }
0x2d7b   :  { %7515 = vmatpush1.bf16.xpose.msk.msra.mxu0 %vm7991_vm1, %v8143_v61 }
0x2d7c   :  { %7516 = vmatprep.subr.bf16.mxu0 %v10631_v37 }
0x2d83   :  { %7519 = vmatpush1.bf16.xpose.msk.msra.mxu0 %vm7991_vm1, %v8155_v0  ;;  %v3730_v0 = vadd.f32 %v10008_v54, %v10710_v28  ;;  %v10735_v54 = vmov 0  }
0x2d84   :  { %7520 = vmatprep.subr.bf16.mxu0 %v10631_v37  ;;  %v4210_v46 = vsel %vm3659_vm12, 1, %v10735_v54 }
0x2d8b   :  { %7523 = vmatpush1.bf16.xpose.msk.msra.mxu0 %vm7991_vm1, %v8167_v5  ;;  %v10733_v5 = vld [vmem:[#allocation25_spill] sm:$0xff] }
0x2d8c   :  { %7524 = vmatprep.subr.bf16.mxu0 %v10631_v37 }
0x2d93   :  { %7527 = vmatpush1.bf16.xpose.msk.msra.mxu0 %vm7991_vm1, %v8179_v13 }
0x2d94   :  { %7528 = vmatprep.subr.bf16.mxu0 %v10631_v37 }
0x2d98   :  { %v10243_v34 = vpop.permute.xlu1 %4115 }
0x2d9b   :  { %7531 = vmatpush1.bf16.xpose.msk.msra.mxu0 %vm7991_vm1, %v8191_v16 }
0x2d9c   :  { %7532 = vmatprep.subr.bf16.mxu0 %v10631_v37 }
0x2da3   :  { %7535 = vmatpush1.bf16.xpose.msk.msra.mxu0 %vm7991_vm1, %v10707_v44 }
0x2da4   :  { %7536 = vmatprep.subr.bf16.mxu0 %v10631_v37 }
0x2dab   :  { %7539 = vmatpush1.bf16.xpose.msk.msra.mxu0 %vm7991_vm1, %v10708_v18 }
0x2dac   :  { %7540 = vmatprep.subr.bf16.mxu0 %v10631_v37 }
0x2db3   :  { %7543 = vmatpush1.bf16.xpose.msk.msra.mxu0 %vm7991_vm1, %v10709_v7 }
0x2db4   :  { %7608 = vmatprep.subr.bf16.mxu0 %v10631_v37 }
0x2ded   :  { %v4028_v43 = vpop.f32.mrb[24].mxu0 }
0x2dee   :  { %v6428_v51 = vpop.f32.mrb[25].mxu0 }
0x2def   :  { %v10739_v51 = vld [vmem:[#allocation28_spill] sm:$0xff] }
0x2e2d   :  { %v4101_v55 = vpop.f32.mrb[26].mxu0 }
0x2e2e   :  { %v4102_v58 = vadd.f32 %v4101_v55, %v4028_v43  ;;  %v6463_v61 = vpop.f32.mrb[27].mxu0  ;;  %v10738_v43 = vld [vmem:[#allocation27_spill] sm:$0xff]  ;;  %v10740_v55 = vld [vmem:[#allocation29_spill] sm:$0xff] }
0x2e2f   :  { %v10742_v61 = vld [vmem:[#allocation31_spill] sm:$0xff] }
0x2e30   :  { %v4105_v13 = vadd.f32 %v10733_v5, %v4102_v58  ;;  %v10741_v58 = vld [vmem:[#allocation30_spill] sm:$0xff]  ;;  %v10744_v5 = vld [vmem:[#allocation33_spill] sm:$0xff] }
0x2e32   :  { %v4106_v16 = vadd.f32 %v4105_v13, %v3730_v0  ;;  %v10743_v0 = vld [vmem:[#allocation32_spill] sm:$0xff] }
0x2e34   :  { %7777 = vtanh.f32 %v4106_v16  ;;  %v5365_v18 = vmul.f32 -1.442695, %v4106_v16 }
0x2e36   :  { %7779 = vpow2.f32 %v5365_v18 }
0x2e3e   :  { %v7778_v44 = vpop.eup %7777 }
0x2e3f   :  { %4120 = vrot.lane.b32.xlu0 %v7778_v44, %s7885_s19  ;;  %v10745_v44 = vld [vmem:[#allocation15_spill] sm:$0xff] }
0x2e40   :  { %v7780_v7 = vpop.eup %7779 }
0x2e41   :  { %v4110_v9 = vadd.f32 1.0, %v7780_v7  ;;  %v10746_v7 = vld [vmem:[#allocation16_spill] sm:$0xff] }
0x2e43   :  { %7781 = vrcp.f32 %v4110_v9 }
0x2e4d   :  { %v7782_v19 = vpop.eup %7781 }
0x2e4e   :  { %v4118_v33 = vmul.f32 %v7782_v19, %v10243_v34 }
0x2eb1   :  { %v4121_v41 = vpop.permute.xlu0 %4120 }
0x2eb2   :  { %v4123_v56 = vmul.f32 %v7782_v19, %v4121_v41 }
0x2eb4   :  { %4125 = vrot.lane.b32.xlu1 %v4123_v56, %s7883_s3 }
0x2eb8   :  { %4212 = vperm.xlu1 %7652, %v4210_v46   ;;  %v10747_v46 = vld [vmem:[#allocation18_spill] sm:$0xff] }
0x2f26   :  { %v4126_v62 = vpop.permute.xlu1 %4125 }
0x2f27   :  { %v10246_v22 = vadd.f32 %v4126_v62, %v4118_v33  ;;  %v10748_v62 = vld [vmem:[#allocation19_spill] sm:$0xff] }
0x2f29   :  { %7783 = vtanh.f32 %v10246_v22 }
0x2f33   :  { %v7784_v39 = vpop.eup %7783 }
0x2f34   :  { %4131 = vrot.lane.b32.xlu1 %v7784_v39, %s7885_s19 }
0x2f37   :  { %v10250_v45 = vpop.permute.xlu1 %4212 }
0x2f38   :  { %vm4214_vm13 = vcmp.eq.s32.totalorder %v10250_v45, 1  ;;  %4215 = vrot.lane.b32.xlu1 %v10736_v31, %s7884_s24 }
0x2f39   :  { %v4253_v8 = vsel %vm4214_vm13, %v10092_v52, 0.0  ;;  %v10737_v52 = vld [vmem:[#allocation26_spill] sm:$0xff] }
0x2f3a   :  { %4255 = vst.msk [vmem:[#allocation7 + $0xa] sm:$0x3] %vm675_vm6, %v4253_v8 }
0x2fa6   :  { %v4132_v27 = vpop.permute.xlu1 %4131 }
0x2fa7   :  { %v10259_v36 = vmul.f32 %v7782_v19, %v4132_v27 }
0x2faa   :  { %v4216_v30 = vpop.permute.xlu1 %4215 }
0x2fab   :  { %v4218_v48 = vsel %vm4214_vm13, %v10259_v36, %v4216_v30  ;;  %v10749_v30 = vld [vmem:[#allocation21_spill] sm:$0xff] }
0x2fac   :  { %4220 = vrot.lane.b32.xlu1 %v4218_v48, %s7883_s3 }
0x301e   :  { %v4221_v35 = vpop.permute.xlu1 %4220 }
0x301f   :  { %4223 = vst.msk [vmem:[#allocation2] sm:$0x3] %vm320_vm4, %v4221_v35  ;;  %v10750_v35 = vld [vmem:[#allocation20_spill] sm:$0xff] }
0x3026   :  { %v10266_v23 = vld [vmem:[#allocation2] sm:$0x3] }
0x3027   :  { %5407 = vmatmul.mubr.msk.f32.vlgmr.msra.gmra.mrb[28].mxu0 %vm74_vm0, %v10266_v23 }
0x3028   :  { %7611 = vmatpush3.bf16.xpose.msk.msra.mxu0 %vm7991_vm1, %v10737_v52  ;;  %6601 = vmatprep.mubr.msk.f32.mxu0 %vm7879_vm2, %v10643_v14 }
0x3029   :  { %7612 = vmatprep.subr.bf16.mxu0 %v10631_v37 }
0x3030   :  { %7615 = vmatpush3.bf16.xpose.msk.msra.mxu0 %vm7991_vm1, %v10738_v43  ;;  %v7827_v43 = vld [vmem:[%s10517_s5] ss:$0 sm:$0xff] }
0x3031   :  { %7616 = vmatprep.subr.bf16.mxu0 %v10631_v37 }
0x3038   :  { %7619 = vmatpush3.bf16.xpose.msk.msra.mxu0 %vm7991_vm1, %v10739_v51 }
0x3039   :  { %7620 = vmatprep.subr.bf16.mxu0 %v10631_v37 }
0x3040   :  { %7623 = vmatpush3.bf16.xpose.msk.msra.mxu0 %vm7991_vm1, %v10740_v55 }
0x3041   :  { %7624 = vmatprep.subr.bf16.mxu0 %v10631_v37 }
0x3048   :  { %7627 = vmatpush3.bf16.xpose.msk.msra.mxu0 %vm7991_vm1, %v10741_v58 }
0x3049   :  { %7628 = vmatprep.subr.bf16.mxu0 %v10631_v37 }
0x3050   :  { %7631 = vmatpush3.bf16.xpose.msk.msra.mxu0 %vm7991_vm1, %v10742_v61 }
0x3051   :  { %7632 = vmatprep.subr.bf16.mxu0 %v10631_v37 }
0x3058   :  { %7635 = vmatpush3.bf16.xpose.msk.msra.mxu0 %vm7991_vm1, %v10743_v0 }
0x3059   :  { %7636 = vmatprep.subr.bf16.mxu0 %v10631_v37 }
0x3060   :  { %7639 = vmatpush3.bf16.xpose.msk.msra.mxu0 %vm7991_vm1, %v10744_v5 }
0x30fa   :  { %v10303_v13 = vpop.f32.mrb[28].mxu0 }
0x30fb   :  { %v4330_v16 = vpop.f32.mrb[29].mxu0 }
0x30fc   :  { %v10306_v18 = vadd.f32 %v4330_v16, %v10745_v44 }
0x30fe   :  { %v4346_v9 = vrot.slane %v10306_v18, %v10746_v7 }
0x3100   :  { %v4347_v19 = vcombine.high %v4346_v9, %v4346_v9  ;;  %v4354_v41 = vrot.slane %v4346_v9, %v10746_v7 }
0x3102   :  { %v4361_v56 = vrot.slane %v4347_v19, %v10746_v7  ;;  %v4365_v24 = vrot.slane %v4354_v41, %v10651_v59 }
0x3104   :  { %v4373_v33 = vadd.f32 %v4365_v24, %v10747_v46  ;;  %v4372_v39 = vadd.f32 %v4365_v24, %v10748_v62  ;;  %v4369_v31 = vrot.slane %v4361_v56, %v10651_v59  ;;  %v10751_v24 = vld [vmem:[#allocation22_spill] sm:$0xff] }
0x3106   :  { %v4377_v8 = vmax.f32 %v4373_v33, 0.0  ;;  %v4376_v27 = vmax.f32 %v4372_v39, 0.0  ;;  %v4374_v48 = vadd.f32 %v4369_v31, %v10749_v30  ;;  %v4375_v52 = vadd.f32 %v4369_v31, %v10750_v35 }
0x3108   :  { %v4381_v51 = vmul.f32 %v7827_v43, %v4377_v8  ;;  %v4380_v55 = vmul.f32 %v7827_v43, %v4376_v27  ;;  %v4378_v58 = vmax.f32 %v4374_v48, 0.0  ;;  %v4379_v16 = vmax.f32 %v4375_v52, 0.0 }
0x310a   :  { %v4387_v61 = vsel %vm74_vm0, %v4381_v51, 0.0  ;;  %v4384_v0 = vsel %vm74_vm0, %v4380_v55, 0.0  ;;  %v4382_v5 = vmul.f32 %v7827_v43, %v4378_v58  ;;  %v4383_v7 = vmul.f32 %v7827_v43, %v4379_v16 }
0x310b   :  { %4388 = vadd.xlane.f32.xlu1 %v4387_v61  ;;  %4385 = vadd.xlane.f32.xlu0 %v4384_v0 }
0x310c   :  { %v4390_v44 = vsel %vm74_vm0, %v4382_v5, 0.0  ;;  %v4393_v9 = vsel %vm74_vm0, %v4383_v7, 0.0 }
0x310f   :  { %4391 = vadd.xlane.f32.xlu0 %v4390_v44 }
0x3113   :  { %4394 = vadd.xlane.f32.xlu0 %v4393_v9 }
0x3198   :  { %v4386_v19 = vpop.xlane.xlu0 %4385  ;;  %v4389_v41 = vpop.xlane.xlu1 %4388 }
0x3199   :  { %v4397_v46 = vadd.f32 %v4389_v41, %v10751_v24  ;;  %v4396_v33 = vadd.f32 %v4386_v19, %v10751_v24 }
0x319b   :  { %v4411_v31 = vrot.slane %v4397_v46, %v8304_v53  ;;  %v4407_v8 = vrot.slane %v4396_v33, %v8302_v50 }
0x319c   :  { %v4392_v56 = vpop.xlane.xlu0 %4391 }
0x319d   :  { %v4398_v62 = vadd.f32 %v4392_v56, %v10751_v24  ;;  %v4412_v35 = vsel %vm662_vm5, %v4411_v31, %v4407_v8 }
0x319f   :  { %v4416_v30 = vrot.slane %v4398_v62, %v8302_v50 }
0x31a0   :  { %v4395_v39 = vpop.xlane.xlu0 %4394 }
0x31a1   :  { %v4399_v27 = vadd.f32 %v4395_v39, %v10751_v24 }
0x31a3   :  { %v4420_v48 = vrot.slane %v4399_v27, %v8304_v53 }
0x31a5   :  { %v4421_v52 = vsel %vm662_vm5, %v4420_v48, %v4416_v30 }
0x31a6   :  { %v4422_v43 = vsel %vm222_vm3, %v4421_v52, %v4412_v35 }
0x31a7   :  { %v4424_v51 = vsel %vm675_vm6, %v4422_v43, -inf }
0x31a8   :  { %4425 = vmax.xlane.f32.xlu0 %v4424_v51 }
0x3235   :  { %v4426_v55 = vpop.xlane.xlu0 %4425 }
0x3236   :  { %v4431_v58 = vrot.slane %v4426_v55, %v10651_v59  ;;  %v4435_v61 = vrot.slane %v4426_v55, %v10658_v3 }
0x3238   :  { %v4438_v0 = vsub.f32 %v4396_v33, %v4431_v58  ;;  %v4439_v5 = vsub.f32 %v4397_v46, %v4431_v58  ;;  %v4440_v16 = vsub.f32 %v4398_v62, %v4435_v61  ;;  %v4441_v9 = vsub.f32 %v4399_v27, %v4435_v61 }
0x323a   :  { %v4442_v44 = vmul.f32 1.442695, %v4438_v0  ;;  %v4444_v7 = vmul.f32 1.442695, %v4439_v5  ;;  %v4446_v19 = vmul.f32 1.442695, %v4440_v16 }
0x323b   :  { %v4448_v41 = vmul.f32 1.442695, %v4441_v9 }
0x323c   :  { %7785 = vpow2.f32 %v4442_v44 }
0x323d   :  { %7787 = vpow2.f32 %v4444_v7 }
0x323e   :  { %7789 = vpow2.f32 %v4446_v19 }
0x323f   :  { %7791 = vpow2.f32 %v4448_v41 }
0x3246   :  { %v7786_v56 = vpop.eup %7785 }
0x3247   :  { %v7788_v24 = vpop.eup %7787  ;;  %4455 = vperm.xlu1 %7652, %v7786_v56  }
0x3248   :  { %4458 = vperm.xlu0 %7651, %v7788_v24   ;;  %v7790_v39 = vpop.eup %7789 }
0x3249   :  { %v7792_v31 = vpop.eup %7791 }
0x324b   :  { %4461 = vperm.xlu1 %7652, %v7790_v39  }
0x324f   :  { %4464 = vperm.xlu1 %7652, %v7792_v31  }
0x32c6   :  { %v4456_v33 = vpop.permute.xlu1 %4455 }
0x32c7   :  { %v4459_v46 = vpop.permute.xlu0 %4458  ;;  %v4469_v27 = vrot.slane %v4456_v33, %v8302_v50 }
0x32c8   :  { %v4473_v8 = vrot.slane %v4459_v46, %v8304_v53 }
0x32ca   :  { %v4462_v62 = vpop.permute.xlu1 %4461  ;;  %v4474_v52 = vsel %vm662_vm5, %v4473_v8, %v4469_v27 }
0x32cb   :  { %v4478_v48 = vrot.slane %v4462_v62, %v8302_v50 }
0x32ce   :  { %v4465_v30 = vpop.permute.xlu1 %4464 }
0x32cf   :  { %v4482_v35 = vrot.slane %v4465_v30, %v8304_v53 }
0x32d1   :  { %v4483_v43 = vsel %vm662_vm5, %v4482_v35, %v4478_v48 }
0x32d2   :  { %v4484_v51 = vsel %vm222_vm3, %v4483_v43, %v4474_v52 }
0x32d3   :  { %v4486_v55 = vsel %vm675_vm6, %v4484_v51, 0.0 }
0x32d4   :  { %4487 = vadd.xlane.f32.xlu1 %v4486_v55 }
0x3361   :  { %v4488_v58 = vpop.xlane.xlu1 %4487 }
0x3362   :  { %7793 = vrcp.f32 %v4488_v58 }
0x336c   :  { %v7794_v61 = vpop.eup %7793 }
0x336d   :  { %v4494_v0 = vrot.slane %v7794_v61, %v10651_v59  ;;  %v4498_v44 = vrot.slane %v7794_v61, %v10658_v3 }
0x336f   :  { %v4501_v5 = vmul.f32 %v7786_v56, %v4494_v0  ;;  %v4502_v16 = vmul.f32 %v7788_v24, %v4494_v0  ;;  %v4503_v7 = vmul.f32 %v7790_v39, %v4498_v44  ;;  %v4504_v9 = vmul.f32 %v7792_v31, %v4498_v44 }
0x3371   :  { %4507 = vperm.xlu0 %7651, %v4501_v5  }
0x3375   :  { %4512 = vperm.xlu0 %7651, %v4502_v16  }
0x3379   :  { %4517 = vperm.xlu0 %7651, %v4503_v7  }
0x337d   :  { %4522 = vperm.xlu0 %7651, %v4504_v9  }
0x3381   :  { %4136 = vrot.lane.b32.xlu0 %v10259_v36, %s7883_s3 }
0x33f0   :  { %v4508_v19 = vpop.permute.xlu0 %4507 }
0x33f1   :  { %v4525_v41 = vmul.f32 %v10060_v49, %v4508_v19  ;;  %v4835_v46 = vrot.slane %v4508_v19, %v8302_v50 }
0x33f3   :  { %v4529_v3 = vsel %vm74_vm0, %v4525_v41, 0.0 }
0x33f4   :  { %v4513_v33 = vpop.permute.xlu0 %4512 }
0x33f5   :  { %v4526_v59 = vmul.f32 %v10067_v25, %v4513_v33  ;;  %v4839_v56 = vrot.slane %v4513_v33, %v8304_v53 }
0x33f7   :  { %v4530_v24 = vsel %vm74_vm0, %v4526_v59, 0.0  ;;  %v4840_v39 = vsel %vm662_vm5, %v4839_v56, %v4835_v46 }
0x33f8   :  { %v4531_v31 = vadd.f32 %v4530_v24, %v4529_v3  ;;  %v4518_v62 = vpop.permute.xlu0 %4517 }
0x33f9   :  { %v4527_v36 = vmul.f32 %v10077_v57, %v4518_v62  ;;  %v4844_v30 = vrot.slane %v4518_v62, %v8302_v50 }
0x33fa   :  { %v4532_v8 = vrot.slane %v4531_v31, 4 }
0x33fb   :  { %v4538_v35 = vsel %vm74_vm0, %v4527_v36, 0.0  ;;  %v7829_v36 = vld [vmem:[%s10628_s22] sm:$0x3] }
0x33fc   :  { %v4533_v27 = vadd.f32 %v4532_v8, %v4531_v31  ;;  %v4523_v49 = vpop.permute.xlu0 %4522 }
0x33fd   :  { %v4528_v48 = vmul.f32 %v10084_v26, %v4523_v49  ;;  %v4848_v25 = vrot.slane %v4523_v49, %v8304_v53 }
0x33fe   :  { %v4534_v51 = vrot.slane %v4533_v27, 2 }
0x33ff   :  { %v4539_v52 = vsel %vm74_vm0, %v4528_v48, 0.0  ;;  %v4849_v43 = vsel %vm662_vm5, %v4848_v25, %v4844_v30 }
0x3400   :  { %v4540_v55 = vadd.f32 %v4539_v52, %v4538_v35  ;;  %v4137_v58 = vpop.permute.xlu0 %4136  ;;  %v10366_v61 = vsel %vm222_vm3, %v4849_v43, %v4840_v39  ;;  %v4535_v50 = vadd.f32 %v4534_v51, %v4533_v27 }
0x3401   :  { %6497 = vmatmul.mubr.msk.f32.vlgmr.msra.gmra.mrb[24].mxu1 %vm74_vm0, %v4137_v58 }
0x3402   :  { %v4541_v57 = vrot.slane %v4540_v55, 4  ;;  %7547 = vmatpush3.bf16.xpose.msk.msra.mxu1 %vm7991_vm1, %v10663_v63  ;;  %6531 = vmatprep.mubr.msk.f32.mxu1 %vm7879_vm2, %v10643_v14  ;;  %v4536_v5 = vrot.slane %v4535_v50, 1 }
0x3403   :  { %7548 = vmatprep.subr.bf16.mxu1 %v10631_v37 }
0x3404   :  { %v4542_v53 = vadd.f32 %v4541_v57, %v4540_v55  ;;  %v4537_v44 = vadd.f32 %v4536_v5, %v4535_v50 }
0x3406   :  { %v4543_v26 = vrot.slane %v4542_v53, 2 }
0x3408   :  { %v4544_v0 = vadd.f32 %v4543_v26, %v4542_v53 }
0x340a   :  { %v4545_v16 = vrot.slane %v4544_v0, 1  ;;  %7551 = vmatpush3.bf16.xpose.msk.msra.mxu1 %vm7991_vm1, %v8372_v60  ;;  %v5408_v60 = vmul.f32 -1.442695, %v10306_v18 }
0x340b   :  { %7552 = vmatprep.subr.bf16.mxu1 %v10631_v37 }
0x340c   :  { %v4546_v7 = vadd.f32 %v4545_v16, %v4544_v0  ;;  %7795 = vpow2.f32 %v5408_v60 }
0x340e   :  { %v4549_v63 = vsel %vm222_vm3, %v4546_v7, %v4537_v44 }
0x340f   :  { %4550 = vrot.lane.b32.xlu0 %v4549_v63, %s7883_s3 }
0x3412   :  { %7555 = vmatpush3.bf16.xpose.msk.msra.mxu1 %vm7991_vm1, %v8384_v1 }
0x3413   :  { %7556 = vmatprep.subr.bf16.mxu1 %v10631_v37 }
0x3416   :  { %v7796_v1 = vpop.eup %7795 }
0x341a   :  { %7559 = vmatpush3.bf16.xpose.msk.msra.mxu1 %vm7991_vm1, %v8396_v2  ;;  %v4336_v2 = vadd.f32 1.0, %v7796_v1 }
0x341b   :  { %7560 = vmatprep.subr.bf16.mxu1 %v10631_v37 }
0x341c   :  { %7797 = vrcp.f32 %v4336_v2 }
0x3422   :  { %7563 = vmatpush3.bf16.xpose.msk.msra.mxu1 %vm7991_vm1, %v8408_v10 }
0x3423   :  { %7564 = vmatprep.subr.bf16.mxu1 %v10631_v37 }
0x3426   :  { %v7798_v10 = vpop.eup %7797 }
0x342a   :  { %7567 = vmatpush3.bf16.xpose.msk.msra.mxu1 %vm7991_vm1, %v8420_v17 }
0x342b   :  { %7568 = vmatprep.subr.bf16.mxu1 %v10631_v37 }
0x3432   :  { %7571 = vmatpush3.bf16.xpose.msk.msra.mxu1 %vm7991_vm1, %v8432_v21  ;;  %v4224_v21 = vsel %vm4214_vm13, %v10246_v22, %v10243_v34 }
0x3433   :  { %7572 = vmatprep.subr.bf16.mxu1 %v10631_v37 }
0x343a   :  { %7575 = vmatpush3.bf16.xpose.msk.msra.mxu1 %vm7991_vm1, %v8444_v11  ;;  %vm4258_vm1 = vcmp.gt.s32.totalorder %v7829_v36, 6 }
0x343b   :  { %7576 = vmatprep.subr.bf16.mxu1 %v10631_v37  ;;  %v4809_v27 = vsel %vm4258_vm1, 1, %v10735_v54 }
0x3481   :  { %v4551_v17 = vpop.permute.xlu0 %4550 }
0x3482   :  { %v4553_v9 = vmul.f32 %v7798_v10, %v4551_v17 }
0x3484   :  { %4557 = vrot.lane.b32.xlu0 %v4553_v9, %s7884_s24 }
0x3488   :  { %4226 = vrot.lane.b32.xlu0 %v4224_v21, %s7884_s24 }
0x34d4   :  { %v4206_v4 = vpop.f32.mrb[24].mxu1 }
0x34d5   :  { %v4207_v11 = vadd.f32 %v10141_v40, %v4206_v4  ;;  %v6498_v18 = vpop.f32.mrb[25].mxu1 }
0x34d7   :  { %v4230_v19 = vsel %vm4214_vm13, %v4207_v11, 0.0 }
0x34d8   :  { %4232 = vst [vmem:[#allocation5 + $0xa] sm:$0x3] %v4230_v19 }
0x34f6   :  { %v4558_v41 = vpop.permute.xlu0 %4557 }
0x34f7   :  { %6532 = vmatmul.mubr.msk.f32.vlgmr.msra.gmra.mrb[26].mxu1 %vm74_vm0, %v4558_v41 }
0x34f8   :  { %7579 = vmatpush3.bf16.xpose.msk.msra.mxu1 %vm8464_vm8, %v8460_v42  ;;  %6566 = vmatprep.mubr.msk.f32.mxu1 %vm7879_vm2, %v10643_v14  ;;  %v5409_v42 = vld [vmem:[%s10514_s2 + $0xc] sm:$0x3] }
0x34f9   :  { %7580 = vmatprep.subr.bf16.mxu1 %v10631_v37 }
0x34fa   :  { %v4227_v34 = vpop.permute.xlu0 %4226 }
0x34fb   :  { %4229 = vst.msk [vmem:[#allocation3] sm:$0x3] %vm320_vm4, %v4227_v34 }
0x3500   :  { %7583 = vmatpush3.bf16.xpose.msk.msra.mxu1 %vm8464_vm8, %v8482_v6 }
0x3501   :  { %7584 = vmatprep.subr.bf16.mxu1 %v10631_v37 }
0x3502   :  { %v4257_v22 = vld [vmem:[#allocation3] sm:$0x3] }
0x3503   :  { %4714 = vrot.lane.b32.xlu1 %v4257_v22, %s7883_s3 }
0x3508   :  { %7587 = vmatpush3.bf16.xpose.msk.msra.mxu1 %vm8464_vm8, %v8495_v20 }
0x3509   :  { %7588 = vmatprep.subr.bf16.mxu1 %v10631_v37 }
0x3510   :  { %7591 = vmatpush3.bf16.xpose.msk.msra.mxu1 %vm8464_vm8, %v8507_v12 }
0x3511   :  { %7592 = vmatprep.subr.bf16.mxu1 %v10631_v37 }
0x3518   :  { %7595 = vmatpush3.bf16.xpose.msk.msra.mxu1 %vm8464_vm8, %v8519_v29 }
0x3519   :  { %7596 = vmatprep.subr.bf16.mxu1 %v10631_v37 }
0x3520   :  { %7599 = vmatpush3.bf16.xpose.msk.msra.mxu1 %vm8464_vm8, %v8531_v38 }
0x3521   :  { %7600 = vmatprep.subr.bf16.mxu1 %v10631_v37 }
0x3528   :  { %7603 = vmatpush3.bf16.xpose.msk.msra.mxu1 %vm8464_vm8, %v8543_v32  ;;  %v4329_v32 = vadd.f32 %v10303_v13, %v10710_v28 }
0x3529   :  { %7604 = vmatprep.subr.bf16.mxu1 %v10631_v37  ;;  %v7828_v37 = vld [vmem:[%s10525_s13] ss:$0 sm:$0xff] }
0x3530   :  { %7607 = vmatpush3.bf16.xpose.msk.msra.mxu1 %vm8464_vm8, %v8555_v15 }
0x3537   :  { %6567 = vmatmul.mubr.msk.f32.vlgmr.msra.gmra.mrb[28].mxu1 %vm930_vm7, %v5409_v42 }
0x3575   :  { %v4715_v28 = vpop.permute.xlu1 %4714 }
0x35ca   :  { %v4627_v6 = vpop.f32.mrb[26].mxu1 }
0x35cb   :  { %v6533_v20 = vpop.f32.mrb[27].mxu1 }
0x360a   :  { %v4700_v12 = vpop.f32.mrb[28].mxu1 }
0x360b   :  { %v4701_v29 = vadd.f32 %v4700_v12, %v4627_v6  ;;  %v6568_v38 = vpop.f32.mrb[29].mxu1 }
0x360d   :  { %v4704_v47 = vadd.f32 %v7828_v37, %v4701_v29 }
0x360f   :  { %v4705_v15 = vadd.f32 %v4704_v47, %v4329_v32 }
0x3611   :  { %7799 = vtanh.f32 %v4705_v15  ;;  %v5444_v45 = vmul.f32 -1.442695, %v4705_v15 }
0x3613   :  { %7801 = vpow2.f32 %v5444_v45 }
0x361b   :  { %v7800_v14 = vpop.eup %7799 }
0x361c   :  { %4719 = vrot.lane.b32.xlu0 %v7800_v14, %s7885_s19 }
0x361d   :  { %v7802_v33 = vpop.eup %7801 }
0x361e   :  { %v4709_v46 = vadd.f32 1.0, %v7802_v33 }
0x3620   :  { %7803 = vrcp.f32 %v4709_v46 }
0x362a   :  { %v7804_v59 = vpop.eup %7803 }
0x362b   :  { %v4717_v13 = vmul.f32 %v7804_v59, %v4715_v28 }
0x368e   :  { %v4720_v56 = vpop.permute.xlu0 %4719 }
0x368f   :  { %v4722_v3 = vmul.f32 %v7804_v59, %v4720_v56 }
0x3691   :  { %4724 = vrot.lane.b32.xlu0 %v4722_v3, %s7883_s3 }
0x3703   :  { %v4725_v24 = vpop.permute.xlu0 %4724 }
0x3704   :  { %v4727_v39 = vadd.f32 %v4725_v24, %v4717_v13 }
0x3706   :  { %7805 = vtanh.f32 %v4727_v39 }
0x3710   :  { %v7806_v31 = vpop.eup %7805 }
0x3711   :  { %4730 = vrot.lane.b32.xlu0 %v7806_v31, %s7885_s19  ;;  %s7886_s19 = smov [#allocation7]  }
0x3712   :  { %s4872_s22 = sshll.u32 %s7886_s19, 4  ;;  %s4873_s22 = int_to_ptr.vmem [resolvable:$true] %s4872_s22 }
0x3713   :  { %s7830_s10 = scalar_lea.vmem %s4873_s22, 224  ;;  %p7835_p1 = scmp.lt.s32.totalorder %s4873_s22, %s4873_s22 }
0x3714   :  { %p7831_p0 = scmp.ne.s32.totalorder %s4873_s22, %s7830_s10  ;;  %p7836_p2 = scmp.lt.s32.totalorder %s7830_s10, %s7830_s10 }
0x3716   :  { %p7837_p3 = por %p7836_p2, %p7835_p1 }
0x3718   :  { %p7838_p4 = pnand %p7837_p3, %p7831_p0 }
0x3783   :  { %v4731_v62 = vpop.permute.xlu0 %4730 }
0x3784   :  { %v4733_v8 = vmul.f32 %v7804_v59, %v4731_v62 }
0x3786   :  { %4735 = vrot.lane.b32.xlu0 %v4733_v8, %s7883_s3 }
0x378a   :  { %4811 = vperm.xlu0 %7651, %v4809_v27  }
0x378e   :  { %4814 = vrot.lane.b32.xlu0 %v10266_v23, %s7884_s24 }
0x37f8   :  { %v4736_v49 = vpop.permute.xlu0 %4735 }
0x37f9   :  { %6602 = vmatmul.mubr.msk.f32.vlgmr.msra.gmra.mrb[30].mxu0 %vm74_vm0, %v4736_v49 }
0x3809   :  { %v4812_v30 = vpop.permute.xlu0 %4811 }
0x380a   :  { %vm4813_vm2 = vcmp.eq.s32.totalorder %v4812_v30, 1 }
0x380b   :  { %v4852_v48 = vsel %vm4813_vm2, %v10366_v61, 0.0  ;;  %v4823_v25 = vsel %vm4813_vm2, %v4727_v39, %v4715_v28 }
0x380c   :  { %4854 = vst.msk [vmem:[#allocation7 + $0xc] sm:$0x3] %vm675_vm6, %v4852_v48  ;;  %4825 = vrot.lane.b32.xlu0 %v4823_v25, %s7884_s24 }
0x380d   :  { %v4815_v35 = vpop.permute.xlu0 %4814 }
0x380e   :  { %v4817_v54 = vsel %vm4813_vm2, %v4733_v8, %v4815_v35 }
0x380f   :  { %4819 = vrot.lane.b32.xlu1 %v4817_v54, %s7883_s3 }
0x3810   :  { %7841 = shalt.err (!%p7838_p4)
}
0x3811   :  { %s7842_s6 = scalar_lea.hbm %s10529_s17, 224 }
0x3812   :  { %p7843_p5 = scmp.ne.s32.totalorder %s10529_s17, %s7842_s6  ;;  %p7846_p6 = scmp.lt.u32.totalorder %s7842_s6, %s10529_s17 }
0x3814   :  { %p7848_p7 = pnand %p7846_p6, %p7843_p5 }
0x3816   :  { %7851 = shalt.err (!%p7848_p7)
}
0x3817   :  { %s7887_s7 = smov 2   ;;  %s7888_s1 = smov [#allocation5]  }
0x3818   :  { %4878 = dma.vmem_to_hbm [thread:$0]  %s4873_s22, 224, %s10529_s17, [#allocation8], %s7883_s3, %s7883_s3, %s7887_s7  }
0x3819   :  { %s4860_s21 = sshll.u32 %s7888_s1, 4  ;;  %s4861_s21 = int_to_ptr.vmem [resolvable:$true] %s4860_s21 }
0x381a   :  { %s7852_s23 = scalar_lea.vmem %s4861_s21, 224  ;;  %p7857_p9 = scmp.lt.s32.totalorder %s4861_s21, %s4861_s21 }
0x381b   :  { %p7853_p8 = scmp.ne.s32.totalorder %s4861_s21, %s7852_s23  ;;  %p7858_p10 = scmp.lt.s32.totalorder %s7852_s23, %s7852_s23 }
0x381d   :  { %p7859_p11 = por %p7858_p10, %p7857_p9 }
0x381f   :  { %p7860_p12 = pnand %p7859_p11, %p7853_p8 }
0x387e   :  { %v4826_v23 = vpop.permute.xlu0 %4825 }
0x387f   :  { %4828 = vst.msk [vmem:[#allocation3] sm:$0x3] %vm320_vm4, %v4826_v23 }
0x3881   :  { %v4820_v52 = vpop.permute.xlu1 %4819 }
0x3882   :  { %4822 = vst.msk [vmem:[#allocation2] sm:$0x3] %vm320_vm4, %v4820_v52 }
0x38cc   :  { %v4805_v43 = vpop.f32.mrb[30].mxu0 }
0x38cd   :  { %v4806_v51 = vadd.f32 %v10141_v40, %v4805_v43  ;;  %v6603_v55 = vpop.f32.mrb[31].mxu0 }
0x38cf   :  { %v4829_v58 = vsel %vm4813_vm2, %v4806_v51, 0.0 }
0x38d0   :  { %4831 = vst [vmem:[#allocation5 + $0xc] sm:$0x3] %v4829_v58 }
0x38d1   :  { %7863 = shalt.err (!%p7860_p12)
}
0x38d2   :  { %s7864_s12 = scalar_lea.hbm %s10528_s16, 224 }
0x38d3   :  { %p7865_p13 = scmp.ne.s32.totalorder %s10528_s16, %s7864_s12  ;;  %p7868_p0 = scmp.lt.u32.totalorder %s7864_s12, %s10528_s16 }
0x38d5   :  { %p7870_p1 = pnand %p7868_p0, %p7865_p13 }
0x38d7   :  { %7873 = shalt.err (!%p7870_p1)
}
0x38d8   :  { %4866 = dma.vmem_to_hbm [thread:$0]  %s4861_s21, 224, %s10528_s16, [#allocation6], %s7883_s3, %s7883_s3, %s7887_s7  }
0x38d9   :  { %7874 = dma.done.wait [#allocation6], 224  }
0x38da   :  { %7875 = vsyncadd [#allocation6], 4294967072 }
0x38db   :  { %7876 = dma.done.wait [#allocation8], 224  }
0x38dc   :  { %7877 = vsyncadd [#allocation8], 4294967072 }
0x38dd   :  { %4885 = vsyncpa [#allocation6], 1 }
0x38de   :  { %4886 = vsyncpa [#allocation8], 1 }

</bundles_post_ra>
